<compile_context>
chip_gen: v5e
topology: v5e:2x2
jax: 0.10.0
libtpu: 0.0.40
codegen_flags: <defaults>
</compile_context>

<pallas_src>
import jax
import jax.numpy as jnp
from jax.experimental import pallas as pl

# ----- problem sizes (small, consistent with the module) -----
B = 2           # batch
C_IN = 4        # input channels
H = W = 16      # spatial
K = 3           # conv kernel
F_BACK = 512    # backbone feature dim (required by projection head)
F_HID = 512     # projection hidden dim
F_OUT = 128     # projection output dim
HW = H * W
CKK = C_IN * K * K       # 36
CKK_PAD = 128            # zero-padded, lane-aligned contraction dim


# ---------------------------------------------------------------------------
# Fused Pallas kernel: backbone + projection head in one invocation
# ---------------------------------------------------------------------------
def simclr_fused_kernel(p_ref, wc_ref, bc_ref, w1_ref, b1_ref, w2_ref, b2_ref,
                        o_ref):
    """Conv (im2col matmul) + bias + ReLU + avg-pool + MLP head, all in VMEM.

    p_ref:  (B*HW, CKK_PAD)    bf16  im2col patches (zero-padded contraction dim)
    wc_ref: (CKK_PAD, F_BACK)  bf16  flattened conv weight (zero-padded rows)
    bc_ref: (1, F_BACK)        f32   conv bias
    w1_ref: (F_BACK, F_HID)    bf16 ; b1_ref: (1, F_HID) f32
    w2_ref: (F_HID, F_OUT)     bf16 ; b2_ref: (1, F_OUT) f32
    o_ref:  (B, F_OUT)         f32
    """
    # Backbone: conv as one big matmul (M = B*HW = 512), f32 accumulate.
    conv = jnp.dot(p_ref[...], wc_ref[...],
                   preferred_element_type=jnp.float32) + bc_ref[...]   # (B*HW, F)
    act = jnp.maximum(conv, 0.0)                                       # ReLU, f32

    # Global average pool over HW: leading-dim split + VPU/XLU reduction.
    # (B*HW, F) -> (B, HW, F), sum axis=1, * 1/HW. No MXU, no relayout.
    feats = jnp.sum(act.reshape(B, HW, F_BACK), axis=1) * (1.0 / HW)   # (B, F) f32

    # Projection head: Linear(512,512) -> ReLU -> Linear(512,128).
    h = jnp.dot(feats.astype(jnp.bfloat16), w1_ref[...],
                preferred_element_type=jnp.float32) + b1_ref[...]
    h = jnp.maximum(h, 0.0)
    z = jnp.dot(h.astype(jnp.bfloat16), w2_ref[...],
                preferred_element_type=jnp.float32) + b2_ref[...]
    o_ref[...] = z                                                     # (B, 128) lane-dense store


# ---------------------------------------------------------------------------
# Wrappers
# ---------------------------------------------------------------------------
def _im2col(x, k=K, pad=1):
    """NCHW -> (B, H*W, C*k*k) patches, same-padding, stride 1.

    Flattened patch index order is c*k*k + kh*k + kw, matching
    torch_conv_weight.reshape(F, C*k*k).
    """
    b, c, h, w = x.shape
    xp = jnp.pad(x, ((0, 0), (0, 0), (pad, pad), (pad, pad)))
    cols = []
    for kh in range(k):
        for kw in range(k):
            cols.append(xp[:, :, kh:kh + h, kw:kw + w])        # (B, C, H, W)
    patches = jnp.stack(cols, axis=2)                           # (B, C, k*k, H, W)
    patches = patches.transpose(0, 3, 4, 1, 2)                  # (B, H, W, C, k*k)
    return patches.reshape(b, h * w, c * k * k)


def _padded_patches(x):
    """im2col + zero-pad the contraction dim to CKK_PAD, cast to bf16."""
    p = _im2col(x).reshape(B * HW, CKK)
    p = jnp.pad(p, ((0, 0), (0, CKK_PAD - CKK)))
    return p.astype(jnp.bfloat16)                                # (B*HW, CKK_PAD)


@jax.jit
def simclr_forward(params, x):
    """x: (B, C_IN, H, W) float32 NCHW  ->  z: (B, F_OUT) float32."""
    patches = _padded_patches(x)                                 # (512, 128) bf16

    # Single fused, gridless pallas_call: every operand is one full-extent VMEM block.
    z = pl.pallas_call(
        simclr_fused_kernel,
        out_shape=jax.ShapeDtypeStruct((B, F_OUT), jnp.float32),
    )(patches, params["w_conv"], params["b_conv"],
      params["w1"], params["b1"], params["w2"], params["b2"])
    return z                                                     # (B, F_OUT), no slice


def simclr_reference(params, x):
    """Pure-JAX reference with the same bf16 casts (accumulation-order diffs only)."""
    patches = _padded_patches(x).astype(jnp.float32)             # zero cols are exact
    conv = patches @ params["w_conv"].astype(jnp.float32) + params["b_conv"]
    act = jnp.maximum(conv, 0.0).reshape(B, HW, F_BACK)
    feats = jnp.mean(act, axis=1)
    h = (feats.astype(jnp.bfloat16).astype(jnp.float32)
         @ params["w1"].astype(jnp.float32) + params["b1"])
    h = jnp.maximum(h, 0.0)
    return (h.astype(jnp.bfloat16).astype(jnp.float32)
            @ params["w2"].astype(jnp.float32) + params["b2"])


def init_params(key):
    """Deterministic synthetic parameters (PyTorch-style uniform fan-in init)."""
    ks = jax.random.split(key, 6)

    def uniform(k, shape, fan_in):
        bound = 1.0 / jnp.sqrt(jnp.float32(fan_in))
        return jax.random.uniform(k, shape, jnp.float32, -bound, bound)

    # conv weight stored PyTorch-style (F, C, K, K), flattened for the im2col matmul,
    # then zero-padded along the contraction dim to CKK_PAD.
    w_conv = uniform(ks[0], (F_BACK, C_IN, K, K), CKK)
    w_conv_flat = w_conv.reshape(F_BACK, CKK).T                         # (CKK, F_BACK)
    w_conv_flat = jnp.pad(w_conv_flat, ((0, CKK_PAD - CKK), (0, 0)))    # (CKK_PAD, F_BACK)

    params = {
        # weights in bf16 for the MXU; biases stay f32
        "w_conv": w_conv_flat.astype(jnp.bfloat16),
        "b_conv": uniform(ks[1], (1, F_BACK), CKK),
        "w1": uniform(ks[2], (F_BACK, F_HID), F_BACK).astype(jnp.bfloat16),
        "b1": uniform(ks[3], (1, F_HID), F_BACK),
        "w2": uniform(ks[4], (F_HID, F_OUT), F_HID).astype(jnp.bfloat16),
        "b2": uniform(ks[5], (1, F_OUT), F_HID),
    }
    return params


if __name__ == "__main__":
    key = jax.random.PRNGKey(0)
    k_x, k_p = jax.random.split(key)
    x = jax.random.normal(k_x, (B, C_IN, H, W), jnp.float32)   # NCHW like PyTorch
    params = init_params(k_p)

    z = simclr_forward(params, x)
    jax.block_until_ready(z)

    assert z.shape == (B, F_OUT), z.shape
    assert z.dtype == jnp.float32, z.dtype

    z_ref = simclr_reference(params, x)
    assert jnp.allclose(z, z_ref, rtol=5e-2, atol=5e-2), float(jnp.max(jnp.abs(z - z_ref)))

    print("KERNEL_OK")
</pallas_src>

<mosaic_0001>
module attributes {stable_mosaic.version = 11 : i64} {
  func.func @simclr_fused_kernel(%arg0: memref<512x128xbf16, #tpu.memory_space<vmem>>, %arg1: memref<128x512xbf16, #tpu.memory_space<vmem>>, %arg2: memref<1x512xf32, #tpu.memory_space<vmem>>, %arg3: memref<512x512xbf16, #tpu.memory_space<vmem>>, %arg4: memref<1x512xf32, #tpu.memory_space<vmem>>, %arg5: memref<512x128xbf16, #tpu.memory_space<vmem>>, %arg6: memref<1x128xf32, #tpu.memory_space<vmem>>, %arg7: memref<2x128xf32, #tpu.memory_space<vmem>>) attributes {dimension_semantics = [], scalar_prefetch = 0 : i64, scratch_operands = 0 : i64, tpu.core_type = #tpu.core_type<tc>} {
    %c0 = arith.constant 0 : index
    %c0_0 = arith.constant 0 : index
    %0 = vector.load %arg0[%c0, %c0_0] : memref<512x128xbf16, #tpu.memory_space<vmem>>, vector<512x128xbf16>
    %c0_1 = arith.constant 0 : index
    %c0_2 = arith.constant 0 : index
    %1 = vector.load %arg1[%c0_1, %c0_2] : memref<128x512xbf16, #tpu.memory_space<vmem>>, vector<128x512xbf16>
    %cst = arith.constant dense<0.000000e+00> : vector<512x512xf32>
    %2 = tpu.matmul %0, %1, %cst {dimension_numbers = #tpu.dot_dimension_numbers<[1], [0], [0], [1], [0, 0, 1, 1], [], []>} : vector<512x128xbf16>, vector<128x512xbf16>, vector<512x512xf32> -> vector<512x512xf32>
    %c0_3 = arith.constant 0 : index
    %c0_4 = arith.constant 0 : index
    %3 = vector.load %arg2[%c0_3, %c0_4] : memref<1x512xf32, #tpu.memory_space<vmem>>, vector<1x512xf32>
    %4 = vector.broadcast %3 : vector<1x512xf32> to vector<512x512xf32>
    %5 = arith.addf %2, %4 : vector<512x512xf32>
    %cst_5 = arith.constant 0.000000e+00 : f32
    %6 = vector.broadcast %cst_5 : f32 to vector<512x512xf32>
    %7 = arith.maximumf %5, %6 : vector<512x512xf32>
    %8 = vector.shape_cast %7 : vector<512x512xf32> to vector<2x256x512xf32>
    %cst_6 = arith.constant dense<0.000000e+00> : vector<2x512xf32>
    %9 = vector.multi_reduction <add>, %8, %cst_6 [1] : vector<2x256x512xf32> to vector<2x512xf32>
    %cst_7 = arith.constant 3.906250e-03 : f32
    %10 = vector.broadcast %cst_7 : f32 to vector<2x512xf32>
    %11 = arith.mulf %9, %10 : vector<2x512xf32>
    %12 = arith.truncf %11 : vector<2x512xf32> to vector<2x512xbf16>
    %c0_8 = arith.constant 0 : index
    %c0_9 = arith.constant 0 : index
    %13 = vector.load %arg3[%c0_8, %c0_9] : memref<512x512xbf16, #tpu.memory_space<vmem>>, vector<512x512xbf16>
    %cst_10 = arith.constant dense<0.000000e+00> : vector<2x512xf32>
    %14 = tpu.matmul %12, %13, %cst_10 {dimension_numbers = #tpu.dot_dimension_numbers<[1], [0], [0], [1], [0, 0, 1, 1], [], []>} : vector<2x512xbf16>, vector<512x512xbf16>, vector<2x512xf32> -> vector<2x512xf32>
    %c0_11 = arith.constant 0 : index
    %c0_12 = arith.constant 0 : index
    %15 = vector.load %arg4[%c0_11, %c0_12] : memref<1x512xf32, #tpu.memory_space<vmem>>, vector<1x512xf32>
    %16 = vector.broadcast %15 : vector<1x512xf32> to vector<2x512xf32>
    %17 = arith.addf %14, %16 : vector<2x512xf32>
    %cst_13 = arith.constant 0.000000e+00 : f32
    %18 = vector.broadcast %cst_13 : f32 to vector<2x512xf32>
    %19 = arith.maximumf %17, %18 : vector<2x512xf32>
    %20 = arith.truncf %19 : vector<2x512xf32> to vector<2x512xbf16>
    %c0_14 = arith.constant 0 : index
    %c0_15 = arith.constant 0 : index
    %21 = vector.load %arg5[%c0_14, %c0_15] : memref<512x128xbf16, #tpu.memory_space<vmem>>, vector<512x128xbf16>
    %cst_16 = arith.constant dense<0.000000e+00> : vector<2x128xf32>
    %22 = tpu.matmul %20, %21, %cst_16 {dimension_numbers = #tpu.dot_dimension_numbers<[1], [0], [0], [1], [0, 0, 1, 1], [], []>} : vector<2x512xbf16>, vector<512x128xbf16>, vector<2x128xf32> -> vector<2x128xf32>
    %c0_17 = arith.constant 0 : index
    %c0_18 = arith.constant 0 : index
    %23 = vector.load %arg6[%c0_17, %c0_18] : memref<1x128xf32, #tpu.memory_space<vmem>>, vector<1x128xf32>
    %24 = vector.broadcast %23 : vector<1x128xf32> to vector<2x128xf32>
    %25 = arith.addf %22, %24 : vector<2x128xf32>
    %c0_19 = arith.constant 0 : index
    %c0_20 = arith.constant 0 : index
    %26 = vector.load %arg7[%c0_19, %c0_20] : memref<2x128xf32, #tpu.memory_space<vmem>>, vector<2x128xf32>
    tpu.vector_store %arg7[%c0_19, %c0_20], %25 {strides = array<i32>} : memref<2x128xf32, #tpu.memory_space<vmem>>, vector<2x128xf32>,
    return
  }
}

</mosaic_0001>

<bundles_post_ra>
// kernel: simclr_forward.1
= control target key start
LH: loop header
LB: loop body
LE: loop exit
PB: predicated region body
PF: predicated region fallthrough
CT: control target
= control target key end

     0   :  { %s5880_s0 = inlined_call_operand.vmem [shape: bf16[512,128], index: 0, kind: input, shape index: {}]   ;;  %s5881_s1 = inlined_call_operand.vmem [shape: bf16[128,512], index: 1, kind: input, shape index: {}]   ;;  %s5882_s2 = inlined_call_operand.vmem [shape: f32[1,512], index: 2, kind: input, shape index: {}]   ;;  %s5883_s3 = inlined_call_operand.vmem [shape: bf16[512,512], index: 3, kind: input, shape index: {}]   ;;  %s5884_s4 = inlined_call_operand.vmem [shape: f32[1,512], index: 4, kind: input, shape index: {}]   ;;  %s5885_s5 = inlined_call_operand.vmem [shape: bf16[512,128], index: 5, kind: input, shape index: {}]   ;;  %s5886_s6 = inlined_call_operand.vmem [shape: f32[1,128], index: 6, kind: input, shape index: {}]   ;;  %s5887_s7 = inlined_call_operand.hbm [shape: f32[2,128], index: 7, kind: output, shape index: {}]  }
   0x1   :  { %v3323_v0 = vld [vmem:[%s5881_s1 + $0xe0] sm:$0xf]  ;;  %v4039_v1 = vld [vmem:[%s5881_s1 + $0xec] sm:$0xf0]  ;;  %v4037_v2 = vld [vmem:[%s5881_s1 + $0xe4] sm:$0xf] }
   0x2   :  { %v3324_v3 = vor.u32 %v4039_v1, %v3323_v0  ;;  %v3325_v4 = vld [vmem:[%s5881_s1 + $0xf0] sm:$0xf0]  ;;  %v3331_v5 = vld [vmem:[%s5881_s1 + $0xe8] sm:$0xf]  ;;  %v4040_v6 = vld [vmem:[%s5881_s1 + $0xf4] sm:$0xf0] }
   0x3   :  { %v3328_v7 = vor.u32 %v4037_v2, %v3325_v4  ;;  %v3332_v8 = vor.u32 %v4040_v6, %v3331_v5  ;;  %v4038_v9 = vld [vmem:[%s5881_s1 + $0xec] sm:$0xf]  ;;  %v3333_v10 = vld [vmem:[%s5881_s1 + $0xf8] sm:$0xf0]  ;;  %v3307_v11 = vld [vmem:[%s5881_s1 + $0xc0] sm:$0xf] }
   0x4   :  { %485 = vmatpush.bf16.msra.mxu0 %v3324_v3  ;;  %v3336_v12 = vor.u32 %v4038_v9, %v3333_v10  ;;  %v4035_v13 = vld [vmem:[%s5881_s1 + $0xcc] sm:$0xf0]  ;;  %v4033_v14 = vld [vmem:[%s5881_s1 + $0xc4] sm:$0xf]  ;;  %v3309_v15 = vld [vmem:[%s5881_s1 + $0xd0] sm:$0xf0] }
   0x5   :  { %654 = vmatpush.bf16.msra.mxu1 %v3328_v7  ;;  %823 = vmatpush.bf16.msra.mxu2 %v3332_v8  ;;  %v3308_v16 = vor.u32 %v4035_v13, %v3307_v11  ;;  %v3312_v17 = vor.u32 %v4033_v14, %v3309_v15  ;;  %v3315_v18 = vld [vmem:[%s5881_s1 + $0xc8] sm:$0xf]  ;;  %v4036_v19 = vld [vmem:[%s5881_s1 + $0xd4] sm:$0xf0]  ;;  %v4034_v20 = vld [vmem:[%s5881_s1 + $0xcc] sm:$0xf] }
   0x6   :  { %992 = vmatpush.bf16.msra.mxu3 %v3336_v12  ;;  %v3316_v21 = vor.u32 %v4036_v19, %v3315_v18  ;;  %v3317_v22 = vld [vmem:[%s5881_s1 + $0xd8] sm:$0xf0]  ;;  %v3291_v23 = vld [vmem:[%s5881_s1 + $0xa0] sm:$0xf]  ;;  %v4031_v24 = vld [vmem:[%s5881_s1 + $0xac] sm:$0xf0] }
   0x7   :  { %v3320_v25 = vor.u32 %v4034_v20, %v3317_v22  ;;  %v4029_v26 = vld [vmem:[%s5881_s1 + $0xa4] sm:$0xf]  ;;  %v3293_v27 = vld [vmem:[%s5881_s1 + $0xb0] sm:$0xf0]  ;;  %v3299_v28 = vld [vmem:[%s5881_s1 + $0xa8] sm:$0xf]  ;;  %v3292_v29 = vor.u32 %v4031_v24, %v3291_v23 }
   0x8   :  { %486 = vmatpush.bf16.msra.mxu0 %v3308_v16  ;;  %v4032_v30 = vld [vmem:[%s5881_s1 + $0xb4] sm:$0xf0]  ;;  %v4030_v31 = vld [vmem:[%s5881_s1 + $0xac] sm:$0xf]  ;;  %v3301_v32 = vld [vmem:[%s5881_s1 + $0xb8] sm:$0xf0]  ;;  %v3296_v33 = vor.u32 %v4029_v26, %v3293_v27 }
   0x9   :  { %655 = vmatpush.bf16.msra.mxu1 %v3312_v17  ;;  %824 = vmatpush.bf16.msra.mxu2 %v3316_v21  ;;  %v3300_v34 = vor.u32 %v4032_v30, %v3299_v28  ;;  %v3275_v35 = vld [vmem:[%s5881_s1 + $0x80] sm:$0xf]  ;;  %v4027_v36 = vld [vmem:[%s5881_s1 + $0x8c] sm:$0xf0]  ;;  %v4025_v37 = vld [vmem:[%s5881_s1 + $0x84] sm:$0xf]  ;;  %v3304_v38 = vor.u32 %v4030_v31, %v3301_v32 }
   0xa   :  { %993 = vmatpush.bf16.msra.mxu3 %v3320_v25  ;;  %v3277_v39 = vld [vmem:[%s5881_s1 + $0x90] sm:$0xf0]  ;;  %v3283_v40 = vld [vmem:[%s5881_s1 + $0x88] sm:$0xf]  ;;  %v4028_v41 = vld [vmem:[%s5881_s1 + $0x94] sm:$0xf0]  ;;  %v3276_v44 = vor.u32 %v4027_v36, %v3275_v35 }
   0xb   :  { %v4026_v42 = vld [vmem:[%s5881_s1 + $0x8c] sm:$0xf]  ;;  %v3285_v43 = vld [vmem:[%s5881_s1 + $0x98] sm:$0xf0]  ;;  %v3280_v45 = vor.u32 %v4025_v37, %v3277_v39  ;;  %v3284_v46 = vor.u32 %v4028_v41, %v3283_v40  ;;  %v3259_v47 = vld [vmem:[%s5881_s1 + $0x60] sm:$0xf] }
   0xc   :  { %487 = vmatpush.bf16.msra.mxu0 %v3292_v29  ;;  %v4023_v48 = vld [vmem:[%s5881_s1 + $0x6c] sm:$0xf0]  ;;  %v4021_v49 = vld [vmem:[%s5881_s1 + $0x64] sm:$0xf]  ;;  %v3288_v50 = vor.u32 %v4026_v42, %v3285_v43  ;;  %v3261_v51 = vld [vmem:[%s5881_s1 + $0x70] sm:$0xf0] }
   0xd   :  { %656 = vmatpush.bf16.msra.mxu1 %v3296_v33  ;;  %825 = vmatpush.bf16.msra.mxu2 %v3300_v34  ;;  %v3267_v52 = vld [vmem:[%s5881_s1 + $0x68] sm:$0xf]  ;;  %v4024_v53 = vld [vmem:[%s5881_s1 + $0x74] sm:$0xf0]  ;;  %v4022_v54 = vld [vmem:[%s5881_s1 + $0x6c] sm:$0xf]  ;;  %v3260_v56 = vor.u32 %v4023_v48, %v3259_v47  ;;  %v3264_v57 = vor.u32 %v4021_v49, %v3261_v51 }
   0xe   :  { %994 = vmatpush.bf16.msra.mxu3 %v3304_v38  ;;  %v3269_v55 = vld [vmem:[%s5881_s1 + $0x78] sm:$0xf0]  ;;  %v3268_v58 = vor.u32 %v4024_v53, %v3267_v52  ;;  %v3243_v59 = vld [vmem:[%s5881_s1 + $0x40] sm:$0xf]  ;;  %v4019_v60 = vld [vmem:[%s5881_s1 + $0x4c] sm:$0xf0] }
   0xf   :  { %v4017_v61 = vld [vmem:[%s5881_s1 + $0x44] sm:$0xf]  ;;  %v3272_v62 = vor.u32 %v4022_v54, %v3269_v55  ;;  %v3245_v63 = vld [vmem:[%s5881_s1 + $0x50] sm:$0xf0]  ;;  %v3251_v0 = vld [vmem:[%s5881_s1 + $0x48] sm:$0xf]  ;;  %v3244_v4 = vor.u32 %v4019_v60, %v3243_v59 }
  0x10   :  { %488 = vmatpush.bf16.msra.mxu0 %v3276_v44  ;;  %v4020_v1 = vld [vmem:[%s5881_s1 + $0x54] sm:$0xf0]  ;;  %v4018_v2 = vld [vmem:[%s5881_s1 + $0x4c] sm:$0xf]  ;;  %v3253_v3 = vld [vmem:[%s5881_s1 + $0x58] sm:$0xf0]  ;;  %v3248_v6 = vor.u32 %v4017_v61, %v3245_v63 }
  0x11   :  { %657 = vmatpush.bf16.msra.mxu1 %v3280_v45  ;;  %826 = vmatpush.bf16.msra.mxu2 %v3284_v46  ;;  %v3227_v5 = vld [vmem:[%s5881_s1 + $0x20] sm:$0xf]  ;;  %v3252_v7 = vor.u32 %v4020_v1, %v3251_v0  ;;  %v4015_v8 = vld [vmem:[%s5881_s1 + $0x2c] sm:$0xf0]  ;;  %v4013_v9 = vld [vmem:[%s5881_s1 + $0x24] sm:$0xf]  ;;  %v3256_v11 = vor.u32 %v4018_v2, %v3253_v3 }
  0x12   :  { %995 = vmatpush.bf16.msra.mxu3 %v3288_v50  ;;  %v3229_v10 = vld [vmem:[%s5881_s1 + $0x30] sm:$0xf0]  ;;  %v3235_v12 = vld [vmem:[%s5881_s1 + $0x28] sm:$0xf]  ;;  %v4016_v13 = vld [vmem:[%s5881_s1 + $0x34] sm:$0xf0] }
  0x13   :  { %v4014_v14 = vld [vmem:[%s5881_s1 + $0x2c] sm:$0xf]  ;;  %v3237_v15 = vld [vmem:[%s5881_s1 + $0x38] sm:$0xf0] }
  0x14   :  { %489 = vmatpush.bf16.msra.mxu0 %v3260_v56 }
  0x15   :  { %658 = vmatpush.bf16.msra.mxu1 %v3264_v57  ;;  %827 = vmatpush.bf16.msra.mxu2 %v3268_v58 }
  0x16   :  { %996 = vmatpush.bf16.msra.mxu3 %v3272_v62 }
  0x17   :  { %12 = vsyncpa [#allocation3], 0  ;;  %v3228_v16 = vor.u32 %v4015_v8, %v3227_v5  ;;  %v3232_v17 = vor.u32 %v4013_v9, %v3229_v10  ;;  %v3236_v18 = vor.u32 %v4016_v13, %v3235_v12  ;;  %v3211_v19 = vld [vmem:[%s5881_s1] sm:$0xf]  ;;  %v4011_v20 = vld [vmem:[%s5881_s1 + $0xc] sm:$0xf0]  ;;  %v3240_v22 = vor.u32 %v4014_v14, %v3237_v15 }
  0x18   :  { %490 = vmatpush.bf16.msra.mxu0 %v3244_v4  ;;  %v4009_v21 = vld [vmem:[%s5881_s1 + $0x4] sm:$0xf]  ;;  %v3213_v23 = vld [vmem:[%s5881_s1 + $0x10] sm:$0xf0]  ;;  %v3219_v24 = vld [vmem:[%s5881_s1 + $0x8] sm:$0xf]  ;;  %v3212_v28 = vor.u32 %v4011_v20, %v3211_v19 }
  0x19   :  { %659 = vmatpush.bf16.msra.mxu1 %v3248_v6  ;;  %828 = vmatpush.bf16.msra.mxu2 %v3252_v7  ;;  %v4012_v25 = vld [vmem:[%s5881_s1 + $0x14] sm:$0xf0]  ;;  %v4010_v26 = vld [vmem:[%s5881_s1 + $0xc] sm:$0xf]  ;;  %v3221_v27 = vld [vmem:[%s5881_s1 + $0x18] sm:$0xf0]  ;;  %v3216_v29 = vor.u32 %v4009_v21, %v3213_v23 }
  0x1a   :  { %997 = vmatpush.bf16.msra.mxu3 %v3256_v11  ;;  %v3220_v30 = vor.u32 %v4012_v25, %v3219_v24  ;;  %v3224_v31 = vor.u32 %v4010_v26, %v3221_v27  ;;  %v3977_v32 = vld [vmem:[%s5880_s0] sm:$0xff]  ;;  %v3978_v33 = vld [vmem:[%s5880_s0 + $0x8] sm:$0xff]  ;;  %v3979_v34 = vld [vmem:[%s5880_s0 + $0x10] sm:$0xff]  ;;  %vm1883_vm0 = vcmask 1041409   ;;  %s4229_s11 = smov [#allocation2]   ;;  %s3072_s15 = sshll.u32 %s5887_s7, 4  ;;  %s3073_s15 = int_to_ptr.hbm [resolvable:$true] %s3072_s15 }
  0x1b   :  { %v3980_v35 = vld [vmem:[%s5880_s0 + $0x18] sm:$0xff]  ;;  %v3981_v36 = vld [vmem:[%s5880_s0 + $0x20] sm:$0xff]  ;;  %v3982_v37 = vld [vmem:[%s5880_s0 + $0x28] sm:$0xff]  ;;  %s3070_s12 = sshll.u32 %s4229_s11, 4  ;;  %s3071_s12 = int_to_ptr.vmem [resolvable:$true] %s3070_s12 }
  0x1c   :  { %491 = vmatpush.bf16.msra.mxu0 %v3228_v16  ;;  %v3983_v38 = vld [vmem:[%s5880_s0 + $0x30] sm:$0xff]  ;;  %v3984_v39 = vld [vmem:[%s5880_s0 + $0x38] sm:$0xff]  ;;  %v3985_v40 = vld [vmem:[%s5880_s0 + $0x40] sm:$0xff] }
  0x1d   :  { %660 = vmatpush.bf16.msra.mxu1 %v3232_v17  ;;  %829 = vmatpush.bf16.msra.mxu2 %v3236_v18  ;;  %v123_v41 = vld [vmem:[%s5882_s2] sm:$0xf]  ;;  %v3986_v61 = vld [vmem:[%s5880_s0 + $0x48] sm:$0xff]  ;;  %v4135_v63 = vld [vmem:[%s5883_s3 + $0x2ec] sm:$0xf0] }
  0x1e   :  { %998 = vmatpush.bf16.msra.mxu3 %v3240_v22  ;;  %v4492_v43 = vperm.slane %v123_v41, 0  ;;  %v4494_v45 = vperm.slane %v123_v41, 1  ;;  %v4499_v55 = vperm.slane %v123_v41, 2  ;;  %v4502_v57 = vperm.slane %v123_v41, 3  ;;  %v3707_v62 = vld [vmem:[%s5883_s3 + $0x2e0] sm:$0xf] }
  0x1f   :  { %v3708_v2 = vor.u32 %v4135_v63, %v3707_v62  ;;  %v3451_v3 = vld [vmem:[%s5883_s3 + $0xe0] sm:$0xf]  ;;  %v4071_v4 = vld [vmem:[%s5883_s3 + $0xec] sm:$0xf0] }
  0x20   :  { %492 = vmatpush.bf16.msra.mxu0 %v3212_v28  ;;  %v3835_v5 = vld [vmem:[%s5883_s3 + $0x3e0] sm:$0xf]  ;;  %v3452_v8 = vor.u32 %v4071_v4, %v3451_v3  ;;  %v4167_v9 = vld [vmem:[%s5883_s3 + $0x3ec] sm:$0xf0] }
  0x21   :  { %661 = vmatpush.bf16.msra.mxu1 %v3216_v29  ;;  %830 = vmatpush.bf16.msra.mxu2 %v3220_v30  ;;  %v3579_v10 = vld [vmem:[%s5883_s3 + $0x1e0] sm:$0xf]  ;;  %v4103_v11 = vld [vmem:[%s5883_s3 + $0x1ec] sm:$0xf0]  ;;  %v3836_v15 = vor.u32 %v4167_v9, %v3835_v5 }
  0x22   :  { %999 = vmatpush.bf16.msra.mxu3 %v3224_v31  ;;  %v3580_v16 = vor.u32 %v4103_v11, %v3579_v10 }
  0x23   :  { %493 = vmatmul.bf16.vlgmr.msra.gmra.mxu0 %v3977_v32 }
  0x24   :  { %662 = vmatmul.bf16.vlgmr.msra.gmra.mxu1 %v3977_v32  ;;  %831 = vmatmul.bf16.vlgmr.msra.gmra.mxu2 %v3977_v32 }
  0x25   :  { %1000 = vmatmul.bf16.vlgmr.msra.gmra.mxu3 %v3977_v32  ;;  %2562 = vmatpush.bf16.msrb.mxu2 %v3708_v2 }
  0x26   :  { %2536 = vmatpush.bf16.msrb.mxu0 %v3452_v8  ;;  %2575 = vmatpush.bf16.msrb.mxu3 %v3836_v15 }
  0x27   :  { %2549 = vmatpush.bf16.msrb.mxu1 %v3580_v16 }
  0x33   :  { %498 = vmatmul.bf16.gmra.mxu0 %v3978_v33 }
  0x34   :  { %667 = vmatmul.bf16.gmra.mxu1 %v3978_v33  ;;  %836 = vmatmul.bf16.gmra.mxu2 %v3978_v33 }
  0x35   :  { %1005 = vmatmul.bf16.gmra.mxu3 %v3978_v33 }
  0x43   :  { %503 = vmatmul.bf16.gmra.mxu0 %v3979_v34 }
  0x44   :  { %672 = vmatmul.bf16.gmra.mxu1 %v3979_v34  ;;  %841 = vmatmul.bf16.gmra.mxu2 %v3979_v34 }
  0x45   :  { %1010 = vmatmul.bf16.gmra.mxu3 %v3979_v34 }
  0x53   :  { %508 = vmatmul.bf16.gmra.mxu0 %v3980_v35 }
  0x54   :  { %677 = vmatmul.bf16.gmra.mxu1 %v3980_v35  ;;  %846 = vmatmul.bf16.gmra.mxu2 %v3980_v35 }
  0x55   :  { %1015 = vmatmul.bf16.gmra.mxu3 %v3980_v35 }
  0x63   :  { %513 = vmatmul.bf16.gmra.mxu0 %v3981_v36 }
  0x64   :  { %682 = vmatmul.bf16.gmra.mxu1 %v3981_v36  ;;  %851 = vmatmul.bf16.gmra.mxu2 %v3981_v36 }
  0x65   :  { %1020 = vmatmul.bf16.gmra.mxu3 %v3981_v36 }
  0x73   :  { %518 = vmatmul.bf16.gmra.mxu0 %v3982_v37 }
  0x74   :  { %687 = vmatmul.bf16.gmra.mxu1 %v3982_v37  ;;  %856 = vmatmul.bf16.gmra.mxu2 %v3982_v37 }
  0x75   :  { %1025 = vmatmul.bf16.gmra.mxu3 %v3982_v37 }
  0x83   :  { %523 = vmatmul.bf16.gmra.mxu0 %v3983_v38 }
  0x84   :  { %692 = vmatmul.bf16.gmra.mxu1 %v3983_v38  ;;  %861 = vmatmul.bf16.gmra.mxu2 %v3983_v38 }
  0x85   :  { %1030 = vmatmul.bf16.gmra.mxu3 %v3983_v38 }
  0x93   :  { %528 = vmatmul.bf16.gmra.mxu0 %v3984_v39 }
  0x94   :  { %697 = vmatmul.bf16.gmra.mxu1 %v3984_v39  ;;  %866 = vmatmul.bf16.gmra.mxu2 %v3984_v39 }
  0x95   :  { %1035 = vmatmul.bf16.gmra.mxu3 %v3984_v39 }
  0xa0   :  { %v494_v42 = vpop.f32.mrf.mxu0 }
  0xa1   :  { %v663_v44 = vpop.f32.mrf.mxu1  ;;  %v495_v46 = vadd.f32 %v494_v42, %v4492_v43 }
  0xa2   :  { %v664_v47 = vadd.f32 %v663_v44, %v4494_v45 }
  0xa3   :  { %533 = vmatmul.bf16.gmra.mxu0 %v3985_v40  ;;  %v1161_v51 = vmax.f32 %v495_v46, 0.0 }
  0xa4   :  { %702 = vmatmul.bf16.gmra.mxu1 %v3985_v40  ;;  %871 = vmatmul.bf16.gmra.mxu2 %v3985_v40  ;;  %v1162_v54 = vmax.f32 %v664_v47, 0.0 }
  0xa5   :  { %1040 = vmatmul.bf16.gmra.mxu3 %v3985_v40 }
  0xa7   :  { %v832_v48 = vpop.f32.mrf.mxu2 }
  0xa8   :  { %v1001_v49 = vpop.f32.mrf.mxu3  ;;  %v496_v50 = vpop.f32.mrf.mxu0  ;;  %v833_v0 = vadd.f32 %v832_v48, %v4499_v55 }
  0xa9   :  { %v497_v52 = vadd.f32 %v496_v50, %v4492_v43  ;;  %v665_v53 = vpop.f32.mrf.mxu1  ;;  %v1002_v6 = vadd.f32 %v1001_v49, %v4502_v57  ;;  %v3987_v50 = vld [vmem:[%s5880_s0 + $0x50] sm:$0xff] }
  0xaa   :  { %v666_v56 = vadd.f32 %v665_v53, %v4494_v45  ;;  %v1163_v20 = vmax.f32 %v833_v0, 0.0 }
  0xab   :  { %v1165_v58 = vmax.f32 %v497_v52, 0.0  ;;  %v1164_v23 = vmax.f32 %v1002_v6, 0.0 }
  0xac   :  { %v1166_v59 = vmax.f32 %v666_v56, 0.0 }
  0xad   :  { %v1417_v60 = vadd.f32 %v1165_v58, %v1161_v51 }
  0xae   :  { %v1454_v1 = vadd.f32 %v1166_v59, %v1162_v54 }
  0xaf   :  { %v834_v7 = vpop.f32.mrf.mxu2 }
  0xb0   :  { %v835_v12 = vadd.f32 %v834_v7, %v4499_v55  ;;  %v1003_v13 = vpop.f32.mrf.mxu3  ;;  %v499_v14 = vpop.f32.mrf.mxu0 }
  0xb1   :  { %v1004_v17 = vadd.f32 %v1003_v13, %v4502_v57  ;;  %v500_v18 = vadd.f32 %v499_v14, %v4492_v43  ;;  %v668_v19 = vpop.f32.mrf.mxu1 }
  0xb2   :  { %v1167_v21 = vmax.f32 %v835_v12, 0.0  ;;  %v669_v22 = vadd.f32 %v668_v19, %v4494_v45 }
  0xb3   :  { %v1168_v24 = vmax.f32 %v1004_v17, 0.0  ;;  %v1169_v25 = vmax.f32 %v500_v18, 0.0  ;;  %538 = vmatmul.bf16.gmra.mxu0 %v3986_v61 }
  0xb4   :  { %v1491_v26 = vadd.f32 %v1167_v21, %v1163_v20  ;;  %v1170_v27 = vmax.f32 %v669_v22, 0.0  ;;  %707 = vmatmul.bf16.gmra.mxu1 %v3986_v61  ;;  %876 = vmatmul.bf16.gmra.mxu2 %v3986_v61  ;;  %v3988_v21 = vld [vmem:[%s5880_s0 + $0x58] sm:$0xff] }
  0xb5   :  { %v1528_v28 = vadd.f32 %v1168_v24, %v1164_v23  ;;  %v1418_v29 = vadd.f32 %v1417_v60, %v1169_v25  ;;  %1045 = vmatmul.bf16.gmra.mxu3 %v3986_v61 }
  0xb6   :  { %v1455_v30 = vadd.f32 %v1454_v1, %v1170_v27 }
  0xb7   :  { %v837_v31 = vpop.f32.mrf.mxu2 }
  0xb8   :  { %v838_v32 = vadd.f32 %v837_v31, %v4499_v55  ;;  %v1006_v33 = vpop.f32.mrf.mxu3  ;;  %v501_v34 = vpop.f32.mrf.mxu0 }
  0xb9   :  { %v1007_v35 = vadd.f32 %v1006_v33, %v4502_v57  ;;  %v502_v36 = vadd.f32 %v501_v34, %v4492_v43  ;;  %v670_v37 = vpop.f32.mrf.mxu1 }
  0xba   :  { %v1171_v38 = vmax.f32 %v838_v32, 0.0  ;;  %v671_v39 = vadd.f32 %v670_v37, %v4494_v45 }
  0xbb   :  { %v1172_v40 = vmax.f32 %v1007_v35, 0.0  ;;  %v1173_v41 = vmax.f32 %v502_v36, 0.0 }
  0xbc   :  { %v1492_v42 = vadd.f32 %v1491_v26, %v1171_v38  ;;  %v1174_v44 = vmax.f32 %v671_v39, 0.0 }
  0xbd   :  { %v1529_v46 = vadd.f32 %v1528_v28, %v1172_v40  ;;  %v1419_v47 = vadd.f32 %v1418_v29, %v1173_v41 }
  0xbe   :  { %v1456_v48 = vadd.f32 %v1455_v30, %v1174_v44 }
  0xbf   :  { %v839_v49 = vpop.f32.mrf.mxu2 }
  0xc0   :  { %v840_v51 = vadd.f32 %v839_v49, %v4499_v55  ;;  %v1008_v52 = vpop.f32.mrf.mxu3  ;;  %v504_v53 = vpop.f32.mrf.mxu0 }
  0xc1   :  { %v1009_v54 = vadd.f32 %v1008_v52, %v4502_v57  ;;  %v505_v56 = vadd.f32 %v504_v53, %v4492_v43  ;;  %v673_v58 = vpop.f32.mrf.mxu1 }
  0xc2   :  { %v1175_v59 = vmax.f32 %v840_v51, 0.0  ;;  %v674_v60 = vadd.f32 %v673_v58, %v4494_v45  ;;  %v3989_v58 = vld [vmem:[%s5880_s0 + $0x60] sm:$0xff] }
  0xc3   :  { %v1176_v61 = vmax.f32 %v1009_v54, 0.0  ;;  %v1177_v62 = vmax.f32 %v505_v56, 0.0  ;;  %543 = vmatmul.bf16.gmra.mxu0 %v3987_v50 }
  0xc4   :  { %v1493_v63 = vadd.f32 %v1492_v42, %v1175_v59  ;;  %v1178_v0 = vmax.f32 %v674_v60, 0.0  ;;  %712 = vmatmul.bf16.gmra.mxu1 %v3987_v50  ;;  %881 = vmatmul.bf16.gmra.mxu2 %v3987_v50 }
  0xc5   :  { %v1530_v1 = vadd.f32 %v1529_v46, %v1176_v61  ;;  %v1420_v2 = vadd.f32 %v1419_v47, %v1177_v62  ;;  %1050 = vmatmul.bf16.gmra.mxu3 %v3987_v50 }
  0xc6   :  { %v1457_v3 = vadd.f32 %v1456_v48, %v1178_v0 }
  0xc7   :  { %v842_v4 = vpop.f32.mrf.mxu2 }
  0xc8   :  { %v843_v5 = vadd.f32 %v842_v4, %v4499_v55  ;;  %v1011_v6 = vpop.f32.mrf.mxu3  ;;  %v506_v7 = vpop.f32.mrf.mxu0 }
  0xc9   :  { %v1012_v8 = vadd.f32 %v1011_v6, %v4502_v57  ;;  %v507_v9 = vadd.f32 %v506_v7, %v4492_v43  ;;  %v675_v10 = vpop.f32.mrf.mxu1 }
  0xca   :  { %v1179_v11 = vmax.f32 %v843_v5, 0.0  ;;  %v676_v12 = vadd.f32 %v675_v10, %v4494_v45 }
  0xcb   :  { %v1180_v13 = vmax.f32 %v1012_v8, 0.0  ;;  %v1181_v14 = vmax.f32 %v507_v9, 0.0 }
  0xcc   :  { %v1494_v15 = vadd.f32 %v1493_v63, %v1179_v11  ;;  %v1182_v16 = vmax.f32 %v676_v12, 0.0 }
  0xcd   :  { %v1531_v17 = vadd.f32 %v1530_v1, %v1180_v13  ;;  %v1421_v18 = vadd.f32 %v1420_v2, %v1181_v14 }
  0xce   :  { %v1458_v19 = vadd.f32 %v1457_v3, %v1182_v16 }
  0xcf   :  { %v844_v20 = vpop.f32.mrf.mxu2 }
  0xd0   :  { %v845_v22 = vadd.f32 %v844_v20, %v4499_v55  ;;  %v1013_v23 = vpop.f32.mrf.mxu3  ;;  %v509_v24 = vpop.f32.mrf.mxu0 }
  0xd1   :  { %v1014_v25 = vadd.f32 %v1013_v23, %v4502_v57  ;;  %v510_v26 = vadd.f32 %v509_v24, %v4492_v43  ;;  %v678_v27 = vpop.f32.mrf.mxu1 }
  0xd2   :  { %v1183_v28 = vmax.f32 %v845_v22, 0.0  ;;  %v679_v29 = vadd.f32 %v678_v27, %v4494_v45  ;;  %v4131_v27 = vld [vmem:[%s5883_s3 + $0x2cc] sm:$0xf0] }
  0xd3   :  { %v1184_v30 = vmax.f32 %v1014_v25, 0.0  ;;  %v1185_v31 = vmax.f32 %v510_v26, 0.0  ;;  %548 = vmatmul.bf16.gmra.mxu0 %v3988_v21  ;;  %v3990_v25 = vld [vmem:[%s5880_s0 + $0x68] sm:$0xff]  ;;  %v3691_v26 = vld [vmem:[%s5883_s3 + $0x2c0] sm:$0xf] }
  0xd4   :  { %v1495_v32 = vadd.f32 %v1494_v15, %v1183_v28  ;;  %v1186_v33 = vmax.f32 %v679_v29, 0.0  ;;  %717 = vmatmul.bf16.gmra.mxu1 %v3988_v21  ;;  %886 = vmatmul.bf16.gmra.mxu2 %v3988_v21  ;;  %v3692_v29 = vor.u32 %v4131_v27, %v3691_v26 }
  0xd5   :  { %v1532_v34 = vadd.f32 %v1531_v17, %v1184_v30  ;;  %v1422_v35 = vadd.f32 %v1421_v18, %v1185_v31  ;;  %1055 = vmatmul.bf16.gmra.mxu3 %v3988_v21  ;;  %v3435_v30 = vld [vmem:[%s5883_s3 + $0xc0] sm:$0xf]  ;;  %v4067_v31 = vld [vmem:[%s5883_s3 + $0xcc] sm:$0xf0] }
  0xd6   :  { %v1459_v36 = vadd.f32 %v1458_v19, %v1186_v33  ;;  %2563 = vmatpush.bf16.msrb.mxu2 %v3692_v29 }
  0xd7   :  { %v847_v37 = vpop.f32.mrf.mxu2 }
  0xd8   :  { %v848_v38 = vadd.f32 %v847_v37, %v4499_v55  ;;  %v1016_v39 = vpop.f32.mrf.mxu3  ;;  %v511_v40 = vpop.f32.mrf.mxu0  ;;  %v4099_v37 = vld [vmem:[%s5883_s3 + $0x1cc] sm:$0xf0] }
  0xd9   :  { %v1017_v41 = vadd.f32 %v1016_v39, %v4502_v57  ;;  %v512_v42 = vadd.f32 %v511_v40, %v4492_v43  ;;  %v680_v44 = vpop.f32.mrf.mxu1 }
  0xda   :  { %v1187_v46 = vmax.f32 %v848_v38, 0.0  ;;  %v681_v47 = vadd.f32 %v680_v44, %v4494_v45 }
  0xdb   :  { %v1188_v48 = vmax.f32 %v1017_v41, 0.0  ;;  %v1189_v49 = vmax.f32 %v512_v42, 0.0 }
  0xdc   :  { %v1496_v50 = vadd.f32 %v1495_v32, %v1187_v46  ;;  %v1190_v51 = vmax.f32 %v681_v47, 0.0  ;;  %v3819_v32 = vld [vmem:[%s5883_s3 + $0x3c0] sm:$0xf] }
  0xdd   :  { %v1533_v52 = vadd.f32 %v1532_v34, %v1188_v48  ;;  %v1423_v53 = vadd.f32 %v1422_v35, %v1189_v49  ;;  %v3436_v34 = vor.u32 %v4067_v31, %v3435_v30  ;;  %v4163_v35 = vld [vmem:[%s5883_s3 + $0x3cc] sm:$0xf0] }
  0xde   :  { %v1460_v54 = vadd.f32 %v1459_v36, %v1190_v51  ;;  %v3563_v36 = vld [vmem:[%s5883_s3 + $0x1c0] sm:$0xf]  ;;  %v3820_v41 = vor.u32 %v4163_v35, %v3819_v32 }
  0xdf   :  { %v849_v56 = vpop.f32.mrf.mxu2  ;;  %v3564_v42 = vor.u32 %v4099_v37, %v3563_v36  ;;  %2537 = vmatpush.bf16.msrb.mxu0 %v3436_v34 }
  0xe0   :  { %v850_v59 = vadd.f32 %v849_v56, %v4499_v55  ;;  %v1018_v60 = vpop.f32.mrf.mxu3  ;;  %v514_v61 = vpop.f32.mrf.mxu0  ;;  %2576 = vmatpush.bf16.msrb.mxu3 %v3820_v41 }
  0xe1   :  { %v1019_v62 = vadd.f32 %v1018_v60, %v4502_v57  ;;  %v515_v63 = vadd.f32 %v514_v61, %v4492_v43  ;;  %v683_v0 = vpop.f32.mrf.mxu1  ;;  %2550 = vmatpush.bf16.msrb.mxu1 %v3564_v42 }
  0xe2   :  { %v1191_v1 = vmax.f32 %v850_v59, 0.0  ;;  %v684_v2 = vadd.f32 %v683_v0, %v4494_v45 }
  0xe3   :  { %v1192_v3 = vmax.f32 %v1019_v62, 0.0  ;;  %v1193_v4 = vmax.f32 %v515_v63, 0.0  ;;  %553 = vmatmul.bf16.gmra.mxu0 %v3989_v58 }
  0xe4   :  { %v1497_v5 = vadd.f32 %v1496_v50, %v1191_v1  ;;  %v1194_v6 = vmax.f32 %v684_v2, 0.0  ;;  %722 = vmatmul.bf16.gmra.mxu1 %v3989_v58  ;;  %891 = vmatmul.bf16.gmra.mxu2 %v3989_v58 }
  0xe5   :  { %v1534_v7 = vadd.f32 %v1533_v52, %v1192_v3  ;;  %v1424_v8 = vadd.f32 %v1423_v53, %v1193_v4  ;;  %1060 = vmatmul.bf16.gmra.mxu3 %v3989_v58 }
  0xe6   :  { %v1461_v9 = vadd.f32 %v1460_v54, %v1194_v6 }
  0xe7   :  { %v852_v10 = vpop.f32.mrf.mxu2 }
  0xe8   :  { %v853_v11 = vadd.f32 %v852_v10, %v4499_v55  ;;  %v1021_v12 = vpop.f32.mrf.mxu3  ;;  %v516_v13 = vpop.f32.mrf.mxu0 }
  0xe9   :  { %v1022_v14 = vadd.f32 %v1021_v12, %v4502_v57  ;;  %v517_v15 = vadd.f32 %v516_v13, %v4492_v43  ;;  %v685_v16 = vpop.f32.mrf.mxu1  ;;  %v3991_v12 = vld [vmem:[%s5880_s0 + $0x70] sm:$0xff] }
  0xea   :  { %v1195_v17 = vmax.f32 %v853_v11, 0.0  ;;  %v686_v18 = vadd.f32 %v685_v16, %v4494_v45 }
  0xeb   :  { %v1196_v19 = vmax.f32 %v1022_v14, 0.0  ;;  %v1197_v20 = vmax.f32 %v517_v15, 0.0 }
  0xec   :  { %v1498_v21 = vadd.f32 %v1497_v5, %v1195_v17  ;;  %v1198_v22 = vmax.f32 %v686_v18, 0.0 }
  0xed   :  { %v1535_v23 = vadd.f32 %v1534_v7, %v1196_v19  ;;  %v1425_v24 = vadd.f32 %v1424_v8, %v1197_v20 }
  0xee   :  { %v1462_v28 = vadd.f32 %v1461_v9, %v1198_v22 }
  0xef   :  { %v854_v33 = vpop.f32.mrf.mxu2 }
  0xf0   :  { %v855_v38 = vadd.f32 %v854_v33, %v4499_v55  ;;  %v1023_v39 = vpop.f32.mrf.mxu3  ;;  %v519_v40 = vpop.f32.mrf.mxu0 }
  0xf1   :  { %v1024_v44 = vadd.f32 %v1023_v39, %v4502_v57  ;;  %v520_v46 = vadd.f32 %v519_v40, %v4492_v43  ;;  %v688_v47 = vpop.f32.mrf.mxu1 }
  0xf2   :  { %v1199_v48 = vmax.f32 %v855_v38, 0.0  ;;  %v689_v49 = vadd.f32 %v688_v47, %v4494_v45  ;;  %v3992_v47 = vld [vmem:[%s5880_s0 + $0x78] sm:$0xff] }
  0xf3   :  { %v1200_v50 = vmax.f32 %v1024_v44, 0.0  ;;  %v1201_v51 = vmax.f32 %v520_v46, 0.0  ;;  %558 = vmatmul.bf16.gmra.mxu0 %v3990_v25 }
  0xf4   :  { %v1499_v52 = vadd.f32 %v1498_v21, %v1199_v48  ;;  %v1202_v53 = vmax.f32 %v689_v49, 0.0  ;;  %727 = vmatmul.bf16.gmra.mxu1 %v3990_v25  ;;  %896 = vmatmul.bf16.gmra.mxu2 %v3990_v25 }
  0xf5   :  { %v1536_v54 = vadd.f32 %v1535_v23, %v1200_v50  ;;  %v1426_v56 = vadd.f32 %v1425_v24, %v1201_v51  ;;  %1065 = vmatmul.bf16.gmra.mxu3 %v3990_v25 }
  0xf6   :  { %v1463_v58 = vadd.f32 %v1462_v28, %v1202_v53 }
  0xf7   :  { %v857_v59 = vpop.f32.mrf.mxu2 }
  0xf8   :  { %v858_v60 = vadd.f32 %v857_v59, %v4499_v55  ;;  %v1026_v61 = vpop.f32.mrf.mxu3  ;;  %v521_v62 = vpop.f32.mrf.mxu0 }
  0xf9   :  { %v1027_v63 = vadd.f32 %v1026_v61, %v4502_v57  ;;  %v522_v0 = vadd.f32 %v521_v62, %v4492_v43  ;;  %v690_v1 = vpop.f32.mrf.mxu1 }
  0xfa   :  { %v1203_v2 = vmax.f32 %v858_v60, 0.0  ;;  %v691_v3 = vadd.f32 %v690_v1, %v4494_v45 }
  0xfb   :  { %v1204_v4 = vmax.f32 %v1027_v63, 0.0  ;;  %v1205_v5 = vmax.f32 %v522_v0, 0.0 }
  0xfc   :  { %v1500_v6 = vadd.f32 %v1499_v52, %v1203_v2  ;;  %v1206_v7 = vmax.f32 %v691_v3, 0.0 }
  0xfd   :  { %v1537_v8 = vadd.f32 %v1536_v54, %v1204_v4  ;;  %v1427_v9 = vadd.f32 %v1426_v56, %v1205_v5 }
  0xfe   :  { %v1464_v10 = vadd.f32 %v1463_v58, %v1206_v7 }
  0xff   :  { %v859_v11 = vpop.f32.mrf.mxu2 }
 0x100   :  { %v860_v13 = vadd.f32 %v859_v11, %v4499_v55  ;;  %v1028_v14 = vpop.f32.mrf.mxu3  ;;  %v524_v15 = vpop.f32.mrf.mxu0 }
 0x101   :  { %v1029_v16 = vadd.f32 %v1028_v14, %v4502_v57  ;;  %v525_v17 = vadd.f32 %v524_v15, %v4492_v43  ;;  %v693_v18 = vpop.f32.mrf.mxu1 }
 0x102   :  { %v1207_v19 = vmax.f32 %v860_v13, 0.0  ;;  %v694_v20 = vadd.f32 %v693_v18, %v4494_v45  ;;  %v3993_v18 = vld [vmem:[%s5880_s0 + $0x80] sm:$0xff] }
 0x103   :  { %v1208_v21 = vmax.f32 %v1029_v16, 0.0  ;;  %v1209_v22 = vmax.f32 %v525_v17, 0.0  ;;  %563 = vmatmul.bf16.gmra.mxu0 %v3991_v12 }
 0x104   :  { %v1501_v23 = vadd.f32 %v1500_v6, %v1207_v19  ;;  %v1210_v24 = vmax.f32 %v694_v20, 0.0  ;;  %732 = vmatmul.bf16.gmra.mxu1 %v3991_v12  ;;  %901 = vmatmul.bf16.gmra.mxu2 %v3991_v12 }
 0x105   :  { %v1538_v25 = vadd.f32 %v1537_v8, %v1208_v21  ;;  %v1428_v26 = vadd.f32 %v1427_v9, %v1209_v22  ;;  %1070 = vmatmul.bf16.gmra.mxu3 %v3991_v12 }
 0x106   :  { %v1465_v27 = vadd.f32 %v1464_v10, %v1210_v24 }
 0x107   :  { %v862_v28 = vpop.f32.mrf.mxu2 }
 0x108   :  { %v863_v29 = vadd.f32 %v862_v28, %v4499_v55  ;;  %v1031_v30 = vpop.f32.mrf.mxu3  ;;  %v526_v31 = vpop.f32.mrf.mxu0 }
 0x109   :  { %v1032_v32 = vadd.f32 %v1031_v30, %v4502_v57  ;;  %v527_v33 = vadd.f32 %v526_v31, %v4492_v43  ;;  %v695_v34 = vpop.f32.mrf.mxu1 }
 0x10a   :  { %v1211_v35 = vmax.f32 %v863_v29, 0.0  ;;  %v696_v36 = vadd.f32 %v695_v34, %v4494_v45 }
 0x10b   :  { %v1212_v37 = vmax.f32 %v1032_v32, 0.0  ;;  %v1213_v38 = vmax.f32 %v527_v33, 0.0 }
 0x10c   :  { %v1502_v39 = vadd.f32 %v1501_v23, %v1211_v35  ;;  %v1214_v40 = vmax.f32 %v696_v36, 0.0 }
 0x10d   :  { %v1539_v41 = vadd.f32 %v1538_v25, %v1212_v37  ;;  %v1429_v42 = vadd.f32 %v1428_v26, %v1213_v38 }
 0x10e   :  { %v1466_v44 = vadd.f32 %v1465_v27, %v1214_v40 }
 0x10f   :  { %v864_v46 = vpop.f32.mrf.mxu2 }
 0x110   :  { %v865_v48 = vadd.f32 %v864_v46, %v4499_v55  ;;  %v1033_v49 = vpop.f32.mrf.mxu3  ;;  %v529_v50 = vpop.f32.mrf.mxu0 }
 0x111   :  { %v1034_v51 = vadd.f32 %v1033_v49, %v4502_v57  ;;  %v530_v52 = vadd.f32 %v529_v50, %v4492_v43  ;;  %v698_v53 = vpop.f32.mrf.mxu1 }
 0x112   :  { %v1215_v54 = vmax.f32 %v865_v48, 0.0  ;;  %v699_v56 = vadd.f32 %v698_v53, %v4494_v45  ;;  %v4127_v53 = vld [vmem:[%s5883_s3 + $0x2ac] sm:$0xf0] }
 0x113   :  { %v1216_v58 = vmax.f32 %v1034_v51, 0.0  ;;  %v1217_v59 = vmax.f32 %v530_v52, 0.0  ;;  %568 = vmatmul.bf16.gmra.mxu0 %v3992_v47  ;;  %v3994_v51 = vld [vmem:[%s5880_s0 + $0x88] sm:$0xff]  ;;  %v3675_v52 = vld [vmem:[%s5883_s3 + $0x2a0] sm:$0xf] }
 0x114   :  { %v1503_v60 = vadd.f32 %v1502_v39, %v1215_v54  ;;  %v1218_v61 = vmax.f32 %v699_v56, 0.0  ;;  %737 = vmatmul.bf16.gmra.mxu1 %v3992_v47  ;;  %906 = vmatmul.bf16.gmra.mxu2 %v3992_v47  ;;  %v3676_v56 = vor.u32 %v4127_v53, %v3675_v52 }
 0x115   :  { %v1540_v62 = vadd.f32 %v1539_v41, %v1216_v58  ;;  %v1430_v63 = vadd.f32 %v1429_v42, %v1217_v59  ;;  %1075 = vmatmul.bf16.gmra.mxu3 %v3992_v47  ;;  %v3419_v58 = vld [vmem:[%s5883_s3 + $0xa0] sm:$0xf]  ;;  %v4063_v59 = vld [vmem:[%s5883_s3 + $0xac] sm:$0xf0] }
 0x116   :  { %v1467_v0 = vadd.f32 %v1466_v44, %v1218_v61  ;;  %2564 = vmatpush.bf16.msrb.mxu2 %v3676_v56 }
 0x117   :  { %v867_v1 = vpop.f32.mrf.mxu2 }
 0x118   :  { %v868_v2 = vadd.f32 %v867_v1, %v4499_v55  ;;  %v1036_v3 = vpop.f32.mrf.mxu3  ;;  %v531_v4 = vpop.f32.mrf.mxu0  ;;  %v4095_v1 = vld [vmem:[%s5883_s3 + $0x1ac] sm:$0xf0] }
 0x119   :  { %v1037_v5 = vadd.f32 %v1036_v3, %v4502_v57  ;;  %v532_v6 = vadd.f32 %v531_v4, %v4492_v43  ;;  %v700_v7 = vpop.f32.mrf.mxu1 }
 0x11a   :  { %v1219_v8 = vmax.f32 %v868_v2, 0.0  ;;  %v701_v9 = vadd.f32 %v700_v7, %v4494_v45 }
 0x11b   :  { %v1220_v10 = vmax.f32 %v1037_v5, 0.0  ;;  %v1221_v11 = vmax.f32 %v532_v6, 0.0 }
 0x11c   :  { %v1504_v12 = vadd.f32 %v1503_v60, %v1219_v8  ;;  %v1222_v13 = vmax.f32 %v701_v9, 0.0  ;;  %v3803_v60 = vld [vmem:[%s5883_s3 + $0x3a0] sm:$0xf] }
 0x11d   :  { %v1541_v14 = vadd.f32 %v1540_v62, %v1220_v10  ;;  %v1431_v15 = vadd.f32 %v1430_v63, %v1221_v11  ;;  %v3420_v62 = vor.u32 %v4063_v59, %v3419_v58  ;;  %v4159_v63 = vld [vmem:[%s5883_s3 + $0x3ac] sm:$0xf0] }
 0x11e   :  { %v1468_v16 = vadd.f32 %v1467_v0, %v1222_v13  ;;  %v3547_v0 = vld [vmem:[%s5883_s3 + $0x1a0] sm:$0xf]  ;;  %v3804_v5 = vor.u32 %v4159_v63, %v3803_v60 }
 0x11f   :  { %v869_v17 = vpop.f32.mrf.mxu2  ;;  %v3548_v6 = vor.u32 %v4095_v1, %v3547_v0  ;;  %2538 = vmatpush.bf16.msrb.mxu0 %v3420_v62 }
 0x120   :  { %v870_v19 = vadd.f32 %v869_v17, %v4499_v55  ;;  %v1038_v20 = vpop.f32.mrf.mxu3  ;;  %v534_v21 = vpop.f32.mrf.mxu0  ;;  %2577 = vmatpush.bf16.msrb.mxu3 %v3804_v5 }
 0x121   :  { %v1039_v22 = vadd.f32 %v1038_v20, %v4502_v57  ;;  %v535_v23 = vadd.f32 %v534_v21, %v4492_v43  ;;  %v703_v24 = vpop.f32.mrf.mxu1  ;;  %2551 = vmatpush.bf16.msrb.mxu1 %v3548_v6 }
 0x122   :  { %v1223_v25 = vmax.f32 %v870_v19, 0.0  ;;  %v704_v26 = vadd.f32 %v703_v24, %v4494_v45 }
 0x123   :  { %v1224_v27 = vmax.f32 %v1039_v22, 0.0  ;;  %v1225_v28 = vmax.f32 %v535_v23, 0.0  ;;  %573 = vmatmul.bf16.gmra.mxu0 %v3993_v18 }
 0x124   :  { %v1505_v29 = vadd.f32 %v1504_v12, %v1223_v25  ;;  %v1226_v30 = vmax.f32 %v704_v26, 0.0  ;;  %742 = vmatmul.bf16.gmra.mxu1 %v3993_v18  ;;  %911 = vmatmul.bf16.gmra.mxu2 %v3993_v18 }
 0x125   :  { %v1542_v31 = vadd.f32 %v1541_v14, %v1224_v27  ;;  %v1432_v32 = vadd.f32 %v1431_v15, %v1225_v28  ;;  %1080 = vmatmul.bf16.gmra.mxu3 %v3993_v18 }
 0x126   :  { %v1469_v33 = vadd.f32 %v1468_v16, %v1226_v30 }
 0x127   :  { %v872_v34 = vpop.f32.mrf.mxu2 }
 0x128   :  { %v873_v35 = vadd.f32 %v872_v34, %v4499_v55  ;;  %v1041_v36 = vpop.f32.mrf.mxu3  ;;  %v536_v37 = vpop.f32.mrf.mxu0 }
 0x129   :  { %v1042_v38 = vadd.f32 %v1041_v36, %v4502_v57  ;;  %v537_v39 = vadd.f32 %v536_v37, %v4492_v43  ;;  %v705_v40 = vpop.f32.mrf.mxu1  ;;  %v3995_v36 = vld [vmem:[%s5880_s0 + $0x90] sm:$0xff] }
 0x12a   :  { %v1227_v41 = vmax.f32 %v873_v35, 0.0  ;;  %v706_v42 = vadd.f32 %v705_v40, %v4494_v45 }
 0x12b   :  { %v1228_v44 = vmax.f32 %v1042_v38, 0.0  ;;  %v1229_v46 = vmax.f32 %v537_v39, 0.0 }
 0x12c   :  { %v1506_v47 = vadd.f32 %v1505_v29, %v1227_v41  ;;  %v1230_v48 = vmax.f32 %v706_v42, 0.0 }
 0x12d   :  { %v1543_v49 = vadd.f32 %v1542_v31, %v1228_v44  ;;  %v1433_v50 = vadd.f32 %v1432_v32, %v1229_v46 }
 0x12e   :  { %v1470_v54 = vadd.f32 %v1469_v33, %v1230_v48 }
 0x12f   :  { %v874_v61 = vpop.f32.mrf.mxu2 }
 0x130   :  { %v875_v2 = vadd.f32 %v874_v61, %v4499_v55  ;;  %v1043_v3 = vpop.f32.mrf.mxu3  ;;  %v539_v4 = vpop.f32.mrf.mxu0 }
 0x131   :  { %v1044_v7 = vadd.f32 %v1043_v3, %v4502_v57  ;;  %v540_v8 = vadd.f32 %v539_v4, %v4492_v43  ;;  %v708_v9 = vpop.f32.mrf.mxu1 }
 0x132   :  { %v1231_v10 = vmax.f32 %v875_v2, 0.0  ;;  %v709_v11 = vadd.f32 %v708_v9, %v4494_v45  ;;  %v3996_v9 = vld [vmem:[%s5880_s0 + $0x98] sm:$0xff] }
 0x133   :  { %v1232_v12 = vmax.f32 %v1044_v7, 0.0  ;;  %v1233_v13 = vmax.f32 %v540_v8, 0.0  ;;  %578 = vmatmul.bf16.gmra.mxu0 %v3994_v51 }
 0x134   :  { %v1507_v14 = vadd.f32 %v1506_v47, %v1231_v10  ;;  %v1234_v15 = vmax.f32 %v709_v11, 0.0  ;;  %747 = vmatmul.bf16.gmra.mxu1 %v3994_v51  ;;  %916 = vmatmul.bf16.gmra.mxu2 %v3994_v51 }
 0x135   :  { %v1544_v16 = vadd.f32 %v1543_v49, %v1232_v12  ;;  %v1434_v17 = vadd.f32 %v1433_v50, %v1233_v13  ;;  %1085 = vmatmul.bf16.gmra.mxu3 %v3994_v51 }
 0x136   :  { %v1471_v18 = vadd.f32 %v1470_v54, %v1234_v15 }
 0x137   :  { %v877_v19 = vpop.f32.mrf.mxu2 }
 0x138   :  { %v878_v20 = vadd.f32 %v877_v19, %v4499_v55  ;;  %v1046_v21 = vpop.f32.mrf.mxu3  ;;  %v541_v22 = vpop.f32.mrf.mxu0 }
 0x139   :  { %v1047_v23 = vadd.f32 %v1046_v21, %v4502_v57  ;;  %v542_v24 = vadd.f32 %v541_v22, %v4492_v43  ;;  %v710_v25 = vpop.f32.mrf.mxu1 }
 0x13a   :  { %v1235_v26 = vmax.f32 %v878_v20, 0.0  ;;  %v711_v27 = vadd.f32 %v710_v25, %v4494_v45 }
 0x13b   :  { %v1236_v28 = vmax.f32 %v1047_v23, 0.0  ;;  %v1237_v29 = vmax.f32 %v542_v24, 0.0 }
 0x13c   :  { %v1508_v30 = vadd.f32 %v1507_v14, %v1235_v26  ;;  %v1238_v31 = vmax.f32 %v711_v27, 0.0 }
 0x13d   :  { %v1545_v32 = vadd.f32 %v1544_v16, %v1236_v28  ;;  %v1435_v33 = vadd.f32 %v1434_v17, %v1237_v29 }
 0x13e   :  { %v1472_v34 = vadd.f32 %v1471_v18, %v1238_v31 }
 0x13f   :  { %v879_v35 = vpop.f32.mrf.mxu2 }
 0x140   :  { %v880_v37 = vadd.f32 %v879_v35, %v4499_v55  ;;  %v1048_v38 = vpop.f32.mrf.mxu3  ;;  %v544_v39 = vpop.f32.mrf.mxu0 }
 0x141   :  { %v1049_v40 = vadd.f32 %v1048_v38, %v4502_v57  ;;  %v545_v41 = vadd.f32 %v544_v39, %v4492_v43  ;;  %v713_v42 = vpop.f32.mrf.mxu1 }
 0x142   :  { %v1239_v44 = vmax.f32 %v880_v37, 0.0  ;;  %v714_v46 = vadd.f32 %v713_v42, %v4494_v45  ;;  %v3997_v42 = vld [vmem:[%s5880_s0 + $0xa0] sm:$0xff] }
 0x143   :  { %v1240_v47 = vmax.f32 %v1049_v40, 0.0  ;;  %v1241_v48 = vmax.f32 %v545_v41, 0.0  ;;  %583 = vmatmul.bf16.gmra.mxu0 %v3995_v36 }
 0x144   :  { %v1509_v49 = vadd.f32 %v1508_v30, %v1239_v44  ;;  %v1242_v50 = vmax.f32 %v714_v46, 0.0  ;;  %752 = vmatmul.bf16.gmra.mxu1 %v3995_v36  ;;  %921 = vmatmul.bf16.gmra.mxu2 %v3995_v36 }
 0x145   :  { %v1546_v51 = vadd.f32 %v1545_v32, %v1240_v47  ;;  %v1436_v52 = vadd.f32 %v1435_v33, %v1241_v48  ;;  %1090 = vmatmul.bf16.gmra.mxu3 %v3995_v36 }
 0x146   :  { %v1473_v53 = vadd.f32 %v1472_v34, %v1242_v50 }
 0x147   :  { %v882_v54 = vpop.f32.mrf.mxu2 }
 0x148   :  { %v883_v56 = vadd.f32 %v882_v54, %v4499_v55  ;;  %v1051_v58 = vpop.f32.mrf.mxu3  ;;  %v546_v59 = vpop.f32.mrf.mxu0 }
 0x149   :  { %v1052_v60 = vadd.f32 %v1051_v58, %v4502_v57  ;;  %v547_v61 = vadd.f32 %v546_v59, %v4492_v43  ;;  %v715_v62 = vpop.f32.mrf.mxu1 }
 0x14a   :  { %v1243_v63 = vmax.f32 %v883_v56, 0.0  ;;  %v716_v0 = vadd.f32 %v715_v62, %v4494_v45 }
 0x14b   :  { %v1244_v1 = vmax.f32 %v1052_v60, 0.0  ;;  %v1245_v2 = vmax.f32 %v547_v61, 0.0 }
 0x14c   :  { %v1510_v3 = vadd.f32 %v1509_v49, %v1243_v63  ;;  %v1246_v4 = vmax.f32 %v716_v0, 0.0 }
 0x14d   :  { %v1547_v5 = vadd.f32 %v1546_v51, %v1244_v1  ;;  %v1437_v6 = vadd.f32 %v1436_v52, %v1245_v2 }
 0x14e   :  { %v1474_v7 = vadd.f32 %v1473_v53, %v1246_v4 }
 0x14f   :  { %v884_v8 = vpop.f32.mrf.mxu2 }
 0x150   :  { %v885_v10 = vadd.f32 %v884_v8, %v4499_v55  ;;  %v1053_v11 = vpop.f32.mrf.mxu3  ;;  %v549_v12 = vpop.f32.mrf.mxu0 }
 0x151   :  { %v1054_v13 = vadd.f32 %v1053_v11, %v4502_v57  ;;  %v550_v14 = vadd.f32 %v549_v12, %v4492_v43  ;;  %v718_v15 = vpop.f32.mrf.mxu1 }
 0x152   :  { %v1247_v16 = vmax.f32 %v885_v10, 0.0  ;;  %v719_v17 = vadd.f32 %v718_v15, %v4494_v45  ;;  %v4123_v15 = vld [vmem:[%s5883_s3 + $0x28c] sm:$0xf0] }
 0x153   :  { %v1248_v18 = vmax.f32 %v1054_v13, 0.0  ;;  %v1249_v19 = vmax.f32 %v550_v14, 0.0  ;;  %588 = vmatmul.bf16.gmra.mxu0 %v3996_v9  ;;  %v3998_v13 = vld [vmem:[%s5880_s0 + $0xa8] sm:$0xff]  ;;  %v3659_v14 = vld [vmem:[%s5883_s3 + $0x280] sm:$0xf] }
 0x154   :  { %v1511_v20 = vadd.f32 %v1510_v3, %v1247_v16  ;;  %v1250_v21 = vmax.f32 %v719_v17, 0.0  ;;  %757 = vmatmul.bf16.gmra.mxu1 %v3996_v9  ;;  %926 = vmatmul.bf16.gmra.mxu2 %v3996_v9  ;;  %v3660_v17 = vor.u32 %v4123_v15, %v3659_v14 }
 0x155   :  { %v1548_v22 = vadd.f32 %v1547_v5, %v1248_v18  ;;  %v1438_v23 = vadd.f32 %v1437_v6, %v1249_v19  ;;  %1095 = vmatmul.bf16.gmra.mxu3 %v3996_v9  ;;  %v3403_v18 = vld [vmem:[%s5883_s3 + $0x80] sm:$0xf]  ;;  %v4059_v19 = vld [vmem:[%s5883_s3 + $0x8c] sm:$0xf0] }
 0x156   :  { %v1475_v24 = vadd.f32 %v1474_v7, %v1250_v21  ;;  %2565 = vmatpush.bf16.msrb.mxu2 %v3660_v17 }
 0x157   :  { %v887_v25 = vpop.f32.mrf.mxu2 }
 0x158   :  { %v888_v26 = vadd.f32 %v887_v25, %v4499_v55  ;;  %v1056_v27 = vpop.f32.mrf.mxu3  ;;  %v551_v28 = vpop.f32.mrf.mxu0  ;;  %v4091_v25 = vld [vmem:[%s5883_s3 + $0x18c] sm:$0xf0] }
 0x159   :  { %v1057_v29 = vadd.f32 %v1056_v27, %v4502_v57  ;;  %v552_v30 = vadd.f32 %v551_v28, %v4492_v43  ;;  %v720_v31 = vpop.f32.mrf.mxu1 }
 0x15a   :  { %v1251_v32 = vmax.f32 %v888_v26, 0.0  ;;  %v721_v33 = vadd.f32 %v720_v31, %v4494_v45 }
 0x15b   :  { %v1252_v34 = vmax.f32 %v1057_v29, 0.0  ;;  %v1253_v35 = vmax.f32 %v552_v30, 0.0 }
 0x15c   :  { %v1512_v36 = vadd.f32 %v1511_v20, %v1251_v32  ;;  %v1254_v37 = vmax.f32 %v721_v33, 0.0  ;;  %v3787_v20 = vld [vmem:[%s5883_s3 + $0x380] sm:$0xf] }
 0x15d   :  { %v1549_v38 = vadd.f32 %v1548_v22, %v1252_v34  ;;  %v1439_v39 = vadd.f32 %v1438_v23, %v1253_v35  ;;  %v3404_v22 = vor.u32 %v4059_v19, %v3403_v18  ;;  %v4155_v23 = vld [vmem:[%s5883_s3 + $0x38c] sm:$0xf0] }
 0x15e   :  { %v1476_v40 = vadd.f32 %v1475_v24, %v1254_v37  ;;  %v3531_v24 = vld [vmem:[%s5883_s3 + $0x180] sm:$0xf]  ;;  %v3788_v29 = vor.u32 %v4155_v23, %v3787_v20 }
 0x15f   :  { %v889_v41 = vpop.f32.mrf.mxu2  ;;  %v3532_v30 = vor.u32 %v4091_v25, %v3531_v24  ;;  %2539 = vmatpush.bf16.msrb.mxu0 %v3404_v22 }
 0x160   :  { %v890_v44 = vadd.f32 %v889_v41, %v4499_v55  ;;  %v1058_v46 = vpop.f32.mrf.mxu3  ;;  %v554_v47 = vpop.f32.mrf.mxu0  ;;  %2578 = vmatpush.bf16.msrb.mxu3 %v3788_v29 }
 0x161   :  { %v1059_v48 = vadd.f32 %v1058_v46, %v4502_v57  ;;  %v555_v49 = vadd.f32 %v554_v47, %v4492_v43  ;;  %v723_v50 = vpop.f32.mrf.mxu1  ;;  %2552 = vmatpush.bf16.msrb.mxu1 %v3532_v30 }
 0x162   :  { %v1255_v51 = vmax.f32 %v890_v44, 0.0  ;;  %v724_v52 = vadd.f32 %v723_v50, %v4494_v45 }
 0x163   :  { %v1256_v53 = vmax.f32 %v1059_v48, 0.0  ;;  %v1257_v54 = vmax.f32 %v555_v49, 0.0  ;;  %593 = vmatmul.bf16.gmra.mxu0 %v3997_v42 }
 0x164   :  { %v1513_v56 = vadd.f32 %v1512_v36, %v1255_v51  ;;  %v1258_v58 = vmax.f32 %v724_v52, 0.0  ;;  %762 = vmatmul.bf16.gmra.mxu1 %v3997_v42  ;;  %931 = vmatmul.bf16.gmra.mxu2 %v3997_v42 }
 0x165   :  { %v1550_v59 = vadd.f32 %v1549_v38, %v1256_v53  ;;  %v1440_v60 = vadd.f32 %v1439_v39, %v1257_v54  ;;  %1100 = vmatmul.bf16.gmra.mxu3 %v3997_v42 }
 0x166   :  { %v1477_v61 = vadd.f32 %v1476_v40, %v1258_v58 }
 0x167   :  { %v892_v62 = vpop.f32.mrf.mxu2 }
 0x168   :  { %v893_v63 = vadd.f32 %v892_v62, %v4499_v55  ;;  %v1061_v0 = vpop.f32.mrf.mxu3  ;;  %v556_v1 = vpop.f32.mrf.mxu0 }
 0x169   :  { %v1062_v2 = vadd.f32 %v1061_v0, %v4502_v57  ;;  %v557_v3 = vadd.f32 %v556_v1, %v4492_v43  ;;  %v725_v4 = vpop.f32.mrf.mxu1  ;;  %v3999_v0 = vld [vmem:[%s5880_s0 + $0xb0] sm:$0xff] }
 0x16a   :  { %v1259_v5 = vmax.f32 %v893_v63, 0.0  ;;  %v726_v6 = vadd.f32 %v725_v4, %v4494_v45 }
 0x16b   :  { %v1260_v7 = vmax.f32 %v1062_v2, 0.0  ;;  %v1261_v8 = vmax.f32 %v557_v3, 0.0 }
 0x16c   :  { %v1514_v9 = vadd.f32 %v1513_v56, %v1259_v5  ;;  %v1262_v10 = vmax.f32 %v726_v6, 0.0 }
 0x16d   :  { %v1551_v11 = vadd.f32 %v1550_v59, %v1260_v7  ;;  %v1441_v12 = vadd.f32 %v1440_v60, %v1261_v8 }
 0x16e   :  { %v1478_v16 = vadd.f32 %v1477_v61, %v1262_v10 }
 0x16f   :  { %v894_v21 = vpop.f32.mrf.mxu2 }
 0x170   :  { %v895_v26 = vadd.f32 %v894_v21, %v4499_v55  ;;  %v1063_v27 = vpop.f32.mrf.mxu3  ;;  %v559_v28 = vpop.f32.mrf.mxu0 }
 0x171   :  { %v1064_v31 = vadd.f32 %v1063_v27, %v4502_v57  ;;  %v560_v32 = vadd.f32 %v559_v28, %v4492_v43  ;;  %v728_v33 = vpop.f32.mrf.mxu1 }
 0x172   :  { %v1263_v34 = vmax.f32 %v895_v26, 0.0  ;;  %v729_v35 = vadd.f32 %v728_v33, %v4494_v45  ;;  %v4000_v33 = vld [vmem:[%s5880_s0 + $0xb8] sm:$0xff] }
 0x173   :  { %v1264_v36 = vmax.f32 %v1064_v31, 0.0  ;;  %v1265_v37 = vmax.f32 %v560_v32, 0.0  ;;  %598 = vmatmul.bf16.gmra.mxu0 %v3998_v13 }
 0x174   :  { %v1515_v38 = vadd.f32 %v1514_v9, %v1263_v34  ;;  %v1266_v39 = vmax.f32 %v729_v35, 0.0  ;;  %767 = vmatmul.bf16.gmra.mxu1 %v3998_v13  ;;  %936 = vmatmul.bf16.gmra.mxu2 %v3998_v13 }
 0x175   :  { %v1552_v40 = vadd.f32 %v1551_v11, %v1264_v36  ;;  %v1442_v41 = vadd.f32 %v1441_v12, %v1265_v37  ;;  %1105 = vmatmul.bf16.gmra.mxu3 %v3998_v13 }
 0x176   :  { %v1479_v42 = vadd.f32 %v1478_v16, %v1266_v39 }
 0x177   :  { %v897_v44 = vpop.f32.mrf.mxu2 }
 0x178   :  { %v898_v46 = vadd.f32 %v897_v44, %v4499_v55  ;;  %v1066_v47 = vpop.f32.mrf.mxu3  ;;  %v561_v48 = vpop.f32.mrf.mxu0 }
 0x179   :  { %v1067_v49 = vadd.f32 %v1066_v47, %v4502_v57  ;;  %v562_v50 = vadd.f32 %v561_v48, %v4492_v43  ;;  %v730_v51 = vpop.f32.mrf.mxu1 }
 0x17a   :  { %v1267_v52 = vmax.f32 %v898_v46, 0.0  ;;  %v731_v53 = vadd.f32 %v730_v51, %v4494_v45 }
 0x17b   :  { %v1268_v54 = vmax.f32 %v1067_v49, 0.0  ;;  %v1269_v56 = vmax.f32 %v562_v50, 0.0 }
 0x17c   :  { %v1516_v58 = vadd.f32 %v1515_v38, %v1267_v52  ;;  %v1270_v59 = vmax.f32 %v731_v53, 0.0 }
 0x17d   :  { %v1553_v60 = vadd.f32 %v1552_v40, %v1268_v54  ;;  %v1443_v61 = vadd.f32 %v1442_v41, %v1269_v56 }
 0x17e   :  { %v1480_v62 = vadd.f32 %v1479_v42, %v1270_v59 }
 0x17f   :  { %v899_v63 = vpop.f32.mrf.mxu2 }
 0x180   :  { %v900_v1 = vadd.f32 %v899_v63, %v4499_v55  ;;  %v1068_v2 = vpop.f32.mrf.mxu3  ;;  %v564_v3 = vpop.f32.mrf.mxu0 }
 0x181   :  { %v1069_v4 = vadd.f32 %v1068_v2, %v4502_v57  ;;  %v565_v5 = vadd.f32 %v564_v3, %v4492_v43  ;;  %v733_v6 = vpop.f32.mrf.mxu1 }
 0x182   :  { %v1271_v7 = vmax.f32 %v900_v1, 0.0  ;;  %v734_v8 = vadd.f32 %v733_v6, %v4494_v45  ;;  %v4001_v6 = vld [vmem:[%s5880_s0 + $0xc0] sm:$0xff] }
 0x183   :  { %v1272_v9 = vmax.f32 %v1069_v4, 0.0  ;;  %v1273_v10 = vmax.f32 %v565_v5, 0.0  ;;  %603 = vmatmul.bf16.gmra.mxu0 %v3999_v0 }
 0x184   :  { %v1517_v11 = vadd.f32 %v1516_v58, %v1271_v7  ;;  %v1274_v12 = vmax.f32 %v734_v8, 0.0  ;;  %772 = vmatmul.bf16.gmra.mxu1 %v3999_v0  ;;  %941 = vmatmul.bf16.gmra.mxu2 %v3999_v0 }
 0x185   :  { %v1554_v13 = vadd.f32 %v1553_v60, %v1272_v9  ;;  %v1444_v14 = vadd.f32 %v1443_v61, %v1273_v10  ;;  %1110 = vmatmul.bf16.gmra.mxu3 %v3999_v0 }
 0x186   :  { %v1481_v15 = vadd.f32 %v1480_v62, %v1274_v12 }
 0x187   :  { %v902_v16 = vpop.f32.mrf.mxu2 }
 0x188   :  { %v903_v17 = vadd.f32 %v902_v16, %v4499_v55  ;;  %v1071_v18 = vpop.f32.mrf.mxu3  ;;  %v566_v19 = vpop.f32.mrf.mxu0 }
 0x189   :  { %v1072_v20 = vadd.f32 %v1071_v18, %v4502_v57  ;;  %v567_v21 = vadd.f32 %v566_v19, %v4492_v43  ;;  %v735_v22 = vpop.f32.mrf.mxu1 }
 0x18a   :  { %v1275_v23 = vmax.f32 %v903_v17, 0.0  ;;  %v736_v24 = vadd.f32 %v735_v22, %v4494_v45 }
 0x18b   :  { %v1276_v25 = vmax.f32 %v1072_v20, 0.0  ;;  %v1277_v26 = vmax.f32 %v567_v21, 0.0 }
 0x18c   :  { %v1518_v27 = vadd.f32 %v1517_v11, %v1275_v23  ;;  %v1278_v28 = vmax.f32 %v736_v24, 0.0 }
 0x18d   :  { %v1555_v29 = vadd.f32 %v1554_v13, %v1276_v25  ;;  %v1445_v30 = vadd.f32 %v1444_v14, %v1277_v26 }
 0x18e   :  { %v1482_v31 = vadd.f32 %v1481_v15, %v1278_v28 }
 0x18f   :  { %v904_v32 = vpop.f32.mrf.mxu2 }
 0x190   :  { %v905_v34 = vadd.f32 %v904_v32, %v4499_v55  ;;  %v1073_v35 = vpop.f32.mrf.mxu3  ;;  %v569_v36 = vpop.f32.mrf.mxu0 }
 0x191   :  { %v1074_v37 = vadd.f32 %v1073_v35, %v4502_v57  ;;  %v570_v38 = vadd.f32 %v569_v36, %v4492_v43  ;;  %v738_v39 = vpop.f32.mrf.mxu1  ;;  %v4055_v35 = vld [vmem:[%s5883_s3 + $0x6c] sm:$0xf0] }
 0x192   :  { %v1279_v40 = vmax.f32 %v905_v34, 0.0  ;;  %v739_v41 = vadd.f32 %v738_v39, %v4494_v45  ;;  %v3387_v34 = vld [vmem:[%s5883_s3 + $0x60] sm:$0xf] }
 0x193   :  { %v1280_v42 = vmax.f32 %v1074_v37, 0.0  ;;  %v1281_v44 = vmax.f32 %v570_v38, 0.0  ;;  %608 = vmatmul.bf16.gmra.mxu0 %v4000_v33  ;;  %v4002_v38 = vld [vmem:[%s5880_s0 + $0xc8] sm:$0xff]  ;;  %v3388_v39 = vor.u32 %v4055_v35, %v3387_v34 }
 0x194   :  { %v1519_v46 = vadd.f32 %v1518_v27, %v1279_v40  ;;  %v1282_v47 = vmax.f32 %v739_v41, 0.0  ;;  %777 = vmatmul.bf16.gmra.mxu1 %v4000_v33  ;;  %946 = vmatmul.bf16.gmra.mxu2 %v4000_v33  ;;  %v3771_v40 = vld [vmem:[%s5883_s3 + $0x360] sm:$0xf]  ;;  %v4151_v41 = vld [vmem:[%s5883_s3 + $0x36c] sm:$0xf0] }
 0x195   :  { %v1556_v48 = vadd.f32 %v1555_v29, %v1280_v42  ;;  %v1446_v49 = vadd.f32 %v1445_v30, %v1281_v44  ;;  %1115 = vmatmul.bf16.gmra.mxu3 %v4000_v33  ;;  %v3643_v29 = vld [vmem:[%s5883_s3 + $0x260] sm:$0xf]  ;;  %v4119_v30 = vld [vmem:[%s5883_s3 + $0x26c] sm:$0xf0]  ;;  %2540 = vmatpush.bf16.msrb.mxu0 %v3388_v39 }
 0x196   :  { %v1483_v50 = vadd.f32 %v1482_v31, %v1282_v47  ;;  %v3644_v33 = vor.u32 %v4119_v30, %v3643_v29  ;;  %v3772_v47 = vor.u32 %v4151_v41, %v3771_v40 }
 0x197   :  { %v907_v51 = vpop.f32.mrf.mxu2 }
 0x198   :  { %v908_v52 = vadd.f32 %v907_v51, %v4499_v55  ;;  %v1076_v53 = vpop.f32.mrf.mxu3  ;;  %v571_v54 = vpop.f32.mrf.mxu0  ;;  %2566 = vmatpush.bf16.msrb.mxu2 %v3644_v33  ;;  %2579 = vmatpush.bf16.msrb.mxu3 %v3772_v47 }
 0x199   :  { %v1077_v56 = vadd.f32 %v1076_v53, %v4502_v57  ;;  %v572_v58 = vadd.f32 %v571_v54, %v4492_v43  ;;  %v740_v59 = vpop.f32.mrf.mxu1 }
 0x19a   :  { %v1283_v60 = vmax.f32 %v908_v52, 0.0  ;;  %v741_v61 = vadd.f32 %v740_v59, %v4494_v45 }
 0x19b   :  { %v1284_v62 = vmax.f32 %v1077_v56, 0.0  ;;  %v1285_v63 = vmax.f32 %v572_v58, 0.0 }
 0x19c   :  { %v1520_v0 = vadd.f32 %v1519_v46, %v1283_v60  ;;  %v1286_v1 = vmax.f32 %v741_v61, 0.0 }
 0x19d   :  { %v1557_v2 = vadd.f32 %v1556_v48, %v1284_v62  ;;  %v4767_v3 = vadd.f32 %v1446_v49, %v1285_v63  ;;  %v3515_v48 = vld [vmem:[%s5883_s3 + $0x160] sm:$0xf]  ;;  %v4087_v49 = vld [vmem:[%s5883_s3 + $0x16c] sm:$0xf0] }
 0x19e   :  { %v4769_v4 = vadd.f32 %v1483_v50, %v1286_v1  ;;  %v3516_v53 = vor.u32 %v4087_v49, %v3515_v48 }
 0x19f   :  { %v909_v5 = vpop.f32.mrf.mxu2 }
 0x1a0   :  { %v910_v7 = vadd.f32 %v909_v5, %v4499_v55  ;;  %v1078_v8 = vpop.f32.mrf.mxu3  ;;  %v574_v9 = vpop.f32.mrf.mxu0  ;;  %2553 = vmatpush.bf16.msrb.mxu1 %v3516_v53 }
 0x1a1   :  { %v1079_v10 = vadd.f32 %v1078_v8, %v4502_v57  ;;  %v743_v11 = vpop.f32.mrf.mxu1  ;;  %v575_v16 = vadd.f32 %v574_v9, %v4492_v43 }
 0x1a2   :  { %v1287_v12 = vmax.f32 %v910_v7, 0.0  ;;  %v744_v17 = vadd.f32 %v743_v11, %v4494_v45 }
 0x1a3   :  { %v1288_v13 = vmax.f32 %v1079_v10, 0.0  ;;  %613 = vmatmul.bf16.gmra.mxu0 %v4001_v6  ;;  %v1289_v21 = vmax.f32 %v575_v16, 0.0 }
 0x1a4   :  { %v4776_v14 = vadd.f32 %v1520_v0, %v1287_v12  ;;  %782 = vmatmul.bf16.gmra.mxu1 %v4001_v6  ;;  %951 = vmatmul.bf16.gmra.mxu2 %v4001_v6  ;;  %v1290_v24 = vmax.f32 %v744_v17, 0.0 }
 0x1a5   :  { %v4778_v15 = vadd.f32 %v1557_v2, %v1288_v13  ;;  %1120 = vmatmul.bf16.gmra.mxu3 %v4001_v6 }
 0x1a7   :  { %v912_v18 = vpop.f32.mrf.mxu2 }
 0x1a8   :  { %v1081_v19 = vpop.f32.mrf.mxu3  ;;  %v576_v20 = vpop.f32.mrf.mxu0  ;;  %v913_v31 = vadd.f32 %v912_v18, %v4499_v55 }
 0x1a9   :  { %v577_v22 = vadd.f32 %v576_v20, %v4492_v43  ;;  %v745_v23 = vpop.f32.mrf.mxu1  ;;  %v1082_v36 = vadd.f32 %v1081_v19, %v4502_v57 }
 0x1aa   :  { %v746_v25 = vadd.f32 %v745_v23, %v4494_v45  ;;  %v1291_v54 = vmax.f32 %v913_v31, 0.0 }
 0x1ab   :  { %v1293_v26 = vmax.f32 %v577_v22, 0.0  ;;  %v1292_v59 = vmax.f32 %v1082_v36, 0.0 }
 0x1ac   :  { %v1294_v27 = vmax.f32 %v746_v25, 0.0 }
 0x1ad   :  { %v1565_v28 = vadd.f32 %v1293_v26, %v1289_v21 }
 0x1ae   :  { %v1602_v32 = vadd.f32 %v1294_v27, %v1290_v24  ;;  %v4003_v24 = vld [vmem:[%s5880_s0 + $0xd0] sm:$0xff] }
 0x1af   :  { %v914_v37 = vpop.f32.mrf.mxu2 }
 0x1b0   :  { %v915_v42 = vadd.f32 %v914_v37, %v4499_v55  ;;  %v1083_v44 = vpop.f32.mrf.mxu3  ;;  %v579_v46 = vpop.f32.mrf.mxu0 }
 0x1b1   :  { %v1084_v50 = vadd.f32 %v1083_v44, %v4502_v57  ;;  %v580_v51 = vadd.f32 %v579_v46, %v4492_v43  ;;  %v748_v52 = vpop.f32.mrf.mxu1 }
 0x1b2   :  { %v1295_v56 = vmax.f32 %v915_v42, 0.0  ;;  %v749_v58 = vadd.f32 %v748_v52, %v4494_v45 }
 0x1b3   :  { %v1296_v60 = vmax.f32 %v1084_v50, 0.0  ;;  %v1297_v61 = vmax.f32 %v580_v51, 0.0  ;;  %618 = vmatmul.bf16.gmra.mxu0 %v4002_v38 }
 0x1b4   :  { %v1639_v62 = vadd.f32 %v1295_v56, %v1291_v54  ;;  %v1298_v63 = vmax.f32 %v749_v58, 0.0  ;;  %787 = vmatmul.bf16.gmra.mxu1 %v4002_v38  ;;  %956 = vmatmul.bf16.gmra.mxu2 %v4002_v38 }
 0x1b5   :  { %v1676_v0 = vadd.f32 %v1296_v60, %v1292_v59  ;;  %v1566_v1 = vadd.f32 %v1565_v28, %v1297_v61  ;;  %1125 = vmatmul.bf16.gmra.mxu3 %v4002_v38  ;;  %v4004_v61 = vld [vmem:[%s5880_s0 + $0xd8] sm:$0xff] }
 0x1b6   :  { %v1603_v2 = vadd.f32 %v1602_v32, %v1298_v63 }
 0x1b7   :  { %v917_v5 = vpop.f32.mrf.mxu2 }
 0x1b8   :  { %v918_v6 = vadd.f32 %v917_v5, %v4499_v55  ;;  %v1086_v7 = vpop.f32.mrf.mxu3  ;;  %v581_v8 = vpop.f32.mrf.mxu0 }
 0x1b9   :  { %v1087_v9 = vadd.f32 %v1086_v7, %v4502_v57  ;;  %v582_v10 = vadd.f32 %v581_v8, %v4492_v43  ;;  %v750_v11 = vpop.f32.mrf.mxu1 }
 0x1ba   :  { %v1299_v12 = vmax.f32 %v918_v6, 0.0  ;;  %v751_v13 = vadd.f32 %v750_v11, %v4494_v45 }
 0x1bb   :  { %v1300_v16 = vmax.f32 %v1087_v9, 0.0  ;;  %v1301_v17 = vmax.f32 %v582_v10, 0.0 }
 0x1bc   :  { %v1640_v18 = vadd.f32 %v1639_v62, %v1299_v12  ;;  %v1302_v19 = vmax.f32 %v751_v13, 0.0 }
 0x1bd   :  { %v1677_v20 = vadd.f32 %v1676_v0, %v1300_v16  ;;  %v1567_v21 = vadd.f32 %v1566_v1, %v1301_v17 }
 0x1be   :  { %v1604_v22 = vadd.f32 %v1603_v2, %v1302_v19 }
 0x1bf   :  { %v919_v23 = vpop.f32.mrf.mxu2 }
 0x1c0   :  { %v920_v25 = vadd.f32 %v919_v23, %v4499_v55  ;;  %v1088_v26 = vpop.f32.mrf.mxu3  ;;  %v584_v27 = vpop.f32.mrf.mxu0 }
 0x1c1   :  { %v1089_v28 = vadd.f32 %v1088_v26, %v4502_v57  ;;  %v585_v29 = vadd.f32 %v584_v27, %v4492_v43  ;;  %v753_v30 = vpop.f32.mrf.mxu1 }
 0x1c2   :  { %v1303_v31 = vmax.f32 %v920_v25, 0.0  ;;  %v754_v32 = vadd.f32 %v753_v30, %v4494_v45 }
 0x1c3   :  { %v1304_v33 = vmax.f32 %v1089_v28, 0.0  ;;  %v1305_v34 = vmax.f32 %v585_v29, 0.0  ;;  %623 = vmatmul.bf16.gmra.mxu0 %v4003_v24 }
 0x1c4   :  { %v1641_v35 = vadd.f32 %v1640_v18, %v1303_v31  ;;  %v1306_v36 = vmax.f32 %v754_v32, 0.0  ;;  %792 = vmatmul.bf16.gmra.mxu1 %v4003_v24  ;;  %961 = vmatmul.bf16.gmra.mxu2 %v4003_v24 }
 0x1c5   :  { %v1678_v37 = vadd.f32 %v1677_v20, %v1304_v33  ;;  %v1568_v38 = vadd.f32 %v1567_v21, %v1305_v34  ;;  %1130 = vmatmul.bf16.gmra.mxu3 %v4003_v24  ;;  %v4005_v34 = vld [vmem:[%s5880_s0 + $0xe0] sm:$0xff] }
 0x1c6   :  { %v1605_v39 = vadd.f32 %v1604_v22, %v1306_v36 }
 0x1c7   :  { %v922_v40 = vpop.f32.mrf.mxu2 }
 0x1c8   :  { %v923_v41 = vadd.f32 %v922_v40, %v4499_v55  ;;  %v1091_v42 = vpop.f32.mrf.mxu3  ;;  %v586_v44 = vpop.f32.mrf.mxu0 }
 0x1c9   :  { %v1092_v46 = vadd.f32 %v1091_v42, %v4502_v57  ;;  %v587_v47 = vadd.f32 %v586_v44, %v4492_v43  ;;  %v755_v48 = vpop.f32.mrf.mxu1 }
 0x1ca   :  { %v1307_v49 = vmax.f32 %v923_v41, 0.0  ;;  %v756_v50 = vadd.f32 %v755_v48, %v4494_v45 }
 0x1cb   :  { %v1308_v51 = vmax.f32 %v1092_v46, 0.0  ;;  %v1309_v52 = vmax.f32 %v587_v47, 0.0 }
 0x1cc   :  { %v1642_v53 = vadd.f32 %v1641_v35, %v1307_v49  ;;  %v1310_v54 = vmax.f32 %v756_v50, 0.0 }
 0x1cd   :  { %v1679_v56 = vadd.f32 %v1678_v37, %v1308_v51  ;;  %v1569_v58 = vadd.f32 %v1568_v38, %v1309_v52 }
 0x1ce   :  { %v1606_v59 = vadd.f32 %v1605_v39, %v1310_v54 }
 0x1cf   :  { %v924_v60 = vpop.f32.mrf.mxu2 }
 0x1d0   :  { %v925_v62 = vadd.f32 %v924_v60, %v4499_v55  ;;  %v1093_v63 = vpop.f32.mrf.mxu3  ;;  %v589_v0 = vpop.f32.mrf.mxu0 }
 0x1d1   :  { %v1094_v1 = vadd.f32 %v1093_v63, %v4502_v57  ;;  %v590_v2 = vadd.f32 %v589_v0, %v4492_v43  ;;  %v758_v5 = vpop.f32.mrf.mxu1 }
 0x1d2   :  { %v1311_v6 = vmax.f32 %v925_v62, 0.0  ;;  %v759_v7 = vadd.f32 %v758_v5, %v4494_v45  ;;  %v4006_v5 = vld [vmem:[%s5880_s0 + $0xe8] sm:$0xff] }
 0x1d3   :  { %v1312_v8 = vmax.f32 %v1094_v1, 0.0  ;;  %v1313_v9 = vmax.f32 %v590_v2, 0.0  ;;  %628 = vmatmul.bf16.gmra.mxu0 %v4004_v61 }
 0x1d4   :  { %v1643_v10 = vadd.f32 %v1642_v53, %v1311_v6  ;;  %v1314_v11 = vmax.f32 %v759_v7, 0.0  ;;  %797 = vmatmul.bf16.gmra.mxu1 %v4004_v61  ;;  %966 = vmatmul.bf16.gmra.mxu2 %v4004_v61  ;;  %v3627_v6 = vld [vmem:[%s5883_s3 + $0x240] sm:$0xf]  ;;  %v4115_v7 = vld [vmem:[%s5883_s3 + $0x24c] sm:$0xf0] }
 0x1d5   :  { %v1680_v12 = vadd.f32 %v1679_v56, %v1312_v8  ;;  %v1570_v13 = vadd.f32 %v1569_v58, %v1313_v9  ;;  %1135 = vmatmul.bf16.gmra.mxu3 %v4004_v61  ;;  %v3628_v8 = vor.u32 %v4115_v7, %v3627_v6  ;;  %v3371_v9 = vld [vmem:[%s5883_s3 + $0x40] sm:$0xf] }
 0x1d6   :  { %v1607_v16 = vadd.f32 %v1606_v59, %v1314_v11  ;;  %v3755_v11 = vld [vmem:[%s5883_s3 + $0x340] sm:$0xf] }
 0x1d7   :  { %v927_v17 = vpop.f32.mrf.mxu2  ;;  %2567 = vmatpush.bf16.msrb.mxu2 %v3628_v8 }
 0x1d8   :  { %v928_v18 = vadd.f32 %v927_v17, %v4499_v55  ;;  %v1096_v19 = vpop.f32.mrf.mxu3  ;;  %v591_v20 = vpop.f32.mrf.mxu0  ;;  %v3499_v17 = vld [vmem:[%s5883_s3 + $0x140] sm:$0xf] }
 0x1d9   :  { %v1097_v21 = vadd.f32 %v1096_v19, %v4502_v57  ;;  %v592_v22 = vadd.f32 %v591_v20, %v4492_v43  ;;  %v760_v23 = vpop.f32.mrf.mxu1 }
 0x1da   :  { %v1315_v24 = vmax.f32 %v928_v18, 0.0  ;;  %v761_v25 = vadd.f32 %v760_v23, %v4494_v45  ;;  %v4083_v18 = vld [vmem:[%s5883_s3 + $0x14c] sm:$0xf0] }
 0x1db   :  { %v1316_v26 = vmax.f32 %v1097_v21, 0.0  ;;  %v1317_v27 = vmax.f32 %v592_v22, 0.0  ;;  %v3500_v23 = vor.u32 %v4083_v18, %v3499_v17 }
 0x1dc   :  { %v1644_v28 = vadd.f32 %v1643_v10, %v1315_v24  ;;  %v1318_v29 = vmax.f32 %v761_v25, 0.0  ;;  %v4051_v10 = vld [vmem:[%s5883_s3 + $0x4c] sm:$0xf0] }
 0x1dd   :  { %v1681_v30 = vadd.f32 %v1680_v12, %v1316_v26  ;;  %v1571_v31 = vadd.f32 %v1570_v13, %v1317_v27  ;;  %v3372_v13 = vor.u32 %v4051_v10, %v3371_v9  ;;  %2554 = vmatpush.bf16.msrb.mxu1 %v3500_v23 }
 0x1de   :  { %v1608_v32 = vadd.f32 %v1607_v16, %v1318_v29  ;;  %v4147_v16 = vld [vmem:[%s5883_s3 + $0x34c] sm:$0xf0] }
 0x1df   :  { %v929_v33 = vpop.f32.mrf.mxu2  ;;  %v3756_v22 = vor.u32 %v4147_v16, %v3755_v11  ;;  %2541 = vmatpush.bf16.msrb.mxu0 %v3372_v13 }
 0x1e0   :  { %v930_v35 = vadd.f32 %v929_v33, %v4499_v55  ;;  %v1098_v36 = vpop.f32.mrf.mxu3  ;;  %v594_v37 = vpop.f32.mrf.mxu0 }
 0x1e1   :  { %v1099_v38 = vadd.f32 %v1098_v36, %v4502_v57  ;;  %v595_v39 = vadd.f32 %v594_v37, %v4492_v43  ;;  %v763_v40 = vpop.f32.mrf.mxu1  ;;  %2580 = vmatpush.bf16.msrb.mxu3 %v3756_v22 }
 0x1e2   :  { %v1319_v41 = vmax.f32 %v930_v35, 0.0  ;;  %v764_v42 = vadd.f32 %v763_v40, %v4494_v45 }
 0x1e3   :  { %v1320_v44 = vmax.f32 %v1099_v38, 0.0  ;;  %v1321_v46 = vmax.f32 %v595_v39, 0.0  ;;  %633 = vmatmul.bf16.gmra.mxu0 %v4005_v34 }
 0x1e4   :  { %v1645_v47 = vadd.f32 %v1644_v28, %v1319_v41  ;;  %v1322_v48 = vmax.f32 %v764_v42, 0.0  ;;  %802 = vmatmul.bf16.gmra.mxu1 %v4005_v34  ;;  %971 = vmatmul.bf16.gmra.mxu2 %v4005_v34 }
 0x1e5   :  { %v1682_v49 = vadd.f32 %v1681_v30, %v1320_v44  ;;  %v1572_v50 = vadd.f32 %v1571_v31, %v1321_v46  ;;  %1140 = vmatmul.bf16.gmra.mxu3 %v4005_v34 }
 0x1e6   :  { %v1609_v51 = vadd.f32 %v1608_v32, %v1322_v48 }
 0x1e7   :  { %v932_v52 = vpop.f32.mrf.mxu2 }
 0x1e8   :  { %v933_v53 = vadd.f32 %v932_v52, %v4499_v55  ;;  %v1101_v54 = vpop.f32.mrf.mxu3  ;;  %v596_v56 = vpop.f32.mrf.mxu0 }
 0x1e9   :  { %v1102_v58 = vadd.f32 %v1101_v54, %v4502_v57  ;;  %v597_v59 = vadd.f32 %v596_v56, %v4492_v43  ;;  %v765_v60 = vpop.f32.mrf.mxu1  ;;  %v4007_v56 = vld [vmem:[%s5880_s0 + $0xf0] sm:$0xff] }
 0x1ea   :  { %v1323_v61 = vmax.f32 %v933_v53, 0.0  ;;  %v766_v0 = vadd.f32 %v765_v60, %v4494_v45 }
 0x1eb   :  { %v1324_v62 = vmax.f32 %v1102_v58, 0.0  ;;  %v1325_v2 = vmax.f32 %v597_v59, 0.0 }
 0x1ec   :  { %v1646_v63 = vadd.f32 %v1645_v47, %v1323_v61  ;;  %v1326_v19 = vmax.f32 %v766_v0, 0.0 }
 0x1ed   :  { %v1683_v1 = vadd.f32 %v1682_v49, %v1324_v62  ;;  %v1573_v28 = vadd.f32 %v1572_v50, %v1325_v2 }
 0x1ee   :  { %v1610_v31 = vadd.f32 %v1609_v51, %v1326_v19 }
 0x1ef   :  { %v934_v12 = vpop.f32.mrf.mxu2 }
 0x1f0   :  { %v1103_v20 = vpop.f32.mrf.mxu3  ;;  %v599_v21 = vpop.f32.mrf.mxu0  ;;  %v935_v26 = vadd.f32 %v934_v12, %v4499_v55 }
 0x1f1   :  { %v600_v24 = vadd.f32 %v599_v21, %v4492_v43  ;;  %v768_v25 = vpop.f32.mrf.mxu1  ;;  %v1104_v29 = vadd.f32 %v1103_v20, %v4502_v57 }
 0x1f2   :  { %v769_v27 = vadd.f32 %v768_v25, %v4494_v45  ;;  %v1327_v34 = vmax.f32 %v935_v26, 0.0 }
 0x1f3   :  { %v1329_v30 = vmax.f32 %v600_v24, 0.0  ;;  %638 = vmatmul.bf16.gmra.mxu0 %v4006_v5  ;;  %v1328_v36 = vmax.f32 %v1104_v29, 0.0 }
 0x1f4   :  { %v1330_v32 = vmax.f32 %v769_v27, 0.0  ;;  %807 = vmatmul.bf16.gmra.mxu1 %v4006_v5  ;;  %976 = vmatmul.bf16.gmra.mxu2 %v4006_v5  ;;  %v1647_v44 = vadd.f32 %v1646_v63, %v1327_v34 }
 0x1f5   :  { %v1574_v33 = vadd.f32 %v1573_v28, %v1329_v30  ;;  %1145 = vmatmul.bf16.gmra.mxu3 %v4006_v5  ;;  %v1684_v47 = vadd.f32 %v1683_v1, %v1328_v36  ;;  %v4008_v30 = vld [vmem:[%s5880_s0 + $0xf8] sm:$0xff] }
 0x1f6   :  { %v1611_v35 = vadd.f32 %v1610_v31, %v1330_v32 }
 0x1f7   :  { %v937_v37 = vpop.f32.mrf.mxu2 }
 0x1f8   :  { %v938_v38 = vadd.f32 %v937_v37, %v4499_v55  ;;  %v1106_v39 = vpop.f32.mrf.mxu3  ;;  %v601_v40 = vpop.f32.mrf.mxu0 }
 0x1f9   :  { %v1107_v41 = vadd.f32 %v1106_v39, %v4502_v57  ;;  %v770_v42 = vpop.f32.mrf.mxu1  ;;  %v602_v49 = vadd.f32 %v601_v40, %v4492_v43 }
 0x1fa   :  { %v1331_v46 = vmax.f32 %v938_v38, 0.0  ;;  %v771_v51 = vadd.f32 %v770_v42, %v4494_v45 }
 0x1fb   :  { %v1332_v48 = vmax.f32 %v1107_v41, 0.0  ;;  %v1333_v53 = vmax.f32 %v602_v49, 0.0 }
 0x1fc   :  { %v1648_v50 = vadd.f32 %v1647_v44, %v1331_v46  ;;  %v1334_v58 = vmax.f32 %v771_v51, 0.0 }
 0x1fd   :  { %v1685_v52 = vadd.f32 %v1684_v47, %v1332_v48  ;;  %v1575_v1 = vadd.f32 %v1574_v33, %v1333_v53 }
 0x1fe   :  { %v1612_v6 = vadd.f32 %v1611_v35, %v1334_v58 }
 0x1ff   :  { %v939_v54 = vpop.f32.mrf.mxu2 }
 0x200   :  { %v1108_v59 = vpop.f32.mrf.mxu3  ;;  %v604_v60 = vpop.f32.mrf.mxu0  ;;  %v940_v63 = vadd.f32 %v939_v54, %v4499_v55 }
 0x201   :  { %v605_v61 = vadd.f32 %v604_v60, %v4492_v43  ;;  %v773_v62 = vpop.f32.mrf.mxu1  ;;  %v1109_v2 = vadd.f32 %v1108_v59, %v4502_v57 }
 0x202   :  { %v774_v0 = vadd.f32 %v773_v62, %v4494_v45  ;;  %v1335_v9 = vmax.f32 %v940_v63, 0.0 }
 0x203   :  { %v1337_v5 = vmax.f32 %v605_v61, 0.0  ;;  %643 = vmatmul.bf16.gmra.mxu0 %v4007_v56  ;;  %v1336_v11 = vmax.f32 %v1109_v2, 0.0 }
 0x204   :  { %v1338_v7 = vmax.f32 %v774_v0, 0.0  ;;  %812 = vmatmul.bf16.gmra.mxu1 %v4007_v56  ;;  %981 = vmatmul.bf16.gmra.mxu2 %v4007_v56  ;;  %v1649_v20 = vadd.f32 %v1648_v50, %v1335_v9 }
 0x205   :  { %v1576_v8 = vadd.f32 %v1575_v1, %v1337_v5  ;;  %1150 = vmatmul.bf16.gmra.mxu3 %v4007_v56  ;;  %v1686_v22 = vadd.f32 %v1685_v52, %v1336_v11 }
 0x206   :  { %v1613_v10 = vadd.f32 %v1612_v6, %v1338_v7 }
 0x207   :  { %v942_v12 = vpop.f32.mrf.mxu2 }
 0x208   :  { %v943_v13 = vadd.f32 %v942_v12, %v4499_v55  ;;  %v1111_v16 = vpop.f32.mrf.mxu3  ;;  %v606_v17 = vpop.f32.mrf.mxu0 }
 0x209   :  { %v1112_v18 = vadd.f32 %v1111_v16, %v4502_v57  ;;  %v775_v19 = vpop.f32.mrf.mxu1  ;;  %v607_v24 = vadd.f32 %v606_v17, %v4492_v43 }
 0x20a   :  { %v1339_v21 = vmax.f32 %v943_v13, 0.0  ;;  %v776_v26 = vadd.f32 %v775_v19, %v4494_v45 }
 0x20b   :  { %v1340_v23 = vmax.f32 %v1112_v18, 0.0  ;;  %v1341_v28 = vmax.f32 %v607_v24, 0.0 }
 0x20c   :  { %v1650_v25 = vadd.f32 %v1649_v20, %v1339_v21  ;;  %v1342_v31 = vmax.f32 %v776_v26, 0.0 }
 0x20d   :  { %v1687_v27 = vadd.f32 %v1686_v22, %v1340_v23  ;;  %v1577_v38 = vadd.f32 %v1576_v8, %v1341_v28 }
 0x20e   :  { %v1614_v41 = vadd.f32 %v1613_v10, %v1342_v31 }
 0x20f   :  { %v944_v29 = vpop.f32.mrf.mxu2 }
 0x210   :  { %v1113_v32 = vpop.f32.mrf.mxu3  ;;  %v609_v33 = vpop.f32.mrf.mxu0  ;;  %v945_v36 = vadd.f32 %v944_v29, %v4499_v55 }
 0x211   :  { %v610_v34 = vadd.f32 %v609_v33, %v4492_v43  ;;  %v778_v35 = vpop.f32.mrf.mxu1  ;;  %v1114_v39 = vadd.f32 %v1113_v32, %v4502_v57 }
 0x212   :  { %v779_v37 = vadd.f32 %v778_v35, %v4494_v45  ;;  %v1343_v46 = vmax.f32 %v945_v36, 0.0 }
 0x213   :  { %v1345_v40 = vmax.f32 %v610_v34, 0.0  ;;  %648 = vmatmul.bf16.gmra.mxu0 %v4008_v30  ;;  %v1344_v48 = vmax.f32 %v1114_v39, 0.0  ;;  %v4111_v39 = vld [vmem:[%s5883_s3 + $0x22c] sm:$0xf0] }
 0x214   :  { %v1346_v42 = vmax.f32 %v779_v37, 0.0  ;;  %817 = vmatmul.bf16.gmra.mxu1 %v4008_v30  ;;  %986 = vmatmul.bf16.gmra.mxu2 %v4008_v30  ;;  %v1651_v56 = vadd.f32 %v1650_v25, %v1343_v46 }
 0x215   :  { %v1578_v44 = vadd.f32 %v1577_v38, %v1345_v40  ;;  %1155 = vmatmul.bf16.gmra.mxu3 %v4008_v30  ;;  %v1688_v59 = vadd.f32 %v1687_v27, %v1344_v48  ;;  %v3611_v38 = vld [vmem:[%s5883_s3 + $0x220] sm:$0xf]  ;;  %v4143_v48 = vld [vmem:[%s5883_s3 + $0x32c] sm:$0xf0] }
 0x216   :  { %v1615_v47 = vadd.f32 %v1614_v41, %v1346_v42  ;;  %v3612_v40 = vor.u32 %v4111_v39, %v3611_v38  ;;  %v3355_v41 = vld [vmem:[%s5883_s3 + $0x20] sm:$0xf]  ;;  %v4047_v42 = vld [vmem:[%s5883_s3 + $0x2c] sm:$0xf0] }
 0x217   :  { %v947_v49 = vpop.f32.mrf.mxu2 }
 0x218   :  { %v948_v50 = vadd.f32 %v947_v49, %v4499_v55  ;;  %v1116_v51 = vpop.f32.mrf.mxu3  ;;  %v611_v52 = vpop.f32.mrf.mxu0  ;;  %v3483_v49 = vld [vmem:[%s5883_s3 + $0x120] sm:$0xf]  ;;  %2568 = vmatpush.bf16.msrb.mxu2 %v3612_v40 }
 0x219   :  { %v1117_v53 = vadd.f32 %v1116_v51, %v4502_v57  ;;  %v780_v54 = vpop.f32.mrf.mxu1  ;;  %v612_v61 = vadd.f32 %v611_v52, %v4492_v43 }
 0x21a   :  { %v1347_v58 = vmax.f32 %v948_v50, 0.0  ;;  %v781_v63 = vadd.f32 %v780_v54, %v4494_v45  ;;  %v4079_v50 = vld [vmem:[%s5883_s3 + $0x12c] sm:$0xf0] }
 0x21b   :  { %v1348_v60 = vmax.f32 %v1117_v53, 0.0  ;;  %v1349_v1 = vmax.f32 %v612_v61, 0.0 }
 0x21c   :  { %v1652_v62 = vadd.f32 %v1651_v56, %v1347_v58  ;;  %v1350_v5 = vmax.f32 %v781_v63, 0.0  ;;  %v3484_v56 = vor.u32 %v4079_v50, %v3483_v49 }
 0x21d   :  { %v1689_v0 = vadd.f32 %v1688_v59, %v1348_v60  ;;  %v1579_v12 = vadd.f32 %v1578_v44, %v1349_v1  ;;  %v3739_v44 = vld [vmem:[%s5883_s3 + $0x320] sm:$0xf] }
 0x21e   :  { %v1616_v17 = vadd.f32 %v1615_v47, %v1350_v5  ;;  %v3356_v47 = vor.u32 %v4047_v42, %v3355_v41  ;;  %v3740_v54 = vor.u32 %v4143_v48, %v3739_v44  ;;  %2555 = vmatpush.bf16.msrb.mxu1 %v3484_v56 }
 0x21f   :  { %v949_v2 = vpop.f32.mrf.mxu2 }
 0x220   :  { %v1118_v6 = vpop.f32.mrf.mxu3  ;;  %v614_v7 = vpop.f32.mrf.mxu0  ;;  %v950_v10 = vadd.f32 %v949_v2, %v4499_v55  ;;  %2542 = vmatpush.bf16.msrb.mxu0 %v3356_v47  ;;  %2581 = vmatpush.bf16.msrb.mxu3 %v3740_v54 }
 0x221   :  { %v615_v8 = vadd.f32 %v614_v7, %v4492_v43  ;;  %v783_v9 = vpop.f32.mrf.mxu1  ;;  %v1119_v13 = vadd.f32 %v1118_v6, %v4502_v57 }
 0x222   :  { %v784_v11 = vadd.f32 %v783_v9, %v4494_v45  ;;  %v1351_v20 = vmax.f32 %v950_v10, 0.0 }
 0x223   :  { %v1353_v16 = vmax.f32 %v615_v8, 0.0  ;;  %v1352_v22 = vmax.f32 %v1119_v13, 0.0 }
 0x224   :  { %v1354_v18 = vmax.f32 %v784_v11, 0.0  ;;  %v1653_v30 = vadd.f32 %v1652_v62, %v1351_v20 }
 0x225   :  { %v1580_v19 = vadd.f32 %v1579_v12, %v1353_v16  ;;  %v1690_v32 = vadd.f32 %v1689_v0, %v1352_v22 }
 0x226   :  { %v1617_v21 = vadd.f32 %v1616_v17, %v1354_v18 }
 0x227   :  { %v952_v23 = vpop.f32.mrf.mxu2 }
 0x228   :  { %v953_v24 = vadd.f32 %v952_v23, %v4499_v55  ;;  %v1121_v25 = vpop.f32.mrf.mxu3  ;;  %v616_v26 = vpop.f32.mrf.mxu0 }
 0x229   :  { %v1122_v27 = vadd.f32 %v1121_v25, %v4502_v57  ;;  %v617_v28 = vadd.f32 %v616_v26, %v4492_v43  ;;  %v785_v29 = vpop.f32.mrf.mxu1 }
 0x22a   :  { %v1355_v31 = vmax.f32 %v953_v24, 0.0  ;;  %v786_v35 = vadd.f32 %v785_v29, %v4494_v45 }
 0x22b   :  { %v1356_v33 = vmax.f32 %v1122_v27, 0.0  ;;  %v1357_v37 = vmax.f32 %v617_v28, 0.0 }
 0x22c   :  { %v1654_v34 = vadd.f32 %v1653_v30, %v1355_v31  ;;  %v1358_v51 = vmax.f32 %v786_v35, 0.0 }
 0x22d   :  { %v1691_v36 = vadd.f32 %v1690_v32, %v1356_v33  ;;  %v1581_v62 = vadd.f32 %v1580_v19, %v1357_v37 }
 0x22e   :  { %v1618_v1 = vadd.f32 %v1617_v21, %v1358_v51 }
 0x22f   :  { %v954_v46 = vpop.f32.mrf.mxu2 }
 0x230   :  { %v1123_v52 = vpop.f32.mrf.mxu3  ;;  %v619_v53 = vpop.f32.mrf.mxu0  ;;  %v955_v60 = vadd.f32 %v954_v46, %v4499_v55 }
 0x231   :  { %v620_v58 = vadd.f32 %v619_v53, %v4492_v43  ;;  %v788_v59 = vpop.f32.mrf.mxu1  ;;  %v1124_v63 = vadd.f32 %v1123_v52, %v4502_v57 }
 0x232   :  { %v789_v61 = vadd.f32 %v788_v59, %v4494_v45  ;;  %v1359_v6 = vmax.f32 %v955_v60, 0.0 }
 0x233   :  { %v1361_v0 = vmax.f32 %v620_v58, 0.0  ;;  %v1360_v8 = vmax.f32 %v1124_v63, 0.0 }
 0x234   :  { %v1362_v2 = vmax.f32 %v789_v61, 0.0  ;;  %v1655_v18 = vadd.f32 %v1654_v34, %v1359_v6 }
 0x235   :  { %v1582_v5 = vadd.f32 %v1581_v62, %v1361_v0  ;;  %v1692_v21 = vadd.f32 %v1691_v36, %v1360_v8 }
 0x236   :  { %v1619_v7 = vadd.f32 %v1618_v1, %v1362_v2 }
 0x237   :  { %v957_v9 = vpop.f32.mrf.mxu2 }
 0x238   :  { %v958_v10 = vadd.f32 %v957_v9, %v4499_v55  ;;  %v1126_v11 = vpop.f32.mrf.mxu3  ;;  %v621_v12 = vpop.f32.mrf.mxu0 }
 0x239   :  { %v1127_v13 = vadd.f32 %v1126_v11, %v4502_v57  ;;  %v622_v16 = vadd.f32 %v621_v12, %v4492_v43  ;;  %v790_v17 = vpop.f32.mrf.mxu1 }
 0x23a   :  { %v1363_v19 = vmax.f32 %v958_v10, 0.0  ;;  %v791_v20 = vadd.f32 %v790_v17, %v4494_v45  ;;  %v3595_v17 = vld [vmem:[%s5883_s3 + $0x200] sm:$0xf] }
 0x23b   :  { %v1364_v22 = vmax.f32 %v1127_v13, 0.0  ;;  %v1365_v23 = vmax.f32 %v622_v16, 0.0  ;;  %v1448_v13 = vrot.slane %v4767_v3, 4  ;;  %v1485_v16 = vrot.slane %v4769_v4, 4 }
 0x23c   :  { %v1656_v24 = vadd.f32 %v1655_v18, %v1363_v19  ;;  %v1366_v25 = vmax.f32 %v791_v20, 0.0  ;;  %v4107_v18 = vld [vmem:[%s5883_s3 + $0x20c] sm:$0xf0]  ;;  %v3339_v20 = vld [vmem:[%s5883_s3] sm:$0xf] }
 0x23d   :  { %v1693_v26 = vadd.f32 %v1692_v21, %v1364_v22  ;;  %v1583_v27 = vadd.f32 %v1582_v5, %v1365_v23  ;;  %v3596_v19 = vor.u32 %v4107_v18, %v3595_v17  ;;  %v4043_v21 = vld [vmem:[%s5883_s3 + $0xc] sm:$0xf0]  ;;  %v3723_v22 = vld [vmem:[%s5883_s3 + $0x300] sm:$0xf] }
 0x23e   :  { %v1620_v28 = vadd.f32 %v1619_v7, %v1366_v25  ;;  %v4139_v25 = vld [vmem:[%s5883_s3 + $0x30c] sm:$0xf0] }
 0x23f   :  { %v959_v29 = vpop.f32.mrf.mxu2  ;;  %2569 = vmatpush.bf16.msrb.mxu2 %v3596_v19 }
 0x240   :  { %v960_v30 = vadd.f32 %v959_v29, %v4499_v55  ;;  %v1128_v31 = vpop.f32.mrf.mxu3  ;;  %v624_v32 = vpop.f32.mrf.mxu0 }
 0x241   :  { %v1129_v33 = vadd.f32 %v1128_v31, %v4502_v57  ;;  %v625_v34 = vadd.f32 %v624_v32, %v4492_v43  ;;  %v793_v35 = vpop.f32.mrf.mxu1  ;;  %v1449_v32 = vadd.f32 %v1448_v13, %v4767_v3  ;;  %v4069_v3 = vld [vmem:[%s5883_s3 + $0xe4] sm:$0xf] }
 0x242   :  { %v1367_v37 = vmax.f32 %v960_v30, 0.0  ;;  %v794_v36 = vadd.f32 %v793_v35, %v4494_v45  ;;  %v3724_v30 = vor.u32 %v4139_v25, %v3723_v22  ;;  %v4097_v25 = vld [vmem:[%s5883_s3 + $0x1c4] sm:$0xf] }
 0x243   :  { %v1368_v38 = vmax.f32 %v1129_v33, 0.0  ;;  %v1369_v39 = vmax.f32 %v625_v34, 0.0  ;;  %v1486_v33 = vadd.f32 %v1485_v16, %v4769_v4  ;;  %v3453_v4 = vld [vmem:[%s5883_s3 + $0xf0] sm:$0xf0] }
 0x244   :  { %v1657_v40 = vadd.f32 %v1656_v24, %v1367_v37  ;;  %v1370_v41 = vmax.f32 %v794_v36, 0.0  ;;  %v3340_v24 = vor.u32 %v4043_v21, %v3339_v20  ;;  %2582 = vmatpush.bf16.msrb.mxu3 %v3724_v30  ;;  %v1450_v36 = vrot.slane %v1449_v32, 2  ;;  %v3437_v21 = vld [vmem:[%s5883_s3 + $0xd0] sm:$0xf0] }
 0x245   :  { %v1694_v42 = vadd.f32 %v1693_v26, %v1368_v38  ;;  %v4955_v44 = vadd.f32 %v1583_v27, %v1369_v39  ;;  %v3467_v26 = vld [vmem:[%s5883_s3 + $0x100] sm:$0xf]  ;;  %v4075_v27 = vld [vmem:[%s5883_s3 + $0x10c] sm:$0xf0]  ;;  %v1487_v38 = vrot.slane %v1486_v33, 2 }
 0x246   :  { %v4957_v46 = vadd.f32 %v1620_v28, %v1370_v41  ;;  %v3468_v31 = vor.u32 %v4075_v27, %v3467_v26  ;;  %2543 = vmatpush.bf16.msrb.mxu0 %v3340_v24  ;;  %v4101_v41 = vld [vmem:[%s5883_s3 + $0x1e4] sm:$0xf]  ;;  %v5051_v18 = vadd.f32 %v1450_v36, %v1449_v32  ;;  %v3565_v26 = vld [vmem:[%s5883_s3 + $0x1d0] sm:$0xf0] }
 0x247   :  { %v962_v47 = vpop.f32.mrf.mxu2  ;;  %v5053_v19 = vadd.f32 %v1487_v38, %v1486_v33  ;;  %v3709_v32 = vld [vmem:[%s5883_s3 + $0x2f0] sm:$0xf0] }
 0x248   :  { %v963_v48 = vadd.f32 %v962_v47, %v4499_v55  ;;  %v1131_v49 = vpop.f32.mrf.mxu3  ;;  %v626_v50 = vpop.f32.mrf.mxu0  ;;  %2556 = vmatpush.bf16.msrb.mxu1 %v3468_v31  ;;  %v3568_v31 = vor.u32 %v4097_v25, %v3565_v26 }
 0x249   :  { %v1132_v51 = vadd.f32 %v1131_v49, %v4502_v57  ;;  %v795_v52 = vpop.f32.mrf.mxu1  ;;  %v627_v35 = vadd.f32 %v626_v50, %v4492_v43  ;;  %v3581_v49 = vld [vmem:[%s5883_s3 + $0x1f0] sm:$0xf0] }
 0x24a   :  { %v1371_v53 = vmax.f32 %v963_v48, 0.0  ;;  %v796_v37 = vadd.f32 %v795_v52, %v4494_v45  ;;  %v3456_v48 = vor.u32 %v4069_v3, %v3453_v4  ;;  %v4061_v3 = vld [vmem:[%s5883_s3 + $0xa4] sm:$0xf]  ;;  %v3421_v4 = vld [vmem:[%s5883_s3 + $0xb0] sm:$0xf0] }
 0x24b   :  { %v1372_v54 = vmax.f32 %v1132_v51, 0.0  ;;  %v1373_v50 = vmax.f32 %v627_v35, 0.0 }
 0x24c   :  { %v4961_v56 = vadd.f32 %v1657_v40, %v1371_v53  ;;  %v1374_v51 = vmax.f32 %v796_v37, 0.0  ;;  %2588 = vmatpush.bf16.msra.mxu0 %v3456_v48  ;;  %v3424_v48 = vor.u32 %v4061_v3, %v3421_v4  ;;  %v4157_v3 = vld [vmem:[%s5883_s3 + $0x3a4] sm:$0xf]  ;;  %v3805_v4 = vld [vmem:[%s5883_s3 + $0x3b0] sm:$0xf0] }
 0x24d   :  { %v4963_v58 = vadd.f32 %v1694_v42, %v1372_v54  ;;  %v1522_v42 = vrot.slane %v4776_v14, 4  ;;  %v1585_v27 = vadd.f32 %v4955_v44, %v1373_v50  ;;  %v4165_v44 = vld [vmem:[%s5883_s3 + $0x3e4] sm:$0xf] }
 0x24f   :  { %v964_v59 = vpop.f32.mrf.mxu2 }
 0x250   :  { %v1133_v60 = vpop.f32.mrf.mxu3  ;;  %v629_v61 = vpop.f32.mrf.mxu0  ;;  %v965_v39 = vadd.f32 %v964_v59, %v4499_v55  ;;  %v3584_v59 = vor.u32 %v4101_v41, %v3581_v49  ;;  %v3549_v49 = vld [vmem:[%s5883_s3 + $0x1b0] sm:$0xf0] }
 0x251   :  { %v798_v62 = vpop.f32.mrf.mxu1  ;;  %v1134_v40 = vadd.f32 %v1133_v60, %v4502_v57  ;;  %v630_v52 = vadd.f32 %v629_v61, %v4492_v43  ;;  %v4065_v61 = vld [vmem:[%s5883_s3 + $0xc4] sm:$0xf] }
 0x252   :  { %v1375_v60 = vmax.f32 %v965_v39, 0.0  ;;  %v799_v13 = vadd.f32 %v798_v62, %v4494_v45  ;;  %2601 = vmatpush.bf16.msra.mxu1 %v3584_v59  ;;  %v5062_v62 = vadd.f32 %v1522_v42, %v4776_v14  ;;  %v3440_v24 = vor.u32 %v4065_v61, %v3437_v21 }
 0x253   :  { %v1376_v20 = vmax.f32 %v1134_v40, 0.0  ;;  %v1622_v14 = vadd.f32 %v4957_v46, %v1374_v51  ;;  %v1377_v30 = vmax.f32 %v630_v52, 0.0  ;;  %v3837_v46 = vld [vmem:[%s5883_s3 + $0x3f0] sm:$0xf0] }
 0x254   :  { %v1659_v33 = vadd.f32 %v4961_v56, %v1375_v60  ;;  %v1378_v35 = vmax.f32 %v799_v13, 0.0  ;;  %2589 = vmatpush.bf16.msra.mxu0 %v3440_v24  ;;  %v3840_v40 = vor.u32 %v4165_v44, %v3837_v46  ;;  %v4129_v60 = vld [vmem:[%s5883_s3 + $0x2c4] sm:$0xf]  ;;  %v3693_v13 = vld [vmem:[%s5883_s3 + $0x2d0] sm:$0xf0] }
 0x255   :  { %v1696_v38 = vadd.f32 %v4963_v58, %v1376_v20  ;;  %v4093_v58 = vld [vmem:[%s5883_s3 + $0x1a4] sm:$0xf]  ;;  %v1586_v50 = vadd.f32 %v1585_v27, %v1377_v30  ;;  %v3696_v21 = vor.u32 %v4129_v60, %v3693_v13  ;;  %v3677_v46 = vld [vmem:[%s5883_s3 + $0x2b0] sm:$0xf0] }
 0x256   :  { %2602 = vmatpush.bf16.msra.mxu1 %v3568_v31  ;;  %2627 = vmatpush.bf16.msra.mxu3 %v3840_v40  ;;  %v3517_v60 = vld [vmem:[%s5883_s3 + $0x170] sm:$0xf0] }
 0x257   :  { %v967_v63 = vpop.f32.mrf.mxu2 }
 0x258   :  { %v4965_v0 = vpop.f32.mrf.mxu3  ;;  %v4967_v1 = vpop.f32.mrf.mxu0  ;;  %v968_v16 = vadd.f32 %v967_v63, %v4499_v55  ;;  %v1559_v63 = vrot.slane %v4778_v15, 4  ;;  %2590 = vmatpush.bf16.msra.mxu0 %v3424_v48  ;;  %v3389_v48 = vld [vmem:[%s5883_s3 + $0x70] sm:$0xf0] }
 0x259   :  { %v4969_v2 = vpop.f32.mrf.mxu1  ;;  %v5067_v22 = vadd.f32 %v4965_v0, %v4502_v57  ;;  %v4133_v0 = vld [vmem:[%s5883_s3 + $0x2e4] sm:$0xf]  ;;  %v632_v39 = vadd.f32 %v4967_v1, %v4492_v43 }
 0x25a   :  { %v1379_v37 = vmax.f32 %v968_v16, 0.0  ;;  %v3712_v36 = vor.u32 %v4133_v0, %v3709_v32  ;;  %v801_v56 = vadd.f32 %v4969_v2, %v4494_v45  ;;  %v4089_v32 = vld [vmem:[%s5883_s3 + $0x184] sm:$0xf] }
 0x25b   :  { %v1380_v41 = vmax.f32 %v5067_v22, 0.0  ;;  %v3821_v22 = vld [vmem:[%s5883_s3 + $0x3d0] sm:$0xf0]  ;;  %v1381_v25 = vmax.f32 %v632_v39, 0.0 }
 0x25c   :  { %2614 = vmatpush.bf16.msra.mxu2 %v3712_v36  ;;  %v1660_v24 = vadd.f32 %v1659_v33, %v1379_v37  ;;  %v1382_v26 = vmax.f32 %v801_v56, 0.0  ;;  %v3533_v33 = vld [vmem:[%s5883_s3 + $0x190] sm:$0xf0] }
 0x25d   :  { %v3536_v44 = vor.u32 %v4089_v32, %v3533_v33  ;;  %v4049_v32 = vld [vmem:[%s5883_s3 + $0x44] sm:$0xf] }
 0x25f   :  { %v4971_v5 = vpop.f32.mrf.mxu2 }
 0x260   :  { %v4973_v6 = vpop.f32.mrf.mxu3  ;;  %v4975_v7 = vpop.f32.mrf.mxu0  ;;  %v970_v1 = vadd.f32 %v4971_v5, %v4499_v55  ;;  %2615 = vmatpush.bf16.msra.mxu2 %v3696_v21 }
 0x261   :  { %v4977_v8 = vpop.f32.mrf.mxu1  ;;  %v1139_v2 = vadd.f32 %v4973_v6, %v4502_v57  ;;  %v635_v51 = vadd.f32 %v4975_v7, %v4492_v43  ;;  %v3552_v6 = vor.u32 %v4093_v58, %v3549_v49  ;;  %v4161_v7 = vld [vmem:[%s5883_s3 + $0x3c4] sm:$0xf]  ;;  %v1587_v58 = vadd.f32 %v1586_v50, %v1381_v25 }
 0x262   :  { %v5118_v52 = vadd.f32 %v4977_v8, %v4494_v45  ;;  %v1623_v8 = vadd.f32 %v1622_v14, %v1378_v35  ;;  %v3824_v27 = vor.u32 %v4161_v7, %v3821_v22  ;;  %v1383_v14 = vmax.f32 %v970_v1, 0.0  ;;  %v4085_v49 = vld [vmem:[%s5883_s3 + $0x164] sm:$0xf] }
 0x263   :  { %2603 = vmatpush.bf16.msra.mxu1 %v3552_v6  ;;  %v1384_v30 = vmax.f32 %v1139_v2, 0.0  ;;  %v1697_v35 = vadd.f32 %v1696_v38, %v1380_v41  ;;  %v1385_v37 = vmax.f32 %v635_v51, 0.0  ;;  %v3808_v2 = vor.u32 %v4157_v3, %v3805_v4  ;;  %v4121_v22 = vld [vmem:[%s5883_s3 + $0x284] sm:$0xf] }
 0x264   :  { %v1386_v36 = vmax.f32 %v5118_v52, 0.0  ;;  %2628 = vmatpush.bf16.msra.mxu3 %v3824_v27  ;;  %v1624_v41 = vadd.f32 %v1623_v8, %v1382_v26  ;;  %v1661_v51 = vadd.f32 %v1660_v24, %v1383_v14  ;;  %v3520_v21 = vor.u32 %v4085_v49, %v3517_v60  ;;  %v3661_v24 = vld [vmem:[%s5883_s3 + $0x290] sm:$0xf0] }
 0x265   :  { %v1698_v50 = vadd.f32 %v1697_v35, %v1384_v30  ;;  %v1588_v13 = vadd.f32 %v1587_v58, %v1385_v37  ;;  %v4149_v58 = vld [vmem:[%s5883_s3 + $0x364] sm:$0xf]  ;;  %v3357_v49 = vld [vmem:[%s5883_s3 + $0x30] sm:$0xf0] }
 0x266   :  { %v1625_v25 = vadd.f32 %v1624_v41, %v1386_v36  ;;  %v3773_v41 = vld [vmem:[%s5883_s3 + $0x370] sm:$0xf0] }
 0x267   :  { %v4979_v9 = vpop.f32.mrf.mxu2  ;;  %2604 = vmatpush.bf16.msra.mxu1 %v3536_v44  ;;  %v4081_v44 = vld [vmem:[%s5883_s3 + $0x144] sm:$0xf]  ;;  %v3485_v60 = vld [vmem:[%s5883_s3 + $0x130] sm:$0xf0] }
 0x268   :  { %v4981_v10 = vpop.f32.mrf.mxu3  ;;  %v4983_v11 = vpop.f32.mrf.mxu0  ;;  %v5135_v16 = vadd.f32 %v4979_v9, %v4499_v55  ;;  %v4057_v9 = vld [vmem:[%s5883_s3 + $0x84] sm:$0xf]  ;;  %2629 = vmatpush.bf16.msra.mxu3 %v3808_v2 }
 0x269   :  { %v4985_v12 = vpop.f32.mrf.mxu1  ;;  %v5139_v20 = vadd.f32 %v4981_v10, %v4502_v57  ;;  %v3405_v10 = vld [vmem:[%s5883_s3 + $0x90] sm:$0xf0]  ;;  %v5154_v31 = vadd.f32 %v4983_v11, %v4492_v43  ;;  %v4125_v11 = vld [vmem:[%s5883_s3 + $0x2a4] sm:$0xf] }
 0x26a   :  { %v3408_v0 = vor.u32 %v4057_v9, %v3405_v10  ;;  %v1387_v39 = vmax.f32 %v5135_v16, 0.0  ;;  %v806_v38 = vadd.f32 %v4985_v12, %v4494_v45  ;;  %v3680_v40 = vor.u32 %v4125_v11, %v3677_v46  ;;  %v4053_v12 = vld [vmem:[%s5883_s3 + $0x64] sm:$0xf]  ;;  %v3789_v10 = vld [vmem:[%s5883_s3 + $0x390] sm:$0xf0] }
 0x26b   :  { %v1388_v56 = vmax.f32 %v5139_v20, 0.0  ;;  %v1389_v52 = vmax.f32 %v5154_v31, 0.0  ;;  %v3664_v9 = vor.u32 %v4121_v22, %v3661_v24  ;;  %2605 = vmatpush.bf16.msra.mxu1 %v3520_v21  ;;  %v3501_v11 = vld [vmem:[%s5883_s3 + $0x150] sm:$0xf0] }
 0x26c   :  { %2591 = vmatpush.bf16.msra.mxu0 %v3408_v0  ;;  %2616 = vmatpush.bf16.msra.mxu2 %v3680_v40  ;;  %v1390_v26 = vmax.f32 %v806_v38, 0.0  ;;  %v1662_v14 = vadd.f32 %v1661_v51, %v1387_v39  ;;  %v4077_v51 = vld [vmem:[%s5883_s3 + $0x124] sm:$0xf] }
 0x26d   :  { %v1699_v30 = vadd.f32 %v1698_v50, %v1388_v56  ;;  %v1589_v46 = vadd.f32 %v1588_v13, %v1389_v52  ;;  %v3504_v56 = vor.u32 %v4081_v44, %v3501_v11  ;;  %v3488_v24 = vor.u32 %v4077_v51, %v3485_v60  ;;  %v3469_v11 = vld [vmem:[%s5883_s3 + $0x110] sm:$0xf0]  ;;  %v4105_v60 = vld [vmem:[%s5883_s3 + $0x204] sm:$0xf] }
 0x26e   :  { %v1626_v38 = vadd.f32 %v1625_v25, %v1390_v26  ;;  %v3629_v25 = vld [vmem:[%s5883_s3 + $0x250] sm:$0xf0]  ;;  %v4145_v26 = vld [vmem:[%s5883_s3 + $0x344] sm:$0xf] }
 0x26f   :  { %v5004_v23 = vpop.f32.mrf.mxu2  ;;  %2606 = vmatpush.bf16.msra.mxu1 %v3504_v56 }
 0x270   :  { %v5015_v28 = vpop.f32.mrf.mxu3  ;;  %v5017_v29 = vpop.f32.mrf.mxu0  ;;  %v975_v1 = vadd.f32 %v5004_v23, %v4499_v55  ;;  %v3392_v23 = vor.u32 %v4053_v12, %v3389_v48  ;;  %2617 = vmatpush.bf16.msra.mxu2 %v3664_v9  ;;  %v4045_v48 = vld [vmem:[%s5883_s3 + $0x24] sm:$0xf] }
 0x271   :  { %v5021_v34 = vpop.f32.mrf.mxu1  ;;  %v640_v7 = vadd.f32 %v5017_v29, %v4492_v43  ;;  %v4153_v29 = vld [vmem:[%s5883_s3 + $0x384] sm:$0xf] }
 0x272   :  { %v809_v8 = vadd.f32 %v5021_v34, %v4494_v45  ;;  %v5213_v34 = vadd.f32 %v5015_v28, %v4502_v57  ;;  %2592 = vmatpush.bf16.msra.mxu0 %v3392_v23  ;;  %v1391_v31 = vmax.f32 %v975_v1, 0.0  ;;  %v3792_v0 = vor.u32 %v4153_v29, %v3789_v10  ;;  %v3373_v28 = vld [vmem:[%s5883_s3 + $0x50] sm:$0xf0]  ;;  %v4113_v29 = vld [vmem:[%s5883_s3 + $0x244] sm:$0xf] }
 0x273   :  { %v3376_v36 = vor.u32 %v4049_v32, %v3373_v28  ;;  %v1393_v39 = vmax.f32 %v640_v7, 0.0  ;;  %2607 = vmatpush.bf16.msra.mxu1 %v3488_v24 }
 0x274   :  { %2630 = vmatpush.bf16.msra.mxu3 %v3792_v0  ;;  %v1392_v40 = vmax.f32 %v5213_v34, 0.0  ;;  %v1663_v1 = vadd.f32 %v1662_v14, %v1391_v31  ;;  %v3632_v14 = vor.u32 %v4113_v29, %v3629_v25  ;;  %v3757_v31 = vld [vmem:[%s5883_s3 + $0x350] sm:$0xf0] }
 0x275   :  { %v1590_v13 = vadd.f32 %v1589_v46, %v1393_v39  ;;  %v3725_v29 = vld [vmem:[%s5883_s3 + $0x310] sm:$0xf0] }
 0x276   :  { %2593 = vmatpush.bf16.msra.mxu0 %v3376_v36  ;;  %v1700_v0 = vadd.f32 %v1699_v30, %v1392_v40  ;;  %v4073_v30 = vld [vmem:[%s5883_s3 + $0x104] sm:$0xf] }
 0x277   :  { %v5037_v47 = vpop.f32.mrf.mxu2  ;;  %v3472_v56 = vor.u32 %v4073_v30, %v3469_v11 }
 0x278   :  { %v5043_v53 = vpop.f32.mrf.mxu3  ;;  %v5045_v54 = vpop.f32.mrf.mxu0  ;;  %v5226_v33 = vadd.f32 %v5037_v47, %v4499_v55  ;;  %v1394_v47 = vmax.f32 %v809_v8, 0.0 }
 0x279   :  { %v5049_v17 = vpop.f32.mrf.mxu1  ;;  %v642_v35 = vadd.f32 %v5045_v54, %v4492_v43  ;;  %v4117_v54 = vld [vmem:[%s5883_s3 + $0x264] sm:$0xf]  ;;  %v5247_v3 = vadd.f32 %v5043_v53, %v4502_v57  ;;  %v3776_v53 = vor.u32 %v4149_v58, %v3773_v41  ;;  %2608 = vmatpush.bf16.msra.mxu1 %v3472_v56 }
 0x27a   :  { %v811_v37 = vadd.f32 %v5049_v17, %v4494_v45  ;;  %v3645_v17 = vld [vmem:[%s5883_s3 + $0x270] sm:$0xf0]  ;;  %v1395_v50 = vmax.f32 %v5226_v33, 0.0  ;;  %v1627_v7 = vadd.f32 %v1626_v38, %v1394_v47  ;;  %v3760_v33 = vor.u32 %v4145_v26, %v3757_v31 }
 0x27b   :  { %v3648_v4 = vor.u32 %v4117_v54, %v3645_v17  ;;  %2631 = vmatpush.bf16.msra.mxu3 %v3776_v53  ;;  %v1396_v34 = vmax.f32 %v5247_v3, 0.0  ;;  %v5310_v54 = vadd.f32 %v1559_v63, %v4778_v15  ;;  %v3613_v15 = vld [vmem:[%s5883_s3 + $0x230] sm:$0xf0]  ;;  %v4141_v63 = vld [vmem:[%s5883_s3 + $0x324] sm:$0xf] }
 0x27c   :  { %v1398_v52 = vmax.f32 %v811_v37, 0.0  ;;  %v1664_v3 = vadd.f32 %v1663_v1, %v1395_v50 }
 0x27d   :  { %2618 = vmatpush.bf16.msra.mxu2 %v3648_v4  ;;  %v1701_v4 = vadd.f32 %v1700_v0, %v1396_v34 }
 0x27e   :  { %v1628_v37 = vadd.f32 %v1627_v7, %v1398_v52 }
 0x27f   :  { %v5109_v42 = vpop.f32.mrf.mxu2  ;;  %2632 = vmatpush.bf16.msra.mxu3 %v3760_v33 }
 0x280   :  { %v5120_v5 = vpop.f32.mrf.mxu3  ;;  %v5122_v59 = vpop.f32.mrf.mxu0 }
 0x281   :  { %v5141_v61 = vpop.f32.mrf.mxu1  ;;  %v645_v2 = vadd.f32 %v5122_v59, %v4492_v43  ;;  %v1397_v59 = vmax.f32 %v642_v35, 0.0  ;;  %v4041_v35 = vld [vmem:[%s5883_s3 + $0x4] sm:$0xf]  ;;  %2619 = vmatpush.bf16.msra.mxu2 %v3632_v14  ;;  %v1149_v46 = vadd.f32 %v5120_v5, %v4502_v57 }
 0x282   :  { %v814_v12 = vadd.f32 %v5141_v61, %v4494_v45  ;;  %v3360_v61 = vor.u32 %v4045_v48, %v3357_v49  ;;  %v4109_v5 = vld [vmem:[%s5883_s3 + $0x224] sm:$0xf] }
 0x283   :  { %v1401_v32 = vmax.f32 %v645_v2, 0.0  ;;  %v3616_v53 = vor.u32 %v4109_v5, %v3613_v15  ;;  %v1400_v49 = vmax.f32 %v1149_v46, 0.0 }
 0x284   :  { %2594 = vmatpush.bf16.msra.mxu0 %v3360_v61  ;;  %v1402_v28 = vmax.f32 %v814_v12, 0.0 }
 0x285   :  { %2620 = vmatpush.bf16.msra.mxu2 %v3616_v53  ;;  %v1702_v33 = vadd.f32 %v1701_v4, %v1400_v49 }
 0x286   :  { %v1629_v41 = vadd.f32 %v1628_v37, %v1402_v28  ;;  %v1524_v28 = vrot.slane %v5062_v62, 2 }
 0x287   :  { %v5191_v6 = vpop.f32.mrf.mxu2 }
 0x288   :  { %v5200_v16 = vpop.f32.mrf.mxu3  ;;  %v646_v20 = vpop.f32.mrf.mxu0  ;;  %v983_v38 = vadd.f32 %v5191_v6, %v4499_v55  ;;  %v3741_v6 = vld [vmem:[%s5883_s3 + $0x330] sm:$0xf0]  ;;  %v1525_v5 = vadd.f32 %v1524_v28, %v5062_v62 }
 0x289   :  { %v815_v27 = vpop.f32.mrf.mxu1  ;;  %v647_v8 = vadd.f32 %v646_v20, %v4492_v43  ;;  %v5285_v20 = vadd.f32 %v5109_v42, %v4499_v55  ;;  %v3341_v42 = vld [vmem:[%s5883_s3 + $0x10] sm:$0xf0]  ;;  %v1152_v2 = vadd.f32 %v5200_v16, %v4502_v57  ;;  %v3744_v48 = vor.u32 %v4141_v63, %v3741_v6 }
 0x28a   :  { %v816_v9 = vadd.f32 %v815_v27, %v4494_v45  ;;  %v1591_v27 = vadd.f32 %v1590_v13, %v1397_v59  ;;  %v3344_v44 = vor.u32 %v4041_v35, %v3341_v42  ;;  %v3597_v13 = vld [vmem:[%s5883_s3 + $0x210] sm:$0xf0]  ;;  %v1403_v16 = vmax.f32 %v983_v38, 0.0 }
 0x28b   :  { %v1405_v39 = vmax.f32 %v647_v8, 0.0  ;;  %v1399_v17 = vmax.f32 %v5285_v20, 0.0  ;;  %2633 = vmatpush.bf16.msra.mxu3 %v3744_v48  ;;  %v3600_v34 = vor.u32 %v4105_v60, %v3597_v13 }
 0x28c   :  { %v1406_v40 = vmax.f32 %v816_v9, 0.0  ;;  %2595 = vmatpush.bf16.msra.mxu0 %v3344_v44  ;;  %v1592_v58 = vadd.f32 %v1591_v27, %v1401_v32  ;;  %v1561_v44 = vrot.slane %v5310_v54, 2 }
 0x28d   :  { %v1665_v14 = vadd.f32 %v1664_v3, %v1399_v17  ;;  %2621 = vmatpush.bf16.msra.mxu2 %v3600_v34 }
 0x28e   :  { %v1593_v51 = vadd.f32 %v1592_v58, %v1405_v39  ;;  %v1630_v7 = vadd.f32 %v1629_v41, %v1406_v40 }
 0x28f   :  { %v984_v23 = vpop.f32.mrf.mxu2  ;;  %v1666_v27 = vadd.f32 %v1665_v14, %v1403_v16 }
 0x290   :  { %v1153_v21 = vpop.f32.mrf.mxu3  ;;  %v649_v22 = vpop.f32.mrf.mxu0  ;;  %v985_v50 = vadd.f32 %v984_v23, %v4499_v55  ;;  %v4137_v23 = vld [vmem:[%s5883_s3 + $0x304] sm:$0xf] }
 0x291   :  { %v818_v10 = vpop.f32.mrf.mxu1  ;;  %v650_v36 = vadd.f32 %v649_v22, %v4492_v43  ;;  %v1154_v8 = vadd.f32 %v1153_v21, %v4502_v57  ;;  %v3728_v20 = vor.u32 %v4137_v23, %v3725_v29  ;;  %v1404_v21 = vmax.f32 %v1152_v2, 0.0 }
 0x292   :  { %v819_v47 = vadd.f32 %v818_v10, %v4494_v45  ;;  %v1407_v31 = vmax.f32 %v985_v50, 0.0  ;;  %v1562_v2 = vadd.f32 %v1561_v44, %v5310_v54 }
 0x293   :  { %v1409_v1 = vmax.f32 %v650_v36, 0.0  ;;  %v1408_v35 = vmax.f32 %v1154_v8, 0.0  ;;  %2634 = vmatpush.bf16.msra.mxu3 %v3728_v20  ;;  %v1703_v30 = vadd.f32 %v1702_v33, %v1404_v21 }
 0x294   :  { %v1410_v59 = vmax.f32 %v819_v47, 0.0  ;;  %v1489_v47 = vrot.slane %v5053_v19, 1  ;;  %v1667_v56 = vadd.f32 %v1666_v27, %v1407_v31  ;;  %v4104_v27 = vld [vmem:[%s5883_s3 + $0x1f4] sm:$0xf0] }
 0x295   :  { %v1594_v9 = vadd.f32 %v1593_v51, %v1409_v1  ;;  %v1704_v3 = vadd.f32 %v1703_v30, %v1408_v35  ;;  %v1526_v51 = vrot.slane %v1525_v5, 1 }
 0x296   :  { %v1631_v0 = vadd.f32 %v1630_v7, %v1410_v59  ;;  %v1490_v48 = vadd.f32 %v1489_v47, %v5053_v19 }
 0x297   :  { %v987_v12 = vpop.f32.mrf.mxu2  ;;  %v1527_v54 = vadd.f32 %v1526_v51, %v1525_v5  ;;  %v4068_v5 = vld [vmem:[%s5883_s3 + $0xd4] sm:$0xf0] }
 0x298   :  { %v1156_v52 = vpop.f32.mrf.mxu3  ;;  %v651_v61 = vpop.f32.mrf.mxu0  ;;  %v988_v25 = vadd.f32 %v987_v12, %v4499_v55  ;;  %v1714_v13 = vmul.f32 0.00390625, %v1490_v48  ;;  %v4168_v51 = vld [vmem:[%s5883_s3 + $0x3f4] sm:$0xf0] }
 0x299   :  { %v652_v22 = vadd.f32 %v651_v61, %v4492_v43  ;;  %v820_v24 = vpop.f32.mrf.mxu1  ;;  %v1157_v43 = vadd.f32 %v1156_v52, %v4502_v57  ;;  %v1563_v61 = vrot.slane %v1562_v2, 1 }
 0x29a   :  { %v821_v26 = vadd.f32 %v820_v24, %v4494_v45  ;;  %v1452_v45 = vrot.slane %v5051_v18, 1  ;;  %v1411_v37 = vmax.f32 %v988_v25, 0.0  ;;  %v1722_v34 = vpack.c.bf16 %v1714_v13, %v1714_v13 }
 0x29b   :  { %v1413_v10 = vmax.f32 %v652_v22, 0.0  ;;  %v1412_v11 = vmax.f32 %v1157_v43, 0.0  ;;  %v1564_v29 = vadd.f32 %v1563_v61, %v1562_v2  ;;  %v4096_v61 = vld [vmem:[%s5883_s3 + $0x1b4] sm:$0xf0] }
 0x29c   :  { %v1414_v32 = vmax.f32 %v821_v26, 0.0  ;;  %v1453_v41 = vadd.f32 %v1452_v45, %v5051_v18  ;;  %v1668_v15 = vadd.f32 %v1667_v56, %v1411_v37  ;;  %v3587_v45 = vld [vmem:[%s5883_s3 + $0x1e8] sm:$0xf]  ;;  %v1876_v37 = vunpack.c.l.b16 %v1722_v34 }
 0x29d   :  { %v1595_v42 = vadd.f32 %v1594_v9, %v1413_v10  ;;  %v1705_v1 = vadd.f32 %v1704_v3, %v1412_v11  ;;  %v1715_v9 = vmul.f32 0.00390625, %v1527_v54  ;;  %v1716_v33 = vmul.f32 0.00390625, %v1564_v29  ;;  %v4164_v29 = vld [vmem:[%s5883_s3 + $0x3d4] sm:$0xf0]  ;;  %v3539_v34 = vld [vmem:[%s5883_s3 + $0x188] sm:$0xf] }
 0x29e   :  { %v1632_v36 = vadd.f32 %v1631_v0, %v1414_v32  ;;  %v3459_v0 = vld [vmem:[%s5883_s3 + $0xe8] sm:$0xf]  ;;  %v4072_v32 = vld [vmem:[%s5883_s3 + $0xf4] sm:$0xf0] }
 0x29f   :  { %v1596_v46 = vrot.slane %v1595_v42, 4  ;;  %v989_v39 = vpop.f32.mrf.mxu2  ;;  %v1723_v30 = vpack.c.bf16 %v1715_v9, %v1715_v9  ;;  %v1724_v3 = vpack.c.bf16 %v1716_v33, %v1716_v33  ;;  %v4056_v33 = vld [vmem:[%s5883_s3 + $0x74] sm:$0xf0] }
 0x2a0   :  { %v1633_v17 = vrot.slane %v1632_v36, 4  ;;  %v990_v38 = vadd.f32 %v989_v39, %v4499_v55  ;;  %v1158_v40 = vpop.f32.mrf.mxu3  ;;  %v3460_v39 = vor.u32 %v4072_v32, %v3459_v0  ;;  %v3811_v0 = vld [vmem:[%s5883_s3 + $0x3a8] sm:$0xf]  ;;  %v4160_v32 = vld [vmem:[%s5883_s3 + $0x3b4] sm:$0xf0] }
 0x2a1   :  { %v1597_v4 = vadd.f32 %v1596_v46, %v1595_v42  ;;  %v1159_v58 = vadd.f32 %v1158_v40, %v4502_v57  ;;  %v1713_v57 = vmul.f32 0.00390625, %v1453_v41  ;;  %v3443_v40 = vld [vmem:[%s5883_s3 + $0xc8] sm:$0xf]  ;;  %v1877_v48 = vunpack.c.l.b16 %v1723_v30 }
 0x2a2   :  { %v1634_v63 = vadd.f32 %v1633_v17, %v1632_v36  ;;  %v1415_v6 = vmax.f32 %v990_v38, 0.0  ;;  %v3588_v38 = vor.u32 %v4104_v27, %v3587_v45  ;;  %v3571_v41 = vld [vmem:[%s5883_s3 + $0x1c8] sm:$0xf]  ;;  %v3444_v2 = vor.u32 %v4068_v5, %v3443_v40 }
 0x2a3   :  { %v1598_v12 = vrot.slane %v1597_v4, 2  ;;  %v1416_v53 = vmax.f32 %v1159_v58, 0.0  ;;  %v1721_v19 = vpack.c.bf16 %v1713_v57, %v1713_v57  ;;  %v3555_v57 = vld [vmem:[%s5883_s3 + $0x1a8] sm:$0xf]  ;;  %v3812_v27 = vor.u32 %v4160_v32, %v3811_v0  ;;  %v3573_v0 = vld [vmem:[%s5883_s3 + $0x1d8] sm:$0xf0] }
 0x2a4   :  { %v1635_v55 = vrot.slane %v1634_v63, 2  ;;  %v1669_v49 = vadd.f32 %v1668_v15, %v1415_v6  ;;  %v4100_v15 = vld [vmem:[%s5883_s3 + $0x1d4] sm:$0xf0] }
 0x2a5   :  { %v1599_v62 = vadd.f32 %v1598_v12, %v1597_v4  ;;  %v1706_v50 = vadd.f32 %v1705_v1, %v1416_v53  ;;  %v1875_v28 = vunpack.c.l.b16 %v1721_v19  ;;  %v3715_v1 = vld [vmem:[%s5883_s3 + $0x2e8] sm:$0xf]  ;;  %v4136_v12 = vld [vmem:[%s5883_s3 + $0x2f4] sm:$0xf0]  ;;  %v3556_v19 = vor.u32 %v4096_v61, %v3555_v57 }
 0x2a6   :  { %v1636_v59 = vadd.f32 %v1635_v55, %v1634_v63  ;;  %v1670_v52 = vrot.slane %v1669_v49, 4  ;;  %v3843_v53 = vld [vmem:[%s5883_s3 + $0x3e8] sm:$0xf]  ;;  %v4044_v61 = vld [vmem:[%s5883_s3 + $0x14] sm:$0xf0] }
 0x2a7   :  { %v1600_v18 = vrot.slane %v1599_v62, 1  ;;  %v1707_v60 = vrot.slane %v1706_v50, 4  ;;  %v3347_v57 = vld [vmem:[%s5883_s3 + $0x8] sm:$0xf] }
 0x2a8   :  { %v1637_v16 = vrot.slane %v1636_v59, 1  ;;  %v1671_v7 = vadd.f32 %v1670_v52, %v1669_v49  ;;  %v3572_v49 = vor.u32 %v4100_v15, %v3571_v41 }
 0x2a9   :  { %v1601_v8 = vadd.f32 %v1600_v18, %v1599_v62  ;;  %v1708_v22 = vadd.f32 %v1707_v60, %v1706_v50  ;;  %v3427_v62 = vld [vmem:[%s5883_s3 + $0xa8] sm:$0xf]  ;;  %v4064_v50 = vld [vmem:[%s5883_s3 + $0xb4] sm:$0xf0]  ;;  %v3716_v60 = vor.u32 %v4136_v12, %v3715_v1 }
 0x2aa   :  { %v1638_v24 = vadd.f32 %v1637_v16, %v1636_v59  ;;  %v1672_v23 = vrot.slane %v1671_v7, 2  ;;  %v1878_v59 = vunpack.c.l.b16 %v1724_v3  ;;  %v3428_v54 = vor.u32 %v4064_v50, %v3427_v62  ;;  %v3651_v3 = vld [vmem:[%s5883_s3 + $0x268] sm:$0xf]  ;;  %v4048_v1 = vld [vmem:[%s5883_s3 + $0x34] sm:$0xf0] }
 0x2ab   :  { %v1717_v25 = vmul.f32 0.00390625, %v1601_v8  ;;  %v1709_v26 = vrot.slane %v1708_v22, 2  ;;  %v3699_v8 = vld [vmem:[%s5883_s3 + $0x2c8] sm:$0xf] }
 0x2ac   :  { %v1718_v20 = vmul.f32 0.00390625, %v1638_v24  ;;  %v1673_v21 = vadd.f32 %v1672_v23, %v1671_v7  ;;  %v3844_v7 = vor.u32 %v4168_v51, %v3843_v53  ;;  %v3827_v24 = vld [vmem:[%s5883_s3 + $0x3c8] sm:$0xf]  ;;  %v4080_v53 = vld [vmem:[%s5883_s3 + $0x134] sm:$0xf0] }
 0x2ad   :  { %v1725_v43 = vpack.c.bf16 %v1717_v25, %v1717_v25  ;;  %v1710_v10 = vadd.f32 %v1709_v26, %v1708_v22  ;;  %v4132_v22 = vld [vmem:[%s5883_s3 + $0x2d4] sm:$0xf0]  ;;  %v3411_v25 = vld [vmem:[%s5883_s3 + $0x88] sm:$0xf]  ;;  %v3828_v9 = vor.u32 %v4164_v29, %v3827_v24 }
 0x2ae   :  { %v1726_v14 = vpack.c.bf16 %v1718_v20, %v1718_v20  ;;  %v1674_v31 = vrot.slane %v1673_v21, 1  ;;  %v4060_v26 = vld [vmem:[%s5883_s3 + $0x94] sm:$0xf0]  ;;  %v3491_v12 = vld [vmem:[%s5883_s3 + $0x128] sm:$0xf] }
 0x2af   :  { %v1879_v35 = vunpack.c.l.b16 %v1725_v43  ;;  %v1711_v42 = vrot.slane %v1710_v10, 1  ;;  %v4092_v20 = vld [vmem:[%s5883_s3 + $0x194] sm:$0xf0]  ;;  %v3412_v43 = vor.u32 %v4060_v26, %v3411_v25  ;;  %v3763_v62 = vld [vmem:[%s5883_s3 + $0x348] sm:$0xf]  ;;  %v3348_v25 = vor.u32 %v4044_v61, %v3347_v57 }
 0x2b0   :  { %v1880_v36 = vunpack.c.l.b16 %v1726_v14  ;;  %v1675_v44 = vadd.f32 %v1674_v31, %v1673_v21  ;;  %v3700_v21 = vor.u32 %v4132_v22, %v3699_v8  ;;  %v4128_v14 = vld [vmem:[%s5883_s3 + $0x2b4] sm:$0xf0]  ;;  %v3540_v31 = vor.u32 %v4092_v20, %v3539_v34  ;;  %v4102_v8 = vld [vmem:[%s5883_s3 + $0x1ec] sm:$0xf]  ;;  %v3589_v22 = vld [vmem:[%s5883_s3 + $0x1f8] sm:$0xf0] }
 0x2b1   :  { %v1712_v11 = vadd.f32 %v1711_v42, %v1710_v10  ;;  %v1884_v46 = vsel %vm1883_vm0, %v1879_v35, %v1875_v28  ;;  %v3683_v10 = vld [vmem:[%s5883_s3 + $0x2a8] sm:$0xf]  ;;  %v4088_v42 = vld [vmem:[%s5883_s3 + $0x174] sm:$0xf0]  ;;  %v4054_v57 = vld [vmem:[%s5883_s3 + $0x6c] sm:$0xf] }
 0x2b2   :  { %v1719_v47 = vmul.f32 0.00390625, %v1675_v44  ;;  %v5370_v56 = vpack.c.b16 %v1884_v46, %v1884_v46  ;;  %v1885_v17 = vsel %vm1883_vm0, %v1880_v36, %v1876_v37  ;;  %v3395_v28 = vld [vmem:[%s5883_s3 + $0x68] sm:$0xf]  ;;  %v3684_v45 = vor.u32 %v4128_v14, %v3683_v10  ;;  %v4124_v36 = vld [vmem:[%s5883_s3 + $0x294] sm:$0xf0] }
 0x2b3   :  { %v1720_v4 = vmul.f32 0.00390625, %v1712_v11  ;;  %v5379_v58 = vpack.c.b16 %v1885_v17, %v1885_v17  ;;  %v3523_v35 = vld [vmem:[%s5883_s3 + $0x168] sm:$0xf]  ;;  %v3396_v44 = vor.u32 %v4056_v33, %v3395_v28  ;;  %v4156_v46 = vld [vmem:[%s5883_s3 + $0x394] sm:$0xf0] }
 0x2b4   :  { %v1727_v63 = vpack.c.bf16 %v1719_v47, %v1719_v47  ;;  %2544 = vmatmul.bf16.vlgmr.msrb.gmra.mxu0 %v5370_v56  ;;  %v3667_v37 = vld [vmem:[%s5883_s3 + $0x288] sm:$0xf]  ;;  %v3524_v30 = vor.u32 %v4088_v42, %v3523_v35  ;;  %v4052_v47 = vld [vmem:[%s5883_s3 + $0x54] sm:$0xf0]  ;;  %v3445_v14 = vld [vmem:[%s5883_s3 + $0xd8] sm:$0xf0] }
 0x2b5   :  { %v1728_v6 = vpack.c.bf16 %v1720_v4, %v1720_v4  ;;  %2557 = vmatmul.bf16.vlgmr.msrb.gmra.mxu1 %v5379_v58  ;;  %2640 = vmatpush.bf16.msrb.mxu0 %v3460_v39  ;;  %v3795_v11 = vld [vmem:[%s5883_s3 + $0x388] sm:$0xf]  ;;  %v3668_v40 = vor.u32 %v4124_v36, %v3667_v37  ;;  %v4120_v4 = vld [vmem:[%s5883_s3 + $0x274] sm:$0xf0]  ;;  %v3397_v61 = vld [vmem:[%s5883_s3 + $0x78] sm:$0xf0] }
 0x2b6   :  { %v1881_v55 = vunpack.c.l.b16 %v1727_v63  ;;  %2653 = vmatpush.bf16.msrb.mxu1 %v3588_v38  ;;  %v3379_v39 = vld [vmem:[%s5883_s3 + $0x48] sm:$0xf]  ;;  %v4084_v38 = vld [vmem:[%s5883_s3 + $0x154] sm:$0xf0]  ;;  %v3796_v5 = vor.u32 %v4156_v46, %v3795_v11  ;;  %v4062_v11 = vld [vmem:[%s5883_s3 + $0xac] sm:$0xf] }
 0x2b7   :  { %v1882_v52 = vunpack.c.l.b16 %v1728_v6  ;;  %v3507_v17 = vld [vmem:[%s5883_s3 + $0x148] sm:$0xf]  ;;  %v3380_v41 = vor.u32 %v4052_v47, %v3379_v39  ;;  %v4152_v6 = vld [vmem:[%s5883_s3 + $0x374] sm:$0xf0]  ;;  %v3429_v39 = vld [vmem:[%s5883_s3 + $0xb8] sm:$0xf0] }
 0x2b8   :  { %v1886_v18 = vsel %vm1883_vm0, %v1881_v55, %v1877_v48  ;;  %v3508_v15 = vor.u32 %v4084_v38, %v3507_v17  ;;  %v3779_v63 = vld [vmem:[%s5883_s3 + $0x368] sm:$0xf]  ;;  %v3652_v48 = vor.u32 %v4120_v4, %v3651_v3  ;;  %v4116_v51 = vld [vmem:[%s5883_s3 + $0x254] sm:$0xf0]  ;;  %v4094_v47 = vld [vmem:[%s5883_s3 + $0x1ac] sm:$0xf] }
 0x2b9   :  { %2641 = vmatpush.bf16.msrb.mxu0 %v3444_v2  ;;  %v5414_v13 = vpack.c.b16 %v1886_v18, %v1886_v18  ;;  %v1887_v16 = vsel %vm1883_vm0, %v1882_v52, %v1878_v59  ;;  %v3363_v2 = vld [vmem:[%s5883_s3 + $0x28] sm:$0xf]  ;;  %v3780_v55 = vor.u32 %v4152_v6, %v3779_v63  ;;  %v3492_v59 = vor.u32 %v4080_v53, %v3491_v12  ;;  %v4148_v52 = vld [vmem:[%s5883_s3 + $0x354] sm:$0xf0]  ;;  %v3557_v17 = vld [vmem:[%s5883_s3 + $0x1b8] sm:$0xf0] }
 0x2ba   :  { %2654 = vmatpush.bf16.msrb.mxu1 %v3572_v49  ;;  %v5426_v23 = vpack.c.b16 %v1887_v16, %v1887_v16  ;;  %v3635_v49 = vld [vmem:[%s5883_s3 + $0x248] sm:$0xf]  ;;  %v3364_v50 = vor.u32 %v4048_v1, %v3363_v2  ;;  %v4070_v16 = vld [vmem:[%s5883_s3 + $0xec] sm:$0xf]  ;;  %v3764_v24 = vor.u32 %v4148_v52, %v3763_v62  ;;  %v4112_v29 = vld [vmem:[%s5883_s3 + $0x234] sm:$0xf0] }
 0x2bb   :  { %2570 = vmatmul.bf16.vlgmr.msrb.gmra.mxu2 %v5414_v13  ;;  %v3475_v18 = vld [vmem:[%s5883_s3 + $0x108] sm:$0xf]  ;;  %v4144_v20 = vld [vmem:[%s5883_s3 + $0x334] sm:$0xf0]  ;;  %v4130_v3 = vld [vmem:[%s5883_s3 + $0x2cc] sm:$0xf] }
 0x2bc   :  { %2583 = vmatmul.bf16.vlgmr.msrb.gmra.mxu3 %v5426_v23  ;;  %2666 = vmatpush.bf16.msrb.mxu2 %v3716_v60  ;;  %v4076_v60 = vld [vmem:[%s5883_s3 + $0x114] sm:$0xf0]  ;;  %v3747_v34 = vld [vmem:[%s5883_s3 + $0x328] sm:$0xf]  ;;  %v3701_v4 = vld [vmem:[%s5883_s3 + $0x2d8] sm:$0xf0] }
 0x2bd   :  { %2679 = vmatpush.bf16.msrb.mxu3 %v3844_v7  ;;  %2642 = vmatpush.bf16.msrb.mxu0 %v3428_v54  ;;  %v3636_v7 = vor.u32 %v4116_v51, %v3635_v49  ;;  %v3461_v54 = vld [vmem:[%s5883_s3 + $0xf8] sm:$0xf0]  ;;  %v3476_v26 = vor.u32 %v4076_v60, %v3475_v18  ;;  %v3748_v32 = vor.u32 %v4144_v20, %v3747_v34  ;;  %v3603_v28 = vld [vmem:[%s5883_s3 + $0x208] sm:$0xf]  ;;  %v4108_v33 = vld [vmem:[%s5883_s3 + $0x214] sm:$0xf0] }
 0x2be   :  { %2655 = vmatpush.bf16.msrb.mxu1 %v3556_v19  ;;  %v3619_v19 = vld [vmem:[%s5883_s3 + $0x228] sm:$0xf]  ;;  %v4140_v42 = vld [vmem:[%s5883_s3 + $0x314] sm:$0xf0]  ;;  %v3604_v46 = vor.u32 %v4108_v33, %v3603_v28  ;;  %v4162_v63 = vld [vmem:[%s5883_s3 + $0x3cc] sm:$0xf] }
 0x2bf   :  { %v3620_v10 = vor.u32 %v4112_v29, %v3619_v19  ;;  %v3731_v35 = vld [vmem:[%s5883_s3 + $0x308] sm:$0xf]  ;;  %v3829_v6 = vld [vmem:[%s5883_s3 + $0x3d8] sm:$0xf0]  ;;  %v4058_v2 = vld [vmem:[%s5883_s3 + $0x8c] sm:$0xf] }
 0x2c0   :  { %2667 = vmatpush.bf16.msrb.mxu2 %v3700_v21  ;;  %v3464_v21 = vor.u32 %v4070_v16, %v3461_v54  ;;  %v3732_v38 = vor.u32 %v4140_v42, %v3731_v35  ;;  %v3413_v1 = vld [vmem:[%s5883_s3 + $0x98] sm:$0xf0]  ;;  %v4090_v12 = vld [vmem:[%s5883_s3 + $0x18c] sm:$0xf] }
 0x2c1   :  { %2680 = vmatpush.bf16.msrb.mxu3 %v3828_v9  ;;  %2643 = vmatpush.bf16.msrb.mxu0 %v3412_v43  ;;  %v3592_v9 = vor.u32 %v4102_v8, %v3589_v22  ;;  %v4066_v43 = vld [vmem:[%s5883_s3 + $0xcc] sm:$0xf]  ;;  %v3541_v53 = vld [vmem:[%s5883_s3 + $0x198] sm:$0xf0]  ;;  %v3416_v62 = vor.u32 %v4058_v2, %v3413_v1  ;;  %v3400_v22 = vor.u32 %v4054_v57, %v3397_v61 }
 0x2c2   :  { %2656 = vmatpush.bf16.msrb.mxu1 %v3540_v31  ;;  %v4098_v31 = vld [vmem:[%s5883_s3 + $0x1cc] sm:$0xf]  ;;  %v3448_v37 = vor.u32 %v4066_v43, %v3445_v14  ;;  %v3685_v51 = vld [vmem:[%s5883_s3 + $0x2b8] sm:$0xf0] }
 0x2c3   :  { %v3576_v36 = vor.u32 %v4098_v31, %v3573_v0  ;;  %v4126_v49 = vld [vmem:[%s5883_s3 + $0x2ac] sm:$0xf]  ;;  %v3813_v52 = vld [vmem:[%s5883_s3 + $0x3b8] sm:$0xf0] }
 0x2c4   :  { %2668 = vmatpush.bf16.msrb.mxu2 %v3684_v45  ;;  %2596 = vmatmul.bf16.vlgmr.msra.gmra.mxu0 %v5370_v56  ;;  %v4134_v45 = vld [vmem:[%s5883_s3 + $0x2ec] sm:$0xf]  ;;  %v3525_v60 = vld [vmem:[%s5883_s3 + $0x178] sm:$0xf0]  ;;  %v3688_v16 = vor.u32 %v4126_v49, %v3685_v51  ;;  %v4175_v51 = vld [vmem:[%s5885_s5 + $0x30] sm:$0xff] }
 0x2c5   :  { %2681 = vmatpush.bf16.msrb.mxu3 %v3812_v27  ;;  %2609 = vmatmul.bf16.vlgmr.msra.gmra.mxu1 %v5379_v58  ;;  %v3717_v27 = vld [vmem:[%s5883_s3 + $0x2f8] sm:$0xf0]  ;;  %v4086_v18 = vld [vmem:[%s5883_s3 + $0x16c] sm:$0xf] }
 0x2c6   :  { %2644 = vmatpush.bf16.msrb.mxu0 %v3396_v44  ;;  %2657 = vmatpush.bf16.msrb.mxu1 %v3524_v30  ;;  %v4166_v44 = vld [vmem:[%s5883_s3 + $0x3ec] sm:$0xf]  ;;  %v3845_v30 = vld [vmem:[%s5883_s3 + $0x3f8] sm:$0xf0] }
 0x2c7   :  { %v4122_v54 = vld [vmem:[%s5883_s3 + $0x28c] sm:$0xf]  ;;  %v3669_v8 = vld [vmem:[%s5883_s3 + $0x298] sm:$0xf0] }
 0x2c8   :  { %2669 = vmatpush.bf16.msrb.mxu2 %v3668_v40  ;;  %v3720_v40 = vor.u32 %v4134_v45, %v3717_v27  ;;  %v4154_v19 = vld [vmem:[%s5883_s3 + $0x38c] sm:$0xf]  ;;  %v3797_v29 = vld [vmem:[%s5883_s3 + $0x398] sm:$0xf0] }
 0x2c9   :  { %2682 = vmatpush.bf16.msrb.mxu3 %v3796_v5  ;;  %v3848_v5 = vor.u32 %v4166_v44, %v3845_v30  ;;  %v4082_v34 = vld [vmem:[%s5883_s3 + $0x14c] sm:$0xf]  ;;  %v3509_v20 = vld [vmem:[%s5883_s3 + $0x158] sm:$0xf0] }
 0x2ca   :  { %2645 = vmatpush.bf16.msrb.mxu0 %v3380_v41  ;;  %2658 = vmatpush.bf16.msrb.mxu1 %v3508_v15  ;;  %v3432_v41 = vor.u32 %v4062_v11, %v3429_v39  ;;  %v3560_v15 = vor.u32 %v4094_v47, %v3557_v17  ;;  %v4118_v43 = vld [vmem:[%s5883_s3 + $0x26c] sm:$0xf]  ;;  %v3512_v31 = vor.u32 %v4082_v34, %v3509_v20  ;;  %v3365_v33 = vld [vmem:[%s5883_s3 + $0x38] sm:$0xf0]  ;;  %v4189_v34 = vld [vmem:[%s5885_s5 + $0xa0] sm:$0xff] }
 0x2cb   :  { %2622 = vmatmul.bf16.vlgmr.msra.gmra.mxu2 %v5414_v13  ;;  %v4150_v0 = vld [vmem:[%s5883_s3 + $0x36c] sm:$0xf]  ;;  %v3493_v42 = vld [vmem:[%s5883_s3 + $0x138] sm:$0xf0] }
 0x2cc   :  { %2635 = vmatmul.bf16.vlgmr.msra.gmra.mxu3 %v5426_v23  ;;  %2670 = vmatpush.bf16.msrb.mxu2 %v3652_v48  ;;  %v3704_v48 = vor.u32 %v4130_v3, %v3701_v4  ;;  %v4046_v28 = vld [vmem:[%s5883_s3 + $0x2c] sm:$0xf]  ;;  %v3349_v47 = vld [vmem:[%s5883_s3 + $0x18] sm:$0xf0] }
 0x2cd   :  { %2683 = vmatpush.bf16.msrb.mxu3 %v3780_v55  ;;  %v3832_v55 = vor.u32 %v4162_v63, %v3829_v6  ;;  %v4078_v35 = vld [vmem:[%s5883_s3 + $0x12c] sm:$0xf]  ;;  %v3368_v44 = vor.u32 %v4046_v28, %v3365_v33  ;;  %v3621_v4 = vld [vmem:[%s5883_s3 + $0x238] sm:$0xf0] }
 0x2ce   :  { %2646 = vmatpush.bf16.msrb.mxu0 %v3364_v50  ;;  %2659 = vmatpush.bf16.msrb.mxu1 %v3492_v59  ;;  %v3544_v50 = vor.u32 %v4090_v12, %v3541_v53  ;;  %v4158_v59 = vld [vmem:[%s5883_s3 + $0x3ac] sm:$0xf]  ;;  %v3496_v30 = vor.u32 %v4078_v35, %v3493_v42  ;;  %v3749_v6 = vld [vmem:[%s5883_s3 + $0x338] sm:$0xf0] }
 0x2cf   :  { %v4146_v11 = vld [vmem:[%s5883_s3 + $0x34c] sm:$0xf]  ;;  %v4176_v2 = vld [vmem:[%s5885_s5 + $0x38] sm:$0xff] }
 0x2d0   :  { %2671 = vmatpush.bf16.msrb.mxu2 %v3636_v7  ;;  %v3816_v7 = vor.u32 %v4158_v59, %v3813_v52  ;;  %v4042_v39 = vld [vmem:[%s5883_s3 + $0xc] sm:$0xf]  ;;  %v3733_v49 = vld [vmem:[%s5883_s3 + $0x318] sm:$0xf0]  ;;  %v4173_v52 = vld [vmem:[%s5885_s5 + $0x20] sm:$0xff] }
 0x2d1   :  { %2684 = vmatpush.bf16.msrb.mxu3 %v3764_v24  ;;  %v3528_v24 = vor.u32 %v4086_v18, %v3525_v60  ;;  %v4074_v17 = vld [vmem:[%s5883_s3 + $0x10c] sm:$0xf]  ;;  %v4169_v18 = vld [vmem:[%s5885_s5] sm:$0xff] }
 0x2d2   :  { %2647 = vmatpush.bf16.msrb.mxu0 %v3348_v25  ;;  %2660 = vmatpush.bf16.msrb.mxu1 %v3476_v26  ;;  %v4050_v25 = vld [vmem:[%s5883_s3 + $0x4c] sm:$0xf]  ;;  %v3381_v26 = vld [vmem:[%s5883_s3 + $0x58] sm:$0xf0]  ;;  %v4181_v60 = vld [vmem:[%s5885_s5 + $0x60] sm:$0xff] }
 0x2d3   :  { %v3384_v14 = vor.u32 %v4050_v25, %v3381_v26  ;;  %v4110_v3 = vld [vmem:[%s5883_s3 + $0x22c] sm:$0xf]  ;;  %v4177_v26 = vld [vmem:[%s5885_s5 + $0x40] sm:$0xff] }
 0x2d4   :  { %2672 = vmatpush.bf16.msrb.mxu2 %v3620_v10  ;;  %v3653_v10 = vld [vmem:[%s5883_s3 + $0x278] sm:$0xf0]  ;;  %v4142_v63 = vld [vmem:[%s5883_s3 + $0x32c] sm:$0xf]  ;;  %v3624_v1 = vor.u32 %v4110_v3, %v3621_v4 }
 0x2d5   :  { %2685 = vmatpush.bf16.msrb.mxu3 %v3748_v32  ;;  %2648 = vmatmul.bf16.vlgmr.msrb.gmra.mxu0 %v5370_v56  ;;  %v3781_v32 = vld [vmem:[%s5883_s3 + $0x378] sm:$0xf0]  ;;  %v3656_v45 = vor.u32 %v4118_v43, %v3653_v10  ;;  %v3752_v12 = vor.u32 %v4142_v63, %v3749_v6  ;;  %v4106_v53 = vld [vmem:[%s5883_s3 + $0x20c] sm:$0xf] }
 0x2d6   :  { %2692 = vmatpush.bf16.msra.mxu0 %v3464_v21  ;;  %2705 = vmatpush.bf16.msra.mxu1 %v3592_v9  ;;  %v3672_v21 = vor.u32 %v4122_v54, %v3669_v8  ;;  %v3800_v9 = vor.u32 %v4154_v19, %v3797_v29  ;;  %v3784_v27 = vor.u32 %v4150_v0, %v3781_v32  ;;  %v4174_v59 = vld [vmem:[%s5885_s5 + $0x28] sm:$0xff]  ;;  %v4179_v54 = vld [vmem:[%s5885_s5 + $0x50] sm:$0xff]  ;;  %v5826_v29 = vld [vmem:[%s5884_s4] sm:$0xf] }
 0x2d7   :  { %2661 = vmatmul.bf16.vlgmr.msrb.gmra.mxu1 %v5379_v58  ;;  %v4170_v57 = vld [vmem:[%s5885_s5 + $0x8] sm:$0xff]  ;;  %v4191_v8 = vld [vmem:[%s5885_s5 + $0xb0] sm:$0xff]  ;;  %v1859_v20 = vperm.slane %v5826_v29, 0 }
 0x2d8   :  { %2673 = vmatpush.bf16.msrb.mxu2 %v3604_v46  ;;  %v3765_v46 = vld [vmem:[%s5883_s3 + $0x358] sm:$0xf0]  ;;  %v4182_v61 = vld [vmem:[%s5885_s5 + $0x68] sm:$0xff] }
 0x2d9   :  { %2686 = vmatpush.bf16.msrb.mxu3 %v3732_v38  ;;  %v3477_v38 = vld [vmem:[%s5883_s3 + $0x118] sm:$0xf0]  ;;  %v4186_v33 = vld [vmem:[%s5885_s5 + $0x88] sm:$0xff] }
 0x2da   :  { %2693 = vmatpush.bf16.msra.mxu0 %v3448_v37  ;;  %2706 = vmatpush.bf16.msra.mxu1 %v3576_v36  ;;  %v4114_v37 = vld [vmem:[%s5883_s3 + $0x24c] sm:$0xf]  ;;  %v3637_v36 = vld [vmem:[%s5883_s3 + $0x258] sm:$0xf0] }
 0x2db   :  { %2674 = vmatmul.bf16.vlgmr.msrb.gmra.mxu2 %v5414_v13 }
 0x2dc   :  { %2718 = vmatpush.bf16.msra.mxu2 %v3720_v40  ;;  %2687 = vmatmul.bf16.vlgmr.msrb.gmra.mxu3 %v5426_v23  ;;  %v3640_v40 = vor.u32 %v4114_v37, %v3637_v36  ;;  %v4185_v37 = vld [vmem:[%s5885_s5 + $0x80] sm:$0xff]  ;;  %v4200_v36 = vld [vmem:[%s5885_s5 + $0xf8] sm:$0xff] }
 0x2dd   :  { %2731 = vmatpush.bf16.msra.mxu3 %v3848_v5  ;;  %v3768_v5 = vor.u32 %v4146_v11, %v3765_v46 }
 0x2de   :  { %2694 = vmatpush.bf16.msra.mxu0 %v3432_v41  ;;  %2707 = vmatpush.bf16.msra.mxu1 %v3560_v15  ;;  %v3352_v41 = vor.u32 %v4042_v39, %v3349_v47  ;;  %v3480_v15 = vor.u32 %v4074_v17, %v3477_v38  ;;  %v4199_v39 = vld [vmem:[%s5885_s5 + $0xf0] sm:$0xff] }
 0x2e0   :  { %2719 = vmatpush.bf16.msra.mxu2 %v3704_v48  ;;  %v3605_v48 = vld [vmem:[%s5883_s3 + $0x218] sm:$0xf0] }
 0x2e1   :  { %2732 = vmatpush.bf16.msra.mxu3 %v3832_v55  ;;  %v4138_v55 = vld [vmem:[%s5883_s3 + $0x30c] sm:$0xf] }
 0x2e2   :  { %2695 = vmatpush.bf16.msra.mxu0 %v3416_v62  ;;  %2708 = vmatpush.bf16.msra.mxu1 %v3544_v50  ;;  %v3608_v62 = vor.u32 %v4106_v53, %v3605_v48  ;;  %v3736_v50 = vor.u32 %v4138_v55, %v3733_v49  ;;  %v1861_v48 = vperm.slane %v5826_v29, 2 }
 0x2e4   :  { %2720 = vmatpush.bf16.msra.mxu2 %v3688_v16  ;;  %v4180_v16 = vld [vmem:[%s5885_s5 + $0x58] sm:$0xff] }
 0x2e5   :  { %2733 = vmatpush.bf16.msra.mxu3 %v3816_v7  ;;  %v4192_v7 = vld [vmem:[%s5885_s5 + $0xb8] sm:$0xff] }
 0x2e6   :  { %2696 = vmatpush.bf16.msra.mxu0 %v3400_v22  ;;  %2709 = vmatpush.bf16.msra.mxu1 %v3528_v24  ;;  %v4178_v22 = vld [vmem:[%s5885_s5 + $0x48] sm:$0xff] }
 0x2e7   :  { %v4190_v24 = vld [vmem:[%s5885_s5 + $0xa8] sm:$0xff] }
 0x2e8   :  { %2721 = vmatpush.bf16.msra.mxu2 %v3672_v21  ;;  %v4188_v21 = vld [vmem:[%s5885_s5 + $0x98] sm:$0xff] }
 0x2e9   :  { %2734 = vmatpush.bf16.msra.mxu3 %v3800_v9 }
 0x2ea   :  { %2697 = vmatpush.bf16.msra.mxu0 %v3384_v14  ;;  %2710 = vmatpush.bf16.msra.mxu1 %v3512_v31  ;;  %v4187_v14 = vld [vmem:[%s5885_s5 + $0x90] sm:$0xff] }
 0x2ec   :  { %2722 = vmatpush.bf16.msra.mxu2 %v3656_v45 }
 0x2ed   :  { %2735 = vmatpush.bf16.msra.mxu3 %v3784_v27 }
 0x2ee   :  { %2698 = vmatpush.bf16.msra.mxu0 %v3368_v44  ;;  %2711 = vmatpush.bf16.msra.mxu1 %v3496_v30  ;;  %v1860_v30 = vperm.slane %v5826_v29, 1 }
 0x2f0   :  { %2723 = vmatpush.bf16.msra.mxu2 %v3640_v40  ;;  %v4198_v40 = vld [vmem:[%s5885_s5 + $0xe8] sm:$0xff] }
 0x2f1   :  { %2736 = vmatpush.bf16.msra.mxu3 %v3768_v5 }
 0x2f2   :  { %2699 = vmatpush.bf16.msra.mxu0 %v3352_v41  ;;  %2712 = vmatpush.bf16.msra.mxu1 %v3480_v15  ;;  %v4197_v15 = vld [vmem:[%s5885_s5 + $0xe0] sm:$0xff] }
 0x2f4   :  { %2724 = vmatpush.bf16.msra.mxu2 %v3624_v1 }
 0x2f5   :  { %2737 = vmatpush.bf16.msra.mxu3 %v3752_v12  ;;  %2700 = vmatmul.bf16.vlgmr.msra.gmra.mxu0 %v5370_v56  ;;  %v4184_v56 = vld [vmem:[%s5885_s5 + $0x78] sm:$0xff] }
 0x2f6   :  { %3012 = vmatpush.bf16.msrb.mxu0 %v4176_v2  ;;  %2713 = vmatmul.bf16.vlgmr.msra.gmra.mxu1 %v5379_v58  ;;  %v4172_v58 = vld [vmem:[%s5885_s5 + $0x18] sm:$0xff] }
 0x2f7   :  { %3025 = vmatpush.bf16.msrb.mxu1 %v4184_v56  ;;  %v4196_v2 = vld [vmem:[%s5885_s5 + $0xd8] sm:$0xff] }
 0x2f8   :  { %2725 = vmatpush.bf16.msra.mxu2 %v3608_v62 }
 0x2f9   :  { %2738 = vmatpush.bf16.msra.mxu3 %v3736_v50 }
 0x2fa   :  { %3013 = vmatpush.bf16.msrb.mxu0 %v4175_v51  ;;  %v4195_v51 = vld [vmem:[%s5885_s5 + $0xd0] sm:$0xff] }
 0x2fb   :  { %2726 = vmatmul.bf16.vlgmr.msra.gmra.mxu2 %v5414_v13  ;;  %v4171_v13 = vld [vmem:[%s5885_s5 + $0x10] sm:$0xff] }
 0x2fc   :  { %2739 = vmatmul.bf16.vlgmr.msra.gmra.mxu3 %v5426_v23  ;;  %v4183_v23 = vld [vmem:[%s5885_s5 + $0x70] sm:$0xff]  ;;  %3038 = vmatpush.bf16.msrb.mxu2 %v4192_v7 }
 0x2fd   :  { %3026 = vmatpush.bf16.msrb.mxu1 %v4183_v23  ;;  %3051 = vmatpush.bf16.msrb.mxu3 %v4200_v36 }
 0x2fe   :  { %3014 = vmatpush.bf16.msrb.mxu0 %v4174_v59 }
 0x300   :  { %3039 = vmatpush.bf16.msrb.mxu2 %v4191_v8 }
 0x301   :  { %3027 = vmatpush.bf16.msrb.mxu1 %v4182_v61  ;;  %3052 = vmatpush.bf16.msrb.mxu3 %v4199_v39 }
 0x302   :  { %3015 = vmatpush.bf16.msrb.mxu0 %v4173_v52  ;;  %v4194_v52 = vld [vmem:[%s5885_s5 + $0xc8] sm:$0xff] }
 0x304   :  { %3040 = vmatpush.bf16.msrb.mxu2 %v4190_v24 }
 0x305   :  { %3028 = vmatpush.bf16.msrb.mxu1 %v4181_v60  ;;  %3053 = vmatpush.bf16.msrb.mxu3 %v4198_v40 }
 0x306   :  { %3016 = vmatpush.bf16.msrb.mxu0 %v4172_v58 }
 0x308   :  { %3041 = vmatpush.bf16.msrb.mxu2 %v4189_v34 }
 0x309   :  { %3029 = vmatpush.bf16.msrb.mxu1 %v4180_v16  ;;  %3054 = vmatpush.bf16.msrb.mxu3 %v4197_v15 }
 0x30a   :  { %3017 = vmatpush.bf16.msrb.mxu0 %v4171_v13 }
 0x30c   :  { %3042 = vmatpush.bf16.msrb.mxu2 %v4188_v21 }
 0x30d   :  { %3030 = vmatpush.bf16.msrb.mxu1 %v4179_v54  ;;  %3055 = vmatpush.bf16.msrb.mxu3 %v4196_v2 }
 0x30e   :  { %3018 = vmatpush.bf16.msrb.mxu0 %v4170_v57  ;;  %v4193_v57 = vld [vmem:[%s5885_s5 + $0xc0] sm:$0xff] }
 0x310   :  { %3043 = vmatpush.bf16.msrb.mxu2 %v4187_v14 }
 0x311   :  { %3031 = vmatpush.bf16.msrb.mxu1 %v4178_v22  ;;  %3056 = vmatpush.bf16.msrb.mxu3 %v4195_v51  ;;  %v1862_v22 = vperm.slane %v5826_v29, 3  ;;  %v4202_v29 = vld [vmem:[%s5886_s6] ss:$0 sm:$0xff] }
 0x312   :  { %3019 = vmatpush.bf16.msrb.mxu0 %v4169_v18 }
 0x314   :  { %3044 = vmatpush.bf16.msrb.mxu2 %v4186_v33 }
 0x315   :  { %3032 = vmatpush.bf16.msrb.mxu1 %v4177_v26  ;;  %3057 = vmatpush.bf16.msrb.mxu3 %v4194_v52 }
 0x318   :  { %3045 = vmatpush.bf16.msrb.mxu2 %v4185_v37 }
 0x319   :  { %3058 = vmatpush.bf16.msrb.mxu3 %v4193_v57 }
 0x331   :  { %v2545_v19 = vpop.f32.mrf.mxu0 }
 0x332   :  { %v2558_v25 = vpop.f32.mrf.mxu1  ;;  %v2546_v9 = vadd.f32 %v2545_v19, %v1859_v20 }
 0x334   :  { %v2559_v31 = vadd.f32 %v2558_v25, %v2546_v9 }
 0x339   :  { %v2547_v43 = vpop.f32.mrf.mxu0 }
 0x33a   :  { %v2560_v10 = vpop.f32.mrf.mxu1 }
 0x33e   :  { %v2571_v0 = vpop.f32.mrf.mxu2 }
 0x33f   :  { %v2572_v32 = vadd.f32 %v2571_v0, %v2559_v31  ;;  %v2584_v28 = vpop.f32.mrf.mxu3 }
 0x341   :  { %v2585_v35 = vadd.f32 %v2584_v28, %v2572_v32  ;;  %v2597_v42 = vpop.f32.mrf.mxu0 }
 0x342   :  { %v2610_v45 = vpop.f32.mrf.mxu1  ;;  %v2598_v47 = vadd.f32 %v2597_v42, %v1860_v30 }
 0x343   :  { %v2744_v27 = vmax.f32 %v2585_v35, 0.0 }
 0x344   :  { %v2611_v5 = vadd.f32 %v2610_v45, %v2598_v47 }
 0x345   :  { %v2748_v44 = vpack.c.bf16 %v2744_v27, %v2744_v27 }
 0x346   :  { %v2573_v11 = vpop.f32.mrf.mxu2 }
 0x347   :  { %v2586_v46 = vpop.f32.mrf.mxu3  ;;  %3020 = vmatmul.bf16.vlgmr.msrb.gmra.mxu0 %v2748_v44 }
 0x349   :  { %v2599_v17 = vpop.f32.mrf.mxu0 }
 0x34a   :  { %v2612_v38 = vpop.f32.mrf.mxu1 }
 0x34e   :  { %v2623_v3 = vpop.f32.mrf.mxu2 }
 0x34f   :  { %v2624_v4 = vadd.f32 %v2623_v3, %v2611_v5  ;;  %v2636_v41 = vpop.f32.mrf.mxu3 }
 0x351   :  { %v2637_v63 = vadd.f32 %v2636_v41, %v2624_v4 }
 0x352   :  { %v2649_v6 = vpop.f32.mrf.mxu0 }
 0x353   :  { %v2745_v1 = vmax.f32 %v2637_v63, 0.0  ;;  %v2650_v62 = vadd.f32 %v2649_v6, %v1861_v48 }
 0x354   :  { %v2662_v12 = vpop.f32.mrf.mxu1 }
 0x355   :  { %v2749_v53 = vpack.c.bf16 %v2745_v1, %v2745_v1  ;;  %v2663_v56 = vadd.f32 %v2662_v12, %v2650_v62 }
 0x356   :  { %v2625_v55 = vpop.f32.mrf.mxu2 }
 0x357   :  { %v2638_v49 = vpop.f32.mrf.mxu3  ;;  %3033 = vmatmul.bf16.vlgmr.msrb.gmra.mxu1 %v2749_v53 }
 0x35a   :  { %v2651_v50 = vpop.f32.mrf.mxu0 }
 0x35c   :  { %v2664_v59 = vpop.f32.mrf.mxu1 }
 0x35e   :  { %v2675_v58 = vpop.f32.mrf.mxu2 }
 0x35f   :  { %v2688_v13 = vpop.f32.mrf.mxu3  ;;  %v2676_v23 = vadd.f32 %v2675_v58, %v2663_v56 }
 0x361   :  { %v2689_v61 = vadd.f32 %v2688_v13, %v2676_v23 }
 0x363   :  { %v2746_v18 = vmax.f32 %v2689_v61, 0.0 }
 0x365   :  { %v2750_v60 = vpack.c.bf16 %v2746_v18, %v2746_v18 }
 0x366   :  { %v2677_v16 = vpop.f32.mrf.mxu2 }
 0x367   :  { %v2690_v7 = vpop.f32.mrf.mxu3  ;;  %3046 = vmatmul.bf16.vlgmr.msrb.gmra.mxu2 %v2750_v60 }
 0x372   :  { %v2701_v54 = vpop.f32.mrf.mxu0 }
 0x373   :  { %v2714_v8 = vpop.f32.mrf.mxu1  ;;  %v2702_v24 = vadd.f32 %v2701_v54, %v1862_v22 }
 0x375   :  { %v2715_v26 = vadd.f32 %v2714_v8, %v2702_v24 }
 0x37a   :  { %v2703_v19 = vpop.f32.mrf.mxu0 }
 0x37b   :  { %v2716_v25 = vpop.f32.mrf.mxu1 }
 0x37e   :  { %v2727_v34 = vpop.f32.mrf.mxu2 }
 0x37f   :  { %v2728_v20 = vadd.f32 %v2727_v34, %v2715_v26  ;;  %v2740_v21 = vpop.f32.mrf.mxu3 }
 0x381   :  { %v2741_v9 = vadd.f32 %v2740_v21, %v2728_v20 }
 0x383   :  { %v2747_v43 = vmax.f32 %v2741_v9, 0.0 }
 0x385   :  { %v2751_v10 = vpack.c.bf16 %v2747_v43, %v2747_v43 }
 0x386   :  { %v2729_v14 = vpop.f32.mrf.mxu2 }
 0x387   :  { %v2742_v31 = vpop.f32.mrf.mxu3  ;;  %3059 = vmatmul.bf16.vlgmr.msrb.gmra.mxu3 %v2751_v10 }
 0x3c4   :  { %v3021_v0 = vpop.f32.mrf.mxu0 }
 0x3c5   :  { %v3022_v45 = vadd.f32 %v4202_v29, %v3021_v0 }
 0x3cc   :  { %v3023_v32 = vpop.f32.mrf.mxu0 }
 0x3d4   :  { %v3034_v28 = vpop.f32.mrf.mxu1 }
 0x3d5   :  { %v3035_v27 = vadd.f32 %v3034_v28, %v3022_v45 }
 0x3dc   :  { %v3036_v33 = vpop.f32.mrf.mxu1 }
 0x3ea   :  { %v3047_v35 = vpop.f32.mrf.mxu2 }
 0x3eb   :  { %v3048_v37 = vadd.f32 %v3047_v35, %v3035_v27 }
 0x3f2   :  { %v3049_v42 = vpop.f32.mrf.mxu2 }
 0x40a   :  { %v3060_v36 = vpop.f32.mrf.mxu3 }
 0x40b   :  { %v3061_v44 = vadd.f32 %v3060_v36, %v3048_v37 }
 0x40d   :  { %3064 = vst [vmem:[#allocation2] sm:$0x3] %v3061_v44 }
 0x40e   :  { %3075 = dma.vmem_to_hbm [thread:$0]  %s3071_s12, 32, %s3073_s15, [#allocation3]  }
 0x412   :  { %v3062_v30 = vpop.f32.mrf.mxu3 }
 0x413   :  { %4227 = dma.done.wait [#allocation3], 32  }
 0x414   :  { %4228 = vsyncadd [#allocation3], 4294967264 }
 0x415   :  { %3080 = vsyncpa [#allocation3], 1 }

</bundles_post_ra>
